<compile_context>
chip_gen: v6e
topology: v6e:2x2x1
jax: 0.10.0
libtpu: 0.0.40
codegen_flags: <defaults>
</compile_context>

<pallas_src>
import jax
import jax.numpy as jnp
import numpy as np
from jax import lax
from jax.experimental import pallas as pl
from jax.experimental.pallas import tpu as pltpu


# ----------------------------------------------------------------------------
# Pallas kernel
# ----------------------------------------------------------------------------
def seq2seq_kernel(enc_x_ref, dec_x_ref,
                   w_ih_e_ref, w_hh_f_ref, w_hh_b_ref, b_e_ref,
                   w_ih_d_ref, w_hh_d_ref, b_d_ref,
                   w_attn_ref, b_attn_ref,
                   w_out_ref, b_out_ref,
                   out_ref,
                   pre_enc_ref, pre_dec_ref, enc_f_ref, enc_b_ref, dec_h_ref):
    f32 = jnp.float32
    T_enc, B, H = enc_f_ref.shape          # encoder hidden per direction
    T_dec, _, H2 = dec_h_ref.shape         # decoder hidden = 2H
    G = 4 * H                              # per-direction encoder gate width

    # ---- hoisted input-to-hidden GEMMs (biases folded), computed once ------
    # pre_enc rows are time-major (row = t*B + b); columns = [fwd 4H | bwd 4H]
    pre_enc_ref[...] = (
        jnp.dot(enc_x_ref[...], w_ih_e_ref[...], preferred_element_type=f32)
        + b_e_ref[...])
    pre_dec_ref[...] = (
        jnp.dot(dec_x_ref[...], w_ih_d_ref[...], preferred_element_type=f32)
        + b_d_ref[...])

    w_hh_f = w_hh_f_ref[...]
    w_hh_b = w_hh_b_ref[...]
    w_hh_d = w_hh_d_ref[...]

    def cell(pre, h, c, w_hh, hs):
        # pre already holds x @ W_ih + (b_ih + b_hh); PyTorch gate order i,f,g,o
        gates = pre + jnp.dot(h, w_hh, preferred_element_type=f32)
        i = jax.nn.sigmoid(gates[:, 0 * hs:1 * hs])
        f = jax.nn.sigmoid(gates[:, 1 * hs:2 * hs])
        g = jnp.tanh(gates[:, 2 * hs:3 * hs])
        o = jax.nn.sigmoid(gates[:, 3 * hs:4 * hs])
        c_new = f * c + i * g
        h_new = o * jnp.tanh(c_new)
        return h_new, c_new

    # ---- encoder: fwd + bwd recurrences in one fori_loop --------------------
    def enc_step(s, carry):
        h_f, c_f, h_b, c_b = carry
        sr = T_enc - 1 - s
        pre_f = pre_enc_ref[pl.ds(s * B, B), 0:G]        # fwd gates @ time s
        pre_b = pre_enc_ref[pl.ds(sr * B, B), G:2 * G]   # bwd gates @ time sr
        h_f, c_f = cell(pre_f, h_f, c_f, w_hh_f, H)
        h_b, c_b = cell(pre_b, h_b, c_b, w_hh_b, H)
        enc_f_ref[s] = h_f
        enc_b_ref[sr] = h_b
        return h_f, c_f, h_b, c_b

    z = jnp.zeros((B, H), f32)
    h_f, c_f, h_b, c_b = lax.fori_loop(0, T_enc, enc_step, (z, z, z, z),
                                       unroll=True)

    # PyTorch: permute(h_n,(1,0,2)).reshape(B,-1) -> [h_fwd_last ; h_bwd_last]
    h_d0 = jnp.concatenate([h_f, h_b], axis=-1)   # (B, 2H)
    c_d0 = jnp.concatenate([c_f, c_b], axis=-1)

    # ---- decoder recurrence: only (h, c) stay on the serial path ------------
    def dec_step(i, carry):
        h, c = carry
        pre = pre_dec_ref[pl.ds(i * B, B), :]
        h, c = cell(pre, h, c, w_hh_d, H2)
        dec_h_ref[i] = h
        return h, c

    lax.fori_loop(0, T_dec, dec_step, (h_d0, c_d0), unroll=True)

    # ---- attention + projections, hoisted out of the recurrence -------------
    enc_f_all = enc_f_ref[...]     # (T_enc, B, H)
    enc_b_all = enc_b_ref[...]     # (T_enc, B, H)
    dec_all = dec_h_ref[...]       # (T_dec, B, 2H)

    cat_rows = []
    for b in range(B):             # B is small and static
        enc_o = jnp.concatenate([enc_f_all[:, b, :], enc_b_all[:, b, :]],
                                axis=-1)                          # (T_enc, 2H)
        dec_h = dec_all[:, b, :]                                  # (T_dec, 2H)
        # scores[s, t] = <dec_h[s], enc_o[t]>  (MXU, contracted on features)
        scores = lax.dot_general(dec_h, enc_o, (((1,), (1,)), ((), ())),
                                 preferred_element_type=f32)      # (T_dec,T_enc)
        m = jnp.max(scores, axis=-1, keepdims=True)
        p = jnp.exp(scores - m)
        attn = p * pl.reciprocal(jnp.sum(p, axis=-1, keepdims=True),
                                 approx=True)
        ctx = jnp.dot(attn, enc_o, preferred_element_type=f32)    # (T_dec, 2H)
        cat_rows.append(jnp.concatenate([dec_h, ctx], axis=-1))   # (T_dec, 4H)

    cat_all = jnp.concatenate(cat_rows, axis=0)                   # (B*T_dec,4H)
    hid = jnp.tanh(
        jnp.dot(cat_all, w_attn_ref[...], preferred_element_type=f32)
        + b_attn_ref[...])                                        # (B*T_dec,2H)
    # lane-dense (128-wide) logits store
    out_ref[...] = (jnp.dot(hid, w_out_ref[...], preferred_element_type=f32)
                    + b_out_ref[...])


# ----------------------------------------------------------------------------
# Wrapper (embedding gather + layout glue around the pallas_call)
# ----------------------------------------------------------------------------
def seq2seq_attn_forward(enc_ids, dec_ids, params):
    p = params
    f32 = jnp.float32
    enc_emb = jnp.take(p["enc_emb"], enc_ids, axis=0).astype(f32)  # (B,T_enc,E)
    dec_emb = jnp.take(p["dec_emb"], dec_ids, axis=0).astype(f32)  # (B,T_dec,E)

    B, T_enc, E = enc_emb.shape
    T_dec = dec_emb.shape[1]
    H = p["w_hh_f"].shape[0]
    H2 = 2 * H
    V = p["w_out"].shape[1]
    Vp = ((V + 127) // 128) * 128          # lane-dense logits width

    # time-major 2D activations: row = t*B + b (sublane dim gets B*T rows)
    enc_x = jnp.transpose(enc_emb, (1, 0, 2)).reshape(T_enc * B, E)
    dec_x = jnp.transpose(dec_emb, (1, 0, 2)).reshape(T_dec * B, E)

    # fused encoder input-to-hidden weights/bias: columns [fwd 4H | bwd 4H]
    w_ih_e = jnp.concatenate([p["w_ih_f"], p["w_ih_b"]], axis=1)   # (E, 8H)
    b_e = jnp.concatenate([p["b_f"], p["b_b"]], axis=1)            # (1, 8H)

    # pad output projection so the kernel writes full 128-lane tiles
    w_out_p = jnp.zeros((H2, Vp), f32).at[:, :V].set(p["w_out"])
    b_out_p = jnp.zeros((1, Vp), f32).at[:, :V].set(p["b_out"])

    ins = (enc_x, dec_x,
           w_ih_e, p["w_hh_f"], p["w_hh_b"], b_e,
           p["w_ih_d"], p["w_hh_d"], p["b_d"],
           p["w_attn"], p["b_attn"],
           w_out_p, b_out_p)

    out2 = pl.pallas_call(
        seq2seq_kernel,
        out_shape=jax.ShapeDtypeStruct((B * T_dec, Vp), f32),
        in_specs=[pl.BlockSpec(memory_space=pltpu.MemorySpace.VMEM)] * len(ins),
        out_specs=pl.BlockSpec(memory_space=pltpu.MemorySpace.VMEM),
        scratch_shapes=[
            pltpu.VMEM((T_enc * B, 8 * H), f32),   # pre_enc (ih GEMM + bias)
            pltpu.VMEM((T_dec * B, 4 * H2), f32),  # pre_dec (ih GEMM + bias)
            pltpu.VMEM((T_enc, B, H), f32),        # encoder fwd hidden states
            pltpu.VMEM((T_enc, B, H), f32),        # encoder bwd hidden states
            pltpu.VMEM((T_dec, B, H2), f32),       # decoder hidden states
        ],
    )(*ins)

    # rows are (b, t)-major; drop the lane padding of the vocab dimension
    return out2.reshape(B, T_dec, Vp)[:, :, :V]


# ----------------------------------------------------------------------------
# Deterministic parameter init (matches the nn.Module shapes; weights stored
# transposed so the kernel computes x @ W). Biases are b_ih + b_hh, kept 2D.
# ----------------------------------------------------------------------------
def init_params(key, enc_vocab, dec_vocab, emb_dim, H):
    H2, H4 = 2 * H, 4 * H
    ks = iter(jax.random.split(key, 20))

    def u(shape, scale):
        return jax.random.uniform(next(ks), shape, jnp.float32, -scale, scale)

    s = 1.0 / np.sqrt(H)
    enc_emb = u((enc_vocab, emb_dim), 1.0).at[0].set(0.0)   # padding_idx=0
    dec_emb = u((dec_vocab, emb_dim), 1.0).at[0].set(0.0)   # padding_idx=0

    return dict(
        enc_emb=enc_emb,
        dec_emb=dec_emb,
        # encoder LSTM (bidirectional, hidden=H)
        w_ih_f=u((emb_dim, H4), s), w_hh_f=u((H, H4), s), b_f=u((1, H4), s),
        w_ih_b=u((emb_dim, H4), s), w_hh_b=u((H, H4), s), b_b=u((1, H4), s),
        # decoder LSTM (hidden = 2H)
        w_ih_d=u((emb_dim, 4 * H2), s), w_hh_d=u((H2, 4 * H2), s),
        b_d=u((1, 4 * H2), s),
        # dec_attn_fc: Linear(4H -> 2H)
        w_attn=u((4 * H, H2), s), b_attn=u((1, H2), s),
        # dec_fc: Linear(2H -> dec_vocab)
        w_out=u((H2, dec_vocab), s), b_out=u((1, dec_vocab), s),
    )


# ----------------------------------------------------------------------------
# Pure-JAX reference (naive per-step math, independent of the kernel layout)
# ----------------------------------------------------------------------------
def _ref_lstm_cell(x, h, c, w_ih_t, w_hh_t, b, hs):
    gates = (jnp.dot(x, w_ih_t) + jnp.dot(h, w_hh_t) + b)
    i = jax.nn.sigmoid(gates[:, 0 * hs:1 * hs])
    f = jax.nn.sigmoid(gates[:, 1 * hs:2 * hs])
    g = jnp.tanh(gates[:, 2 * hs:3 * hs])
    o = jax.nn.sigmoid(gates[:, 3 * hs:4 * hs])
    c_new = f * c + i * g
    return o * jnp.tanh(c_new), c_new


def reference_forward(enc_ids, dec_ids, p):
    f32 = jnp.float32
    enc_emb = jnp.take(p["enc_emb"], enc_ids, axis=0)
    dec_emb = jnp.take(p["dec_emb"], dec_ids, axis=0)
    B, T_enc, _ = enc_emb.shape
    T_dec = dec_emb.shape[1]
    H = p["w_hh_f"].shape[0]
    H2 = 2 * H

    h = jnp.zeros((B, H), f32); c = jnp.zeros((B, H), f32)
    fwd = []
    for t in range(T_enc):
        h, c = _ref_lstm_cell(enc_emb[:, t, :], h, c,
                              p["w_ih_f"], p["w_hh_f"], p["b_f"], H)
        fwd.append(h)
    h_fl, c_fl = h, c

    h = jnp.zeros((B, H), f32); c = jnp.zeros((B, H), f32)
    bwd = [None] * T_enc
    for t in range(T_enc - 1, -1, -1):
        h, c = _ref_lstm_cell(enc_emb[:, t, :], h, c,
                              p["w_ih_b"], p["w_hh_b"], p["b_b"], H)
        bwd[t] = h
    h_bl, c_bl = h, c

    enc_out = jnp.stack(
        [jnp.concatenate([fwd[t], bwd[t]], axis=-1) for t in range(T_enc)],
        axis=1)                                               # (B, T_enc, 2H)

    h_d = jnp.concatenate([h_fl, h_bl], axis=-1)
    c_d = jnp.concatenate([c_fl, c_bl], axis=-1)

    steps = []
    for i in range(T_dec):
        h_d, c_d = _ref_lstm_cell(dec_emb[:, i, :], h_d, c_d,
                                  p["w_ih_d"], p["w_hh_d"], p["b_d"], H2)
        scores = jnp.sum(enc_out * h_d[:, None, :], axis=-1)  # (B, T_enc)
        m = jnp.max(scores, axis=1, keepdims=True)
        pe = jnp.exp(scores - m)
        a = pe / jnp.sum(pe, axis=1, keepdims=True)
        c_t = jnp.sum(a[:, :, None] * enc_out, axis=1)        # (B, 2H)
        cat = jnp.concatenate([h_d, c_t], axis=-1)
        out_h = jnp.tanh(jnp.dot(cat, p["w_attn"]) + p["b_attn"])
        steps.append(jnp.dot(out_h, p["w_out"]) + p["b_out"])
    return jnp.stack(steps, axis=1)                            # (B, T_dec, V)


if __name__ == "__main__":
    ENC_VOCAB, DEC_VOCAB = 40, 40
    EMB_DIM, H = 32, 32            # rnn_hidden_size = 32 -> decoder hidden 64
    B, T_ENC, T_DEC = 2, 8, 8

    root = jax.random.PRNGKey(0)
    k_par, k_enc, k_dec = jax.random.split(root, 3)
    params = init_params(k_par, ENC_VOCAB, DEC_VOCAB, EMB_DIM, H)

    enc_ids = jax.random.randint(k_enc, (B, T_ENC), 0, ENC_VOCAB, dtype=jnp.int32)
    dec_ids = jax.random.randint(k_dec, (B, T_DEC), 0, DEC_VOCAB, dtype=jnp.int32)

    fwd = jax.jit(seq2seq_attn_forward)
    out = jax.block_until_ready(fwd(enc_ids, dec_ids, params))

    ref = jax.block_until_ready(reference_forward(enc_ids, dec_ids, params))

    assert out.shape == (B, T_DEC, DEC_VOCAB), out.shape
    # approx-reciprocal softmax + reassociated f32 sums -> slightly looser tol
    np.testing.assert_allclose(np.asarray(out), np.asarray(ref),
                               rtol=2e-3, atol=2e-3)
    print("KERNEL_OK")
</pallas_src>

<mosaic_0001>
module attributes {stable_mosaic.version = 11 : i64} {
  func.func @seq2seq_kernel(%arg0: memref<16x32xf32, #tpu.memory_space<vmem>>, %arg1: memref<16x32xf32, #tpu.memory_space<vmem>>, %arg2: memref<32x256xf32, #tpu.memory_space<vmem>>, %arg3: memref<32x128xf32, #tpu.memory_space<vmem>>, %arg4: memref<32x128xf32, #tpu.memory_space<vmem>>, %arg5: memref<1x256xf32, #tpu.memory_space<vmem>>, %arg6: memref<32x256xf32, #tpu.memory_space<vmem>>, %arg7: memref<64x256xf32, #tpu.memory_space<vmem>>, %arg8: memref<1x256xf32, #tpu.memory_space<vmem>>, %arg9: memref<128x64xf32, #tpu.memory_space<vmem>>, %arg10: memref<1x64xf32, #tpu.memory_space<vmem>>, %arg11: memref<64x128xf32, #tpu.memory_space<vmem>>, %arg12: memref<1x128xf32, #tpu.memory_space<vmem>>, %arg13: memref<16x128xf32, #tpu.memory_space<vmem>>, %arg14: memref<16x256xf32, #tpu.memory_space<vmem>>, %arg15: memref<16x256xf32, #tpu.memory_space<vmem>>, %arg16: memref<8x2x32xf32, #tpu.memory_space<vmem>>, %arg17: memref<8x2x32xf32, #tpu.memory_space<vmem>>, %arg18: memref<8x2x64xf32, #tpu.memory_space<vmem>>) attributes {dimension_semantics = [], scalar_prefetch = 0 : i64, scratch_operands = 5 : i64, tpu.core_type = #tpu.core_type<tc>} {
    %c0 = arith.constant 0 : index
    %c0_0 = arith.constant 0 : index
    %0 = vector.load %arg0[%c0, %c0_0] : memref<16x32xf32, #tpu.memory_space<vmem>>, vector<16x32xf32>
    %c0_1 = arith.constant 0 : index
    %c0_2 = arith.constant 0 : index
    %1 = vector.load %arg2[%c0_1, %c0_2] : memref<32x256xf32, #tpu.memory_space<vmem>>, vector<32x256xf32>
    %cst = arith.constant dense<0.000000e+00> : vector<16x256xf32>
    %2 = tpu.matmul %0, %1, %cst {dimension_numbers = #tpu.dot_dimension_numbers<[1], [0], [0], [1], [0, 0, 1, 1], [], []>} : vector<16x32xf32>, vector<32x256xf32>, vector<16x256xf32> -> vector<16x256xf32>
    %c0_3 = arith.constant 0 : index
    %c0_4 = arith.constant 0 : index
    %3 = vector.load %arg5[%c0_3, %c0_4] : memref<1x256xf32, #tpu.memory_space<vmem>>, vector<1x256xf32>
    %4 = vector.broadcast %3 : vector<1x256xf32> to vector<16x256xf32>
    %5 = arith.addf %2, %4 : vector<16x256xf32>
    %c0_5 = arith.constant 0 : index
    %c0_6 = arith.constant 0 : index
    %6 = vector.load %arg14[%c0_5, %c0_6] : memref<16x256xf32, #tpu.memory_space<vmem>>, vector<16x256xf32>
    tpu.vector_store %arg14[%c0_5, %c0_6], %5 {strides = array<i32>} : memref<16x256xf32, #tpu.memory_space<vmem>>, vector<16x256xf32>,
    %c0_7 = arith.constant 0 : index
    %c0_8 = arith.constant 0 : index
    %7 = vector.load %arg1[%c0_7, %c0_8] : memref<16x32xf32, #tpu.memory_space<vmem>>, vector<16x32xf32>
    %c0_9 = arith.constant 0 : index
    %c0_10 = arith.constant 0 : index
    %8 = vector.load %arg6[%c0_9, %c0_10] : memref<32x256xf32, #tpu.memory_space<vmem>>, vector<32x256xf32>
    %cst_11 = arith.constant dense<0.000000e+00> : vector<16x256xf32>
    %9 = tpu.matmul %7, %8, %cst_11 {dimension_numbers = #tpu.dot_dimension_numbers<[1], [0], [0], [1], [0, 0, 1, 1], [], []>} : vector<16x32xf32>, vector<32x256xf32>, vector<16x256xf32> -> vector<16x256xf32>
    %c0_12 = arith.constant 0 : index
    %c0_13 = arith.constant 0 : index
    %10 = vector.load %arg8[%c0_12, %c0_13] : memref<1x256xf32, #tpu.memory_space<vmem>>, vector<1x256xf32>
    %11 = vector.broadcast %10 : vector<1x256xf32> to vector<16x256xf32>
    %12 = arith.addf %9, %11 : vector<16x256xf32>
    %c0_14 = arith.constant 0 : index
    %c0_15 = arith.constant 0 : index
    %13 = vector.load %arg15[%c0_14, %c0_15] : memref<16x256xf32, #tpu.memory_space<vmem>>, vector<16x256xf32>
    tpu.vector_store %arg15[%c0_14, %c0_15], %12 {strides = array<i32>} : memref<16x256xf32, #tpu.memory_space<vmem>>, vector<16x256xf32>,
    %c0_16 = arith.constant 0 : index
    %c0_17 = arith.constant 0 : index
    %14 = vector.load %arg3[%c0_16, %c0_17] : memref<32x128xf32, #tpu.memory_space<vmem>>, vector<32x128xf32>
    %c0_18 = arith.constant 0 : index
    %c0_19 = arith.constant 0 : index
    %15 = vector.load %arg4[%c0_18, %c0_19] : memref<32x128xf32, #tpu.memory_space<vmem>>, vector<32x128xf32>
    %c0_20 = arith.constant 0 : index
    %c0_21 = arith.constant 0 : index
    %16 = vector.load %arg7[%c0_20, %c0_21] : memref<64x256xf32, #tpu.memory_space<vmem>>, vector<64x256xf32>
    %cst_22 = arith.constant 0.000000e+00 : f32
    %17 = vector.broadcast %cst_22 : f32 to vector<2x32xf32>
    %c0_i32 = arith.constant 0 : i32
    %c7_i32 = arith.constant 7 : i32
    %18 = arith.subi %c7_i32, %c0_i32 : i32
    %c2_i32 = arith.constant 2 : i32
    %19 = arith.muli %c0_i32, %c2_i32 : i32
    %20 = arith.index_cast %19 : i32 to index
    %c0_23 = arith.constant 0 : index
    %21 = vector.load %arg14[%20, %c0_23] : memref<16x256xf32, #tpu.memory_space<vmem>>, vector<2x128xf32>
    %c2_i32_24 = arith.constant 2 : i32
    %22 = arith.muli %18, %c2_i32_24 : i32
    %23 = arith.index_cast %22 : i32 to index
    %c128 = arith.constant 128 : index
    %24 = vector.load %arg14[%23, %c128] : memref<16x256xf32, #tpu.memory_space<vmem>>, vector<2x128xf32>
    %cst_25 = arith.constant dense<0.000000e+00> : vector<2x128xf32>
    %25 = tpu.matmul %17, %14, %cst_25 {dimension_numbers = #tpu.dot_dimension_numbers<[1], [0], [0], [1], [0, 0, 1, 1], [], []>} : vector<2x32xf32>, vector<32x128xf32>, vector<2x128xf32> -> vector<2x128xf32>
    %26 = arith.addf %21, %25 : vector<2x128xf32>
    %27 = vector.extract_strided_slice %26 {offsets = [0, 0], sizes = [2, 32], strides = [1, 1]} : vector<2x128xf32> to vector<2x32xf32>
    %28 = arith.negf %27 : vector<2x32xf32>
    %29 = math.exp %28 : vector<2x32xf32>
    %cst_26 = arith.constant 1.000000e+00 : f32
    %30 = vector.broadcast %cst_26 : f32 to vector<2x32xf32>
    %31 = arith.addf %30, %29 : vector<2x32xf32>
    %32 = arith.divf %30, %31 : vector<2x32xf32>
    %33 = vector.extract_strided_slice %26 {offsets = [0, 32], sizes = [2, 32], strides = [1, 1]} : vector<2x128xf32> to vector<2x32xf32>
    %34 = arith.negf %33 : vector<2x32xf32>
    %35 = math.exp %34 : vector<2x32xf32>
    %cst_27 = arith.constant 1.000000e+00 : f32
    %36 = vector.broadcast %cst_27 : f32 to vector<2x32xf32>
    %37 = arith.addf %36, %35 : vector<2x32xf32>
    %38 = arith.divf %36, %37 : vector<2x32xf32>
    %39 = vector.extract_strided_slice %26 {offsets = [0, 64], sizes = [2, 32], strides = [1, 1]} : vector<2x128xf32> to vector<2x32xf32>
    %40 = math.tanh %39 : vector<2x32xf32>
    %41 = vector.extract_strided_slice %26 {offsets = [0, 96], sizes = [2, 32], strides = [1, 1]} : vector<2x128xf32> to vector<2x32xf32>
    %42 = arith.negf %41 : vector<2x32xf32>
    %43 = math.exp %42 : vector<2x32xf32>
    %cst_28 = arith.constant 1.000000e+00 : f32
    %44 = vector.broadcast %cst_28 : f32 to vector<2x32xf32>
    %45 = arith.addf %44, %43 : vector<2x32xf32>
    %46 = arith.divf %44, %45 : vector<2x32xf32>
    %47 = arith.mulf %38, %17 : vector<2x32xf32>
    %48 = arith.mulf %32, %40 : vector<2x32xf32>
    %49 = arith.addf %47, %48 : vector<2x32xf32>
    %50 = math.tanh %49 : vector<2x32xf32>
    %51 = arith.mulf %46, %50 : vector<2x32xf32>
    %cst_29 = arith.constant dense<0.000000e+00> : vector<2x128xf32>
    %52 = tpu.matmul %17, %15, %cst_29 {dimension_numbers = #tpu.dot_dimension_numbers<[1], [0], [0], [1], [0, 0, 1, 1], [], []>} : vector<2x32xf32>, vector<32x128xf32>, vector<2x128xf32> -> vector<2x128xf32>
    %53 = arith.addf %24, %52 : vector<2x128xf32>
    %54 = vector.extract_strided_slice %53 {offsets = [0, 0], sizes = [2, 32], strides = [1, 1]} : vector<2x128xf32> to vector<2x32xf32>
    %55 = arith.negf %54 : vector<2x32xf32>
    %56 = math.exp %55 : vector<2x32xf32>
    %cst_30 = arith.constant 1.000000e+00 : f32
    %57 = vector.broadcast %cst_30 : f32 to vector<2x32xf32>
    %58 = arith.addf %57, %56 : vector<2x32xf32>
    %59 = arith.divf %57, %58 : vector<2x32xf32>
    %60 = vector.extract_strided_slice %53 {offsets = [0, 32], sizes = [2, 32], strides = [1, 1]} : vector<2x128xf32> to vector<2x32xf32>
    %61 = arith.negf %60 : vector<2x32xf32>
    %62 = math.exp %61 : vector<2x32xf32>
    %cst_31 = arith.constant 1.000000e+00 : f32
    %63 = vector.broadcast %cst_31 : f32 to vector<2x32xf32>
    %64 = arith.addf %63, %62 : vector<2x32xf32>
    %65 = arith.divf %63, %64 : vector<2x32xf32>
    %66 = vector.extract_strided_slice %53 {offsets = [0, 64], sizes = [2, 32], strides = [1, 1]} : vector<2x128xf32> to vector<2x32xf32>
    %67 = math.tanh %66 : vector<2x32xf32>
    %68 = vector.extract_strided_slice %53 {offsets = [0, 96], sizes = [2, 32], strides = [1, 1]} : vector<2x128xf32> to vector<2x32xf32>
    %69 = arith.negf %68 : vector<2x32xf32>
    %70 = math.exp %69 : vector<2x32xf32>
    %cst_32 = arith.constant 1.000000e+00 : f32
    %71 = vector.broadcast %cst_32 : f32 to vector<2x32xf32>
    %72 = arith.addf %71, %70 : vector<2x32xf32>
    %73 = arith.divf %71, %72 : vector<2x32xf32>
    %74 = arith.mulf %65, %17 : vector<2x32xf32>
    %75 = arith.mulf %59, %67 : vector<2x32xf32>
    %76 = arith.addf %74, %75 : vector<2x32xf32>
    %77 = math.tanh %76 : vector<2x32xf32>
    %78 = arith.mulf %73, %77 : vector<2x32xf32>
    %79 = arith.index_cast %c0_i32 : i32 to index
    %c0_33 = arith.constant 0 : index
    %c0_34 = arith.constant 0 : index
    %80 = vector.load %arg16[%79, %c0_33, %c0_34] : memref<8x2x32xf32, #tpu.memory_space<vmem>>, vector<1x2x32xf32>
    %81 = vector.shape_cast %80 : vector<1x2x32xf32> to vector<2x32xf32>
    %82 = vector.shape_cast %51 : vector<2x32xf32> to vector<1x2x32xf32>
    tpu.vector_store %arg16[%79, %c0_33, %c0_34], %82 {strides = array<i32>} : memref<8x2x32xf32, #tpu.memory_space<vmem>>, vector<1x2x32xf32>,
    %83 = arith.index_cast %18 : i32 to index
    %c0_35 = arith.constant 0 : index
    %c0_36 = arith.constant 0 : index
    %84 = vector.load %arg17[%83, %c0_35, %c0_36] : memref<8x2x32xf32, #tpu.memory_space<vmem>>, vector<1x2x32xf32>
    %85 = vector.shape_cast %84 : vector<1x2x32xf32> to vector<2x32xf32>
    %86 = vector.shape_cast %78 : vector<2x32xf32> to vector<1x2x32xf32>
    tpu.vector_store %arg17[%83, %c0_35, %c0_36], %86 {strides = array<i32>} : memref<8x2x32xf32, #tpu.memory_space<vmem>>, vector<1x2x32xf32>,
    %c1_i32 = arith.constant 1 : i32
    %c7_i32_37 = arith.constant 7 : i32
    %87 = arith.subi %c7_i32_37, %c1_i32 : i32
    %c2_i32_38 = arith.constant 2 : i32
    %88 = arith.muli %c1_i32, %c2_i32_38 : i32
    %89 = arith.index_cast %88 : i32 to index
    %c0_39 = arith.constant 0 : index
    %90 = vector.load %arg14[%89, %c0_39] : memref<16x256xf32, #tpu.memory_space<vmem>>, vector<2x128xf32>
    %c2_i32_40 = arith.constant 2 : i32
    %91 = arith.muli %87, %c2_i32_40 : i32
    %92 = arith.index_cast %91 : i32 to index
    %c128_41 = arith.constant 128 : index
    %93 = vector.load %arg14[%92, %c128_41] : memref<16x256xf32, #tpu.memory_space<vmem>>, vector<2x128xf32>
    %cst_42 = arith.constant dense<0.000000e+00> : vector<2x128xf32>
    %94 = tpu.matmul %51, %14, %cst_42 {dimension_numbers = #tpu.dot_dimension_numbers<[1], [0], [0], [1], [0, 0, 1, 1], [], []>} : vector<2x32xf32>, vector<32x128xf32>, vector<2x128xf32> -> vector<2x128xf32>
    %95 = arith.addf %90, %94 : vector<2x128xf32>
    %96 = vector.extract_strided_slice %95 {offsets = [0, 0], sizes = [2, 32], strides = [1, 1]} : vector<2x128xf32> to vector<2x32xf32>
    %97 = arith.negf %96 : vector<2x32xf32>
    %98 = math.exp %97 : vector<2x32xf32>
    %cst_43 = arith.constant 1.000000e+00 : f32
    %99 = vector.broadcast %cst_43 : f32 to vector<2x32xf32>
    %100 = arith.addf %99, %98 : vector<2x32xf32>
    %101 = arith.divf %99, %100 : vector<2x32xf32>
    %102 = vector.extract_strided_slice %95 {offsets = [0, 32], sizes = [2, 32], strides = [1, 1]} : vector<2x128xf32> to vector<2x32xf32>
    %103 = arith.negf %102 : vector<2x32xf32>
    %104 = math.exp %103 : vector<2x32xf32>
    %cst_44 = arith.constant 1.000000e+00 : f32
    %105 = vector.broadcast %cst_44 : f32 to vector<2x32xf32>
    %106 = arith.addf %105, %104 : vector<2x32xf32>
    %107 = arith.divf %105, %106 : vector<2x32xf32>
    %108 = vector.extract_strided_slice %95 {offsets = [0, 64], sizes = [2, 32], strides = [1, 1]} : vector<2x128xf32> to vector<2x32xf32>
    %109 = math.tanh %108 : vector<2x32xf32>
    %110 = vector.extract_strided_slice %95 {offsets = [0, 96], sizes = [2, 32], strides = [1, 1]} : vector<2x128xf32> to vector<2x32xf32>
    %111 = arith.negf %110 : vector<2x32xf32>
    %112 = math.exp %111 : vector<2x32xf32>
    %cst_45 = arith.constant 1.000000e+00 : f32
    %113 = vector.broadcast %cst_45 : f32 to vector<2x32xf32>
    %114 = arith.addf %113, %112 : vector<2x32xf32>
    %115 = arith.divf %113, %114 : vector<2x32xf32>
    %116 = arith.mulf %107, %49 : vector<2x32xf32>
    %117 = arith.mulf %101, %109 : vector<2x32xf32>
    %118 = arith.addf %116, %117 : vector<2x32xf32>
    %119 = math.tanh %118 : vector<2x32xf32>
    %120 = arith.mulf %115, %119 : vector<2x32xf32>
    %cst_46 = arith.constant dense<0.000000e+00> : vector<2x128xf32>
    %121 = tpu.matmul %78, %15, %cst_46 {dimension_numbers = #tpu.dot_dimension_numbers<[1], [0], [0], [1], [0, 0, 1, 1], [], []>} : vector<2x32xf32>, vector<32x128xf32>, vector<2x128xf32> -> vector<2x128xf32>
    %122 = arith.addf %93, %121 : vector<2x128xf32>
    %123 = vector.extract_strided_slice %122 {offsets = [0, 0], sizes = [2, 32], strides = [1, 1]} : vector<2x128xf32> to vector<2x32xf32>
    %124 = arith.negf %123 : vector<2x32xf32>
    %125 = math.exp %124 : vector<2x32xf32>
    %cst_47 = arith.constant 1.000000e+00 : f32
    %126 = vector.broadcast %cst_47 : f32 to vector<2x32xf32>
    %127 = arith.addf %126, %125 : vector<2x32xf32>
    %128 = arith.divf %126, %127 : vector<2x32xf32>
    %129 = vector.extract_strided_slice %122 {offsets = [0, 32], sizes = [2, 32], strides = [1, 1]} : vector<2x128xf32> to vector<2x32xf32>
    %130 = arith.negf %129 : vector<2x32xf32>
    %131 = math.exp %130 : vector<2x32xf32>
    %cst_48 = arith.constant 1.000000e+00 : f32
    %132 = vector.broadcast %cst_48 : f32 to vector<2x32xf32>
    %133 = arith.addf %132, %131 : vector<2x32xf32>
    %134 = arith.divf %132, %133 : vector<2x32xf32>
    %135 = vector.extract_strided_slice %122 {offsets = [0, 64], sizes = [2, 32], strides = [1, 1]} : vector<2x128xf32> to vector<2x32xf32>
    %136 = math.tanh %135 : vector<2x32xf32>
    %137 = vector.extract_strided_slice %122 {offsets = [0, 96], sizes = [2, 32], strides = [1, 1]} : vector<2x128xf32> to vector<2x32xf32>
    %138 = arith.negf %137 : vector<2x32xf32>
    %139 = math.exp %138 : vector<2x32xf32>
    %cst_49 = arith.constant 1.000000e+00 : f32
    %140 = vector.broadcast %cst_49 : f32 to vector<2x32xf32>
    %141 = arith.addf %140, %139 : vector<2x32xf32>
    %142 = arith.divf %140, %141 : vector<2x32xf32>
    %143 = arith.mulf %134, %76 : vector<2x32xf32>
    %144 = arith.mulf %128, %136 : vector<2x32xf32>
    %145 = arith.addf %143, %144 : vector<2x32xf32>
    %146 = math.tanh %145 : vector<2x32xf32>
    %147 = arith.mulf %142, %146 : vector<2x32xf32>
    %148 = arith.index_cast %c1_i32 : i32 to index
    %c0_50 = arith.constant 0 : index
    %c0_51 = arith.constant 0 : index
    %149 = vector.load %arg16[%148, %c0_50, %c0_51] : memref<8x2x32xf32, #tpu.memory_space<vmem>>, vector<1x2x32xf32>
    %150 = vector.shape_cast %149 : vector<1x2x32xf32> to vector<2x32xf32>
    %151 = vector.shape_cast %120 : vector<2x32xf32> to vector<1x2x32xf32>
    tpu.vector_store %arg16[%148, %c0_50, %c0_51], %151 {strides = array<i32>} : memref<8x2x32xf32, #tpu.memory_space<vmem>>, vector<1x2x32xf32>,
    %152 = arith.index_cast %87 : i32 to index
    %c0_52 = arith.constant 0 : index
    %c0_53 = arith.constant 0 : index
    %153 = vector.load %arg17[%152, %c0_52, %c0_53] : memref<8x2x32xf32, #tpu.memory_space<vmem>>, vector<1x2x32xf32>
    %154 = vector.shape_cast %153 : vector<1x2x32xf32> to vector<2x32xf32>
    %155 = vector.shape_cast %147 : vector<2x32xf32> to vector<1x2x32xf32>
    tpu.vector_store %arg17[%152, %c0_52, %c0_53], %155 {strides = array<i32>} : memref<8x2x32xf32, #tpu.memory_space<vmem>>, vector<1x2x32xf32>,
    %c2_i32_54 = arith.constant 2 : i32
    %c7_i32_55 = arith.constant 7 : i32
    %156 = arith.subi %c7_i32_55, %c2_i32_54 : i32
    %c2_i32_56 = arith.constant 2 : i32
    %157 = arith.muli %c2_i32_54, %c2_i32_56 : i32
    %158 = arith.index_cast %157 : i32 to index
    %c0_57 = arith.constant 0 : index
    %159 = vector.load %arg14[%158, %c0_57] : memref<16x256xf32, #tpu.memory_space<vmem>>, vector<2x128xf32>
    %c2_i32_58 = arith.constant 2 : i32
    %160 = arith.muli %156, %c2_i32_58 : i32
    %161 = arith.index_cast %160 : i32 to index
    %c128_59 = arith.constant 128 : index
    %162 = vector.load %arg14[%161, %c128_59] : memref<16x256xf32, #tpu.memory_space<vmem>>, vector<2x128xf32>
    %cst_60 = arith.constant dense<0.000000e+00> : vector<2x128xf32>
    %163 = tpu.matmul %120, %14, %cst_60 {dimension_numbers = #tpu.dot_dimension_numbers<[1], [0], [0], [1], [0, 0, 1, 1], [], []>} : vector<2x32xf32>, vector<32x128xf32>, vector<2x128xf32> -> vector<2x128xf32>
    %164 = arith.addf %159, %163 : vector<2x128xf32>
    %165 = vector.extract_strided_slice %164 {offsets = [0, 0], sizes = [2, 32], strides = [1, 1]} : vector<2x128xf32> to vector<2x32xf32>
    %166 = arith.negf %165 : vector<2x32xf32>
    %167 = math.exp %166 : vector<2x32xf32>
    %cst_61 = arith.constant 1.000000e+00 : f32
    %168 = vector.broadcast %cst_61 : f32 to vector<2x32xf32>
    %169 = arith.addf %168, %167 : vector<2x32xf32>
    %170 = arith.divf %168, %169 : vector<2x32xf32>
    %171 = vector.extract_strided_slice %164 {offsets = [0, 32], sizes = [2, 32], strides = [1, 1]} : vector<2x128xf32> to vector<2x32xf32>
    %172 = arith.negf %171 : vector<2x32xf32>
    %173 = math.exp %172 : vector<2x32xf32>
    %cst_62 = arith.constant 1.000000e+00 : f32
    %174 = vector.broadcast %cst_62 : f32 to vector<2x32xf32>
    %175 = arith.addf %174, %173 : vector<2x32xf32>
    %176 = arith.divf %174, %175 : vector<2x32xf32>
    %177 = vector.extract_strided_slice %164 {offsets = [0, 64], sizes = [2, 32], strides = [1, 1]} : vector<2x128xf32> to vector<2x32xf32>
    %178 = math.tanh %177 : vector<2x32xf32>
    %179 = vector.extract_strided_slice %164 {offsets = [0, 96], sizes = [2, 32], strides = [1, 1]} : vector<2x128xf32> to vector<2x32xf32>
    %180 = arith.negf %179 : vector<2x32xf32>
    %181 = math.exp %180 : vector<2x32xf32>
    %cst_63 = arith.constant 1.000000e+00 : f32
    %182 = vector.broadcast %cst_63 : f32 to vector<2x32xf32>
    %183 = arith.addf %182, %181 : vector<2x32xf32>
    %184 = arith.divf %182, %183 : vector<2x32xf32>
    %185 = arith.mulf %176, %118 : vector<2x32xf32>
    %186 = arith.mulf %170, %178 : vector<2x32xf32>
    %187 = arith.addf %185, %186 : vector<2x32xf32>
    %188 = math.tanh %187 : vector<2x32xf32>
    %189 = arith.mulf %184, %188 : vector<2x32xf32>
    %cst_64 = arith.constant dense<0.000000e+00> : vector<2x128xf32>
    %190 = tpu.matmul %147, %15, %cst_64 {dimension_numbers = #tpu.dot_dimension_numbers<[1], [0], [0], [1], [0, 0, 1, 1], [], []>} : vector<2x32xf32>, vector<32x128xf32>, vector<2x128xf32> -> vector<2x128xf32>
    %191 = arith.addf %162, %190 : vector<2x128xf32>
    %192 = vector.extract_strided_slice %191 {offsets = [0, 0], sizes = [2, 32], strides = [1, 1]} : vector<2x128xf32> to vector<2x32xf32>
    %193 = arith.negf %192 : vector<2x32xf32>
    %194 = math.exp %193 : vector<2x32xf32>
    %cst_65 = arith.constant 1.000000e+00 : f32
    %195 = vector.broadcast %cst_65 : f32 to vector<2x32xf32>
    %196 = arith.addf %195, %194 : vector<2x32xf32>
    %197 = arith.divf %195, %196 : vector<2x32xf32>
    %198 = vector.extract_strided_slice %191 {offsets = [0, 32], sizes = [2, 32], strides = [1, 1]} : vector<2x128xf32> to vector<2x32xf32>
    %199 = arith.negf %198 : vector<2x32xf32>
    %200 = math.exp %199 : vector<2x32xf32>
    %cst_66 = arith.constant 1.000000e+00 : f32
    %201 = vector.broadcast %cst_66 : f32 to vector<2x32xf32>
    %202 = arith.addf %201, %200 : vector<2x32xf32>
    %203 = arith.divf %201, %202 : vector<2x32xf32>
    %204 = vector.extract_strided_slice %191 {offsets = [0, 64], sizes = [2, 32], strides = [1, 1]} : vector<2x128xf32> to vector<2x32xf32>
    %205 = math.tanh %204 : vector<2x32xf32>
    %206 = vector.extract_strided_slice %191 {offsets = [0, 96], sizes = [2, 32], strides = [1, 1]} : vector<2x128xf32> to vector<2x32xf32>
    %207 = arith.negf %206 : vector<2x32xf32>
    %208 = math.exp %207 : vector<2x32xf32>
    %cst_67 = arith.constant 1.000000e+00 : f32
    %209 = vector.broadcast %cst_67 : f32 to vector<2x32xf32>
    %210 = arith.addf %209, %208 : vector<2x32xf32>
    %211 = arith.divf %209, %210 : vector<2x32xf32>
    %212 = arith.mulf %203, %145 : vector<2x32xf32>
    %213 = arith.mulf %197, %205 : vector<2x32xf32>
    %214 = arith.addf %212, %213 : vector<2x32xf32>
    %215 = math.tanh %214 : vector<2x32xf32>
    %216 = arith.mulf %211, %215 : vector<2x32xf32>
    %217 = arith.index_cast %c2_i32_54 : i32 to index
    %c0_68 = arith.constant 0 : index
    %c0_69 = arith.constant 0 : index
    %218 = vector.load %arg16[%217, %c0_68, %c0_69] : memref<8x2x32xf32, #tpu.memory_space<vmem>>, vector<1x2x32xf32>
    %219 = vector.shape_cast %218 : vector<1x2x32xf32> to vector<2x32xf32>
    %220 = vector.shape_cast %189 : vector<2x32xf32> to vector<1x2x32xf32>
    tpu.vector_store %arg16[%217, %c0_68, %c0_69], %220 {strides = array<i32>} : memref<8x2x32xf32, #tpu.memory_space<vmem>>, vector<1x2x32xf32>,
    %221 = arith.index_cast %156 : i32 to index
    %c0_70 = arith.constant 0 : index
    %c0_71 = arith.constant 0 : index
    %222 = vector.load %arg17[%221, %c0_70, %c0_71] : memref<8x2x32xf32, #tpu.memory_space<vmem>>, vector<1x2x32xf32>
    %223 = vector.shape_cast %222 : vector<1x2x32xf32> to vector<2x32xf32>
    %224 = vector.shape_cast %216 : vector<2x32xf32> to vector<1x2x32xf32>
    tpu.vector_store %arg17[%221, %c0_70, %c0_71], %224 {strides = array<i32>} : memref<8x2x32xf32, #tpu.memory_space<vmem>>, vector<1x2x32xf32>,
    %c3_i32 = arith.constant 3 : i32
    %c7_i32_72 = arith.constant 7 : i32
    %225 = arith.subi %c7_i32_72, %c3_i32 : i32
    %c2_i32_73 = arith.constant 2 : i32
    %226 = arith.muli %c3_i32, %c2_i32_73 : i32
    %227 = arith.index_cast %226 : i32 to index
    %c0_74 = arith.constant 0 : index
    %228 = vector.load %arg14[%227, %c0_74] : memref<16x256xf32, #tpu.memory_space<vmem>>, vector<2x128xf32>
    %c2_i32_75 = arith.constant 2 : i32
    %229 = arith.muli %225, %c2_i32_75 : i32
    %230 = arith.index_cast %229 : i32 to index
    %c128_76 = arith.constant 128 : index
    %231 = vector.load %arg14[%230, %c128_76] : memref<16x256xf32, #tpu.memory_space<vmem>>, vector<2x128xf32>
    %cst_77 = arith.constant dense<0.000000e+00> : vector<2x128xf32>
    %232 = tpu.matmul %189, %14, %cst_77 {dimension_numbers = #tpu.dot_dimension_numbers<[1], [0], [0], [1], [0, 0, 1, 1], [], []>} : vector<2x32xf32>, vector<32x128xf32>, vector<2x128xf32> -> vector<2x128xf32>
    %233 = arith.addf %228, %232 : vector<2x128xf32>
    %234 = vector.extract_strided_slice %233 {offsets = [0, 0], sizes = [2, 32], strides = [1, 1]} : vector<2x128xf32> to vector<2x32xf32>
    %235 = arith.negf %234 : vector<2x32xf32>
    %236 = math.exp %235 : vector<2x32xf32>
    %cst_78 = arith.constant 1.000000e+00 : f32
    %237 = vector.broadcast %cst_78 : f32 to vector<2x32xf32>
    %238 = arith.addf %237, %236 : vector<2x32xf32>
    %239 = arith.divf %237, %238 : vector<2x32xf32>
    %240 = vector.extract_strided_slice %233 {offsets = [0, 32], sizes = [2, 32], strides = [1, 1]} : vector<2x128xf32> to vector<2x32xf32>
    %241 = arith.negf %240 : vector<2x32xf32>
    %242 = math.exp %241 : vector<2x32xf32>
    %cst_79 = arith.constant 1.000000e+00 : f32
    %243 = vector.broadcast %cst_79 : f32 to vector<2x32xf32>
    %244 = arith.addf %243, %242 : vector<2x32xf32>
    %245 = arith.divf %243, %244 : vector<2x32xf32>
    %246 = vector.extract_strided_slice %233 {offsets = [0, 64], sizes = [2, 32], strides = [1, 1]} : vector<2x128xf32> to vector<2x32xf32>
    %247 = math.tanh %246 : vector<2x32xf32>
    %248 = vector.extract_strided_slice %233 {offsets = [0, 96], sizes = [2, 32], strides = [1, 1]} : vector<2x128xf32> to vector<2x32xf32>
    %249 = arith.negf %248 : vector<2x32xf32>
    %250 = math.exp %249 : vector<2x32xf32>
    %cst_80 = arith.constant 1.000000e+00 : f32
    %251 = vector.broadcast %cst_80 : f32 to vector<2x32xf32>
    %252 = arith.addf %251, %250 : vector<2x32xf32>
    %253 = arith.divf %251, %252 : vector<2x32xf32>
    %254 = arith.mulf %245, %187 : vector<2x32xf32>
    %255 = arith.mulf %239, %247 : vector<2x32xf32>
    %256 = arith.addf %254, %255 : vector<2x32xf32>
    %257 = math.tanh %256 : vector<2x32xf32>
    %258 = arith.mulf %253, %257 : vector<2x32xf32>
    %cst_81 = arith.constant dense<0.000000e+00> : vector<2x128xf32>
    %259 = tpu.matmul %216, %15, %cst_81 {dimension_numbers = #tpu.dot_dimension_numbers<[1], [0], [0], [1], [0, 0, 1, 1], [], []>} : vector<2x32xf32>, vector<32x128xf32>, vector<2x128xf32> -> vector<2x128xf32>
    %260 = arith.addf %231, %259 : vector<2x128xf32>
    %261 = vector.extract_strided_slice %260 {offsets = [0, 0], sizes = [2, 32], strides = [1, 1]} : vector<2x128xf32> to vector<2x32xf32>
    %262 = arith.negf %261 : vector<2x32xf32>
    %263 = math.exp %262 : vector<2x32xf32>
    %cst_82 = arith.constant 1.000000e+00 : f32
    %264 = vector.broadcast %cst_82 : f32 to vector<2x32xf32>
    %265 = arith.addf %264, %263 : vector<2x32xf32>
    %266 = arith.divf %264, %265 : vector<2x32xf32>
    %267 = vector.extract_strided_slice %260 {offsets = [0, 32], sizes = [2, 32], strides = [1, 1]} : vector<2x128xf32> to vector<2x32xf32>
    %268 = arith.negf %267 : vector<2x32xf32>
    %269 = math.exp %268 : vector<2x32xf32>
    %cst_83 = arith.constant 1.000000e+00 : f32
    %270 = vector.broadcast %cst_83 : f32 to vector<2x32xf32>
    %271 = arith.addf %270, %269 : vector<2x32xf32>
    %272 = arith.divf %270, %271 : vector<2x32xf32>
    %273 = vector.extract_strided_slice %260 {offsets = [0, 64], sizes = [2, 32], strides = [1, 1]} : vector<2x128xf32> to vector<2x32xf32>
    %274 = math.tanh %273 : vector<2x32xf32>
    %275 = vector.extract_strided_slice %260 {offsets = [0, 96], sizes = [2, 32], strides = [1, 1]} : vector<2x128xf32> to vector<2x32xf32>
    %276 = arith.negf %275 : vector<2x32xf32>
    %277 = math.exp %276 : vector<2x32xf32>
    %cst_84 = arith.constant 1.000000e+00 : f32
    %278 = vector.broadcast %cst_84 : f32 to vector<2x32xf32>
    %279 = arith.addf %278, %277 : vector<2x32xf32>
    %280 = arith.divf %278, %279 : vector<2x32xf32>
    %281 = arith.mulf %272, %214 : vector<2x32xf32>
    %282 = arith.mulf %266, %274 : vector<2x32xf32>
    %283 = arith.addf %281, %282 : vector<2x32xf32>
    %284 = math.tanh %283 : vector<2x32xf32>
    %285 = arith.mulf %280, %284 : vector<2x32xf32>
    %286 = arith.index_cast %c3_i32 : i32 to index
    %c0_85 = arith.constant 0 : index
    %c0_86 = arith.constant 0 : index
    %287 = vector.load %arg16[%286, %c0_85, %c0_86] : memref<8x2x32xf32, #tpu.memory_space<vmem>>, vector<1x2x32xf32>
    %288 = vector.shape_cast %287 : vector<1x2x32xf32> to vector<2x32xf32>
    %289 = vector.shape_cast %258 : vector<2x32xf32> to vector<1x2x32xf32>
    tpu.vector_store %arg16[%286, %c0_85, %c0_86], %289 {strides = array<i32>} : memref<8x2x32xf32, #tpu.memory_space<vmem>>, vector<1x2x32xf32>,
    %290 = arith.index_cast %225 : i32 to index
    %c0_87 = arith.constant 0 : index
    %c0_88 = arith.constant 0 : index
    %291 = vector.load %arg17[%290, %c0_87, %c0_88] : memref<8x2x32xf32, #tpu.memory_space<vmem>>, vector<1x2x32xf32>
    %292 = vector.shape_cast %291 : vector<1x2x32xf32> to vector<2x32xf32>
    %293 = vector.shape_cast %285 : vector<2x32xf32> to vector<1x2x32xf32>
    tpu.vector_store %arg17[%290, %c0_87, %c0_88], %293 {strides = array<i32>} : memref<8x2x32xf32, #tpu.memory_space<vmem>>, vector<1x2x32xf32>,
    %c4_i32 = arith.constant 4 : i32
    %c7_i32_89 = arith.constant 7 : i32
    %294 = arith.subi %c7_i32_89, %c4_i32 : i32
    %c2_i32_90 = arith.constant 2 : i32
    %295 = arith.muli %c4_i32, %c2_i32_90 : i32
    %296 = arith.index_cast %295 : i32 to index
    %c0_91 = arith.constant 0 : index
    %297 = vector.load %arg14[%296, %c0_91] : memref<16x256xf32, #tpu.memory_space<vmem>>, vector<2x128xf32>
    %c2_i32_92 = arith.constant 2 : i32
    %298 = arith.muli %294, %c2_i32_92 : i32
    %299 = arith.index_cast %298 : i32 to index
    %c128_93 = arith.constant 128 : index
    %300 = vector.load %arg14[%299, %c128_93] : memref<16x256xf32, #tpu.memory_space<vmem>>, vector<2x128xf32>
    %cst_94 = arith.constant dense<0.000000e+00> : vector<2x128xf32>
    %301 = tpu.matmul %258, %14, %cst_94 {dimension_numbers = #tpu.dot_dimension_numbers<[1], [0], [0], [1], [0, 0, 1, 1], [], []>} : vector<2x32xf32>, vector<32x128xf32>, vector<2x128xf32> -> vector<2x128xf32>
    %302 = arith.addf %297, %301 : vector<2x128xf32>
    %303 = vector.extract_strided_slice %302 {offsets = [0, 0], sizes = [2, 32], strides = [1, 1]} : vector<2x128xf32> to vector<2x32xf32>
    %304 = arith.negf %303 : vector<2x32xf32>
    %305 = math.exp %304 : vector<2x32xf32>
    %cst_95 = arith.constant 1.000000e+00 : f32
    %306 = vector.broadcast %cst_95 : f32 to vector<2x32xf32>
    %307 = arith.addf %306, %305 : vector<2x32xf32>
    %308 = arith.divf %306, %307 : vector<2x32xf32>
    %309 = vector.extract_strided_slice %302 {offsets = [0, 32], sizes = [2, 32], strides = [1, 1]} : vector<2x128xf32> to vector<2x32xf32>
    %310 = arith.negf %309 : vector<2x32xf32>
    %311 = math.exp %310 : vector<2x32xf32>
    %cst_96 = arith.constant 1.000000e+00 : f32
    %312 = vector.broadcast %cst_96 : f32 to vector<2x32xf32>
    %313 = arith.addf %312, %311 : vector<2x32xf32>
    %314 = arith.divf %312, %313 : vector<2x32xf32>
    %315 = vector.extract_strided_slice %302 {offsets = [0, 64], sizes = [2, 32], strides = [1, 1]} : vector<2x128xf32> to vector<2x32xf32>
    %316 = math.tanh %315 : vector<2x32xf32>
    %317 = vector.extract_strided_slice %302 {offsets = [0, 96], sizes = [2, 32], strides = [1, 1]} : vector<2x128xf32> to vector<2x32xf32>
    %318 = arith.negf %317 : vector<2x32xf32>
    %319 = math.exp %318 : vector<2x32xf32>
    %cst_97 = arith.constant 1.000000e+00 : f32
    %320 = vector.broadcast %cst_97 : f32 to vector<2x32xf32>
    %321 = arith.addf %320, %319 : vector<2x32xf32>
    %322 = arith.divf %320, %321 : vector<2x32xf32>
    %323 = arith.mulf %314, %256 : vector<2x32xf32>
    %324 = arith.mulf %308, %316 : vector<2x32xf32>
    %325 = arith.addf %323, %324 : vector<2x32xf32>
    %326 = math.tanh %325 : vector<2x32xf32>
    %327 = arith.mulf %322, %326 : vector<2x32xf32>
    %cst_98 = arith.constant dense<0.000000e+00> : vector<2x128xf32>
    %328 = tpu.matmul %285, %15, %cst_98 {dimension_numbers = #tpu.dot_dimension_numbers<[1], [0], [0], [1], [0, 0, 1, 1], [], []>} : vector<2x32xf32>, vector<32x128xf32>, vector<2x128xf32> -> vector<2x128xf32>
    %329 = arith.addf %300, %328 : vector<2x128xf32>
    %330 = vector.extract_strided_slice %329 {offsets = [0, 0], sizes = [2, 32], strides = [1, 1]} : vector<2x128xf32> to vector<2x32xf32>
    %331 = arith.negf %330 : vector<2x32xf32>
    %332 = math.exp %331 : vector<2x32xf32>
    %cst_99 = arith.constant 1.000000e+00 : f32
    %333 = vector.broadcast %cst_99 : f32 to vector<2x32xf32>
    %334 = arith.addf %333, %332 : vector<2x32xf32>
    %335 = arith.divf %333, %334 : vector<2x32xf32>
    %336 = vector.extract_strided_slice %329 {offsets = [0, 32], sizes = [2, 32], strides = [1, 1]} : vector<2x128xf32> to vector<2x32xf32>
    %337 = arith.negf %336 : vector<2x32xf32>
    %338 = math.exp %337 : vector<2x32xf32>
    %cst_100 = arith.constant 1.000000e+00 : f32
    %339 = vector.broadcast %cst_100 : f32 to vector<2x32xf32>
    %340 = arith.addf %339, %338 : vector<2x32xf32>
    %341 = arith.divf %339, %340 : vector<2x32xf32>
    %342 = vector.extract_strided_slice %329 {offsets = [0, 64], sizes = [2, 32], strides = [1, 1]} : vector<2x128xf32> to vector<2x32xf32>
    %343 = math.tanh %342 : vector<2x32xf32>
    %344 = vector.extract_strided_slice %329 {offsets = [0, 96], sizes = [2, 32], strides = [1, 1]} : vector<2x128xf32> to vector<2x32xf32>
    %345 = arith.negf %344 : vector<2x32xf32>
    %346 = math.exp %345 : vector<2x32xf32>
    %cst_101 = arith.constant 1.000000e+00 : f32
    %347 = vector.broadcast %cst_101 : f32 to vector<2x32xf32>
    %348 = arith.addf %347, %346 : vector<2x32xf32>
    %349 = arith.divf %347, %348 : vector<2x32xf32>
    %350 = arith.mulf %341, %283 : vector<2x32xf32>
    %351 = arith.mulf %335, %343 : vector<2x32xf32>
    %352 = arith.addf %350, %351 : vector<2x32xf32>
    %353 = math.tanh %352 : vector<2x32xf32>
    %354 = arith.mulf %349, %353 : vector<2x32xf32>
    %355 = arith.index_cast %c4_i32 : i32 to index
    %c0_102 = arith.constant 0 : index
    %c0_103 = arith.constant 0 : index
    %356 = vector.load %arg16[%355, %c0_102, %c0_103] : memref<8x2x32xf32, #tpu.memory_space<vmem>>, vector<1x2x32xf32>
    %357 = vector.shape_cast %356 : vector<1x2x32xf32> to vector<2x32xf32>
    %358 = vector.shape_cast %327 : vector<2x32xf32> to vector<1x2x32xf32>
    tpu.vector_store %arg16[%355, %c0_102, %c0_103], %358 {strides = array<i32>} : memref<8x2x32xf32, #tpu.memory_space<vmem>>, vector<1x2x32xf32>,
    %359 = arith.index_cast %294 : i32 to index
    %c0_104 = arith.constant 0 : index
    %c0_105 = arith.constant 0 : index
    %360 = vector.load %arg17[%359, %c0_104, %c0_105] : memref<8x2x32xf32, #tpu.memory_space<vmem>>, vector<1x2x32xf32>
    %361 = vector.shape_cast %360 : vector<1x2x32xf32> to vector<2x32xf32>
    %362 = vector.shape_cast %354 : vector<2x32xf32> to vector<1x2x32xf32>
    tpu.vector_store %arg17[%359, %c0_104, %c0_105], %362 {strides = array<i32>} : memref<8x2x32xf32, #tpu.memory_space<vmem>>, vector<1x2x32xf32>,
    %c5_i32 = arith.constant 5 : i32
    %c7_i32_106 = arith.constant 7 : i32
    %363 = arith.subi %c7_i32_106, %c5_i32 : i32
    %c2_i32_107 = arith.constant 2 : i32
    %364 = arith.muli %c5_i32, %c2_i32_107 : i32
    %365 = arith.index_cast %364 : i32 to index
    %c0_108 = arith.constant 0 : index
    %366 = vector.load %arg14[%365, %c0_108] : memref<16x256xf32, #tpu.memory_space<vmem>>, vector<2x128xf32>
    %c2_i32_109 = arith.constant 2 : i32
    %367 = arith.muli %363, %c2_i32_109 : i32
    %368 = arith.index_cast %367 : i32 to index
    %c128_110 = arith.constant 128 : index
    %369 = vector.load %arg14[%368, %c128_110] : memref<16x256xf32, #tpu.memory_space<vmem>>, vector<2x128xf32>
    %cst_111 = arith.constant dense<0.000000e+00> : vector<2x128xf32>
    %370 = tpu.matmul %327, %14, %cst_111 {dimension_numbers = #tpu.dot_dimension_numbers<[1], [0], [0], [1], [0, 0, 1, 1], [], []>} : vector<2x32xf32>, vector<32x128xf32>, vector<2x128xf32> -> vector<2x128xf32>
    %371 = arith.addf %366, %370 : vector<2x128xf32>
    %372 = vector.extract_strided_slice %371 {offsets = [0, 0], sizes = [2, 32], strides = [1, 1]} : vector<2x128xf32> to vector<2x32xf32>
    %373 = arith.negf %372 : vector<2x32xf32>
    %374 = math.exp %373 : vector<2x32xf32>
    %cst_112 = arith.constant 1.000000e+00 : f32
    %375 = vector.broadcast %cst_112 : f32 to vector<2x32xf32>
    %376 = arith.addf %375, %374 : vector<2x32xf32>
    %377 = arith.divf %375, %376 : vector<2x32xf32>
    %378 = vector.extract_strided_slice %371 {offsets = [0, 32], sizes = [2, 32], strides = [1, 1]} : vector<2x128xf32> to vector<2x32xf32>
    %379 = arith.negf %378 : vector<2x32xf32>
    %380 = math.exp %379 : vector<2x32xf32>
    %cst_113 = arith.constant 1.000000e+00 : f32
    %381 = vector.broadcast %cst_113 : f32 to vector<2x32xf32>
    %382 = arith.addf %381, %380 : vector<2x32xf32>
    %383 = arith.divf %381, %382 : vector<2x32xf32>
    %384 = vector.extract_strided_slice %371 {offsets = [0, 64], sizes = [2, 32], strides = [1, 1]} : vector<2x128xf32> to vector<2x32xf32>
    %385 = math.tanh %384 : vector<2x32xf32>
    %386 = vector.extract_strided_slice %371 {offsets = [0, 96], sizes = [2, 32], strides = [1, 1]} : vector<2x128xf32> to vector<2x32xf32>
    %387 = arith.negf %386 : vector<2x32xf32>
    %388 = math.exp %387 : vector<2x32xf32>
    %cst_114 = arith.constant 1.000000e+00 : f32
    %389 = vector.broadcast %cst_114 : f32 to vector<2x32xf32>
    %390 = arith.addf %389, %388 : vector<2x32xf32>
    %391 = arith.divf %389, %390 : vector<2x32xf32>
    %392 = arith.mulf %383, %325 : vector<2x32xf32>
    %393 = arith.mulf %377, %385 : vector<2x32xf32>
    %394 = arith.addf %392, %393 : vector<2x32xf32>
    %395 = math.tanh %394 : vector<2x32xf32>
    %396 = arith.mulf %391, %395 : vector<2x32xf32>
    %cst_115 = arith.constant dense<0.000000e+00> : vector<2x128xf32>
    %397 = tpu.matmul %354, %15, %cst_115 {dimension_numbers = #tpu.dot_dimension_numbers<[1], [0], [0], [1], [0, 0, 1, 1], [], []>} : vector<2x32xf32>, vector<32x128xf32>, vector<2x128xf32> -> vector<2x128xf32>
    %398 = arith.addf %369, %397 : vector<2x128xf32>
    %399 = vector.extract_strided_slice %398 {offsets = [0, 0], sizes = [2, 32], strides = [1, 1]} : vector<2x128xf32> to vector<2x32xf32>
    %400 = arith.negf %399 : vector<2x32xf32>
    %401 = math.exp %400 : vector<2x32xf32>
    %cst_116 = arith.constant 1.000000e+00 : f32
    %402 = vector.broadcast %cst_116 : f32 to vector<2x32xf32>
    %403 = arith.addf %402, %401 : vector<2x32xf32>
    %404 = arith.divf %402, %403 : vector<2x32xf32>
    %405 = vector.extract_strided_slice %398 {offsets = [0, 32], sizes = [2, 32], strides = [1, 1]} : vector<2x128xf32> to vector<2x32xf32>
    %406 = arith.negf %405 : vector<2x32xf32>
    %407 = math.exp %406 : vector<2x32xf32>
    %cst_117 = arith.constant 1.000000e+00 : f32
    %408 = vector.broadcast %cst_117 : f32 to vector<2x32xf32>
    %409 = arith.addf %408, %407 : vector<2x32xf32>
    %410 = arith.divf %408, %409 : vector<2x32xf32>
    %411 = vector.extract_strided_slice %398 {offsets = [0, 64], sizes = [2, 32], strides = [1, 1]} : vector<2x128xf32> to vector<2x32xf32>
    %412 = math.tanh %411 : vector<2x32xf32>
    %413 = vector.extract_strided_slice %398 {offsets = [0, 96], sizes = [2, 32], strides = [1, 1]} : vector<2x128xf32> to vector<2x32xf32>
    %414 = arith.negf %413 : vector<2x32xf32>
    %415 = math.exp %414 : vector<2x32xf32>
    %cst_118 = arith.constant 1.000000e+00 : f32
    %416 = vector.broadcast %cst_118 : f32 to vector<2x32xf32>
    %417 = arith.addf %416, %415 : vector<2x32xf32>
    %418 = arith.divf %416, %417 : vector<2x32xf32>
    %419 = arith.mulf %410, %352 : vector<2x32xf32>
    %420 = arith.mulf %404, %412 : vector<2x32xf32>
    %421 = arith.addf %419, %420 : vector<2x32xf32>
    %422 = math.tanh %421 : vector<2x32xf32>
    %423 = arith.mulf %418, %422 : vector<2x32xf32>
    %424 = arith.index_cast %c5_i32 : i32 to index
    %c0_119 = arith.constant 0 : index
    %c0_120 = arith.constant 0 : index
    %425 = vector.load %arg16[%424, %c0_119, %c0_120] : memref<8x2x32xf32, #tpu.memory_space<vmem>>, vector<1x2x32xf32>
    %426 = vector.shape_cast %425 : vector<1x2x32xf32> to vector<2x32xf32>
    %427 = vector.shape_cast %396 : vector<2x32xf32> to vector<1x2x32xf32>
    tpu.vector_store %arg16[%424, %c0_119, %c0_120], %427 {strides = array<i32>} : memref<8x2x32xf32, #tpu.memory_space<vmem>>, vector<1x2x32xf32>,
    %428 = arith.index_cast %363 : i32 to index
    %c0_121 = arith.constant 0 : index
    %c0_122 = arith.constant 0 : index
    %429 = vector.load %arg17[%428, %c0_121, %c0_122] : memref<8x2x32xf32, #tpu.memory_space<vmem>>, vector<1x2x32xf32>
    %430 = vector.shape_cast %429 : vector<1x2x32xf32> to vector<2x32xf32>
    %431 = vector.shape_cast %423 : vector<2x32xf32> to vector<1x2x32xf32>
    tpu.vector_store %arg17[%428, %c0_121, %c0_122], %431 {strides = array<i32>} : memref<8x2x32xf32, #tpu.memory_space<vmem>>, vector<1x2x32xf32>,
    %c6_i32 = arith.constant 6 : i32
    %c7_i32_123 = arith.constant 7 : i32
    %432 = arith.subi %c7_i32_123, %c6_i32 : i32
    %c2_i32_124 = arith.constant 2 : i32
    %433 = arith.muli %c6_i32, %c2_i32_124 : i32
    %434 = arith.index_cast %433 : i32 to index
    %c0_125 = arith.constant 0 : index
    %435 = vector.load %arg14[%434, %c0_125] : memref<16x256xf32, #tpu.memory_space<vmem>>, vector<2x128xf32>
    %c2_i32_126 = arith.constant 2 : i32
    %436 = arith.muli %432, %c2_i32_126 : i32
    %437 = arith.index_cast %436 : i32 to index
    %c128_127 = arith.constant 128 : index
    %438 = vector.load %arg14[%437, %c128_127] : memref<16x256xf32, #tpu.memory_space<vmem>>, vector<2x128xf32>
    %cst_128 = arith.constant dense<0.000000e+00> : vector<2x128xf32>
    %439 = tpu.matmul %396, %14, %cst_128 {dimension_numbers = #tpu.dot_dimension_numbers<[1], [0], [0], [1], [0, 0, 1, 1], [], []>} : vector<2x32xf32>, vector<32x128xf32>, vector<2x128xf32> -> vector<2x128xf32>
    %440 = arith.addf %435, %439 : vector<2x128xf32>
    %441 = vector.extract_strided_slice %440 {offsets = [0, 0], sizes = [2, 32], strides = [1, 1]} : vector<2x128xf32> to vector<2x32xf32>
    %442 = arith.negf %441 : vector<2x32xf32>
    %443 = math.exp %442 : vector<2x32xf32>
    %cst_129 = arith.constant 1.000000e+00 : f32
    %444 = vector.broadcast %cst_129 : f32 to vector<2x32xf32>
    %445 = arith.addf %444, %443 : vector<2x32xf32>
    %446 = arith.divf %444, %445 : vector<2x32xf32>
    %447 = vector.extract_strided_slice %440 {offsets = [0, 32], sizes = [2, 32], strides = [1, 1]} : vector<2x128xf32> to vector<2x32xf32>
    %448 = arith.negf %447 : vector<2x32xf32>
    %449 = math.exp %448 : vector<2x32xf32>
    %cst_130 = arith.constant 1.000000e+00 : f32
    %450 = vector.broadcast %cst_130 : f32 to vector<2x32xf32>
    %451 = arith.addf %450, %449 : vector<2x32xf32>
    %452 = arith.divf %450, %451 : vector<2x32xf32>
    %453 = vector.extract_strided_slice %440 {offsets = [0, 64], sizes = [2, 32], strides = [1, 1]} : vector<2x128xf32> to vector<2x32xf32>
    %454 = math.tanh %453 : vector<2x32xf32>
    %455 = vector.extract_strided_slice %440 {offsets = [0, 96], sizes = [2, 32], strides = [1, 1]} : vector<2x128xf32> to vector<2x32xf32>
    %456 = arith.negf %455 : vector<2x32xf32>
    %457 = math.exp %456 : vector<2x32xf32>
    %cst_131 = arith.constant 1.000000e+00 : f32
    %458 = vector.broadcast %cst_131 : f32 to vector<2x32xf32>
    %459 = arith.addf %458, %457 : vector<2x32xf32>
    %460 = arith.divf %458, %459 : vector<2x32xf32>
    %461 = arith.mulf %452, %394 : vector<2x32xf32>
    %462 = arith.mulf %446, %454 : vector<2x32xf32>
    %463 = arith.addf %461, %462 : vector<2x32xf32>
    %464 = math.tanh %463 : vector<2x32xf32>
    %465 = arith.mulf %460, %464 : vector<2x32xf32>
    %cst_132 = arith.constant dense<0.000000e+00> : vector<2x128xf32>
    %466 = tpu.matmul %423, %15, %cst_132 {dimension_numbers = #tpu.dot_dimension_numbers<[1], [0], [0], [1], [0, 0, 1, 1], [], []>} : vector<2x32xf32>, vector<32x128xf32>, vector<2x128xf32> -> vector<2x128xf32>
    %467 = arith.addf %438, %466 : vector<2x128xf32>
    %468 = vector.extract_strided_slice %467 {offsets = [0, 0], sizes = [2, 32], strides = [1, 1]} : vector<2x128xf32> to vector<2x32xf32>
    %469 = arith.negf %468 : vector<2x32xf32>
    %470 = math.exp %469 : vector<2x32xf32>
    %cst_133 = arith.constant 1.000000e+00 : f32
    %471 = vector.broadcast %cst_133 : f32 to vector<2x32xf32>
    %472 = arith.addf %471, %470 : vector<2x32xf32>
    %473 = arith.divf %471, %472 : vector<2x32xf32>
    %474 = vector.extract_strided_slice %467 {offsets = [0, 32], sizes = [2, 32], strides = [1, 1]} : vector<2x128xf32> to vector<2x32xf32>
    %475 = arith.negf %474 : vector<2x32xf32>
    %476 = math.exp %475 : vector<2x32xf32>
    %cst_134 = arith.constant 1.000000e+00 : f32
    %477 = vector.broadcast %cst_134 : f32 to vector<2x32xf32>
    %478 = arith.addf %477, %476 : vector<2x32xf32>
    %479 = arith.divf %477, %478 : vector<2x32xf32>
    %480 = vector.extract_strided_slice %467 {offsets = [0, 64], sizes = [2, 32], strides = [1, 1]} : vector<2x128xf32> to vector<2x32xf32>
    %481 = math.tanh %480 : vector<2x32xf32>
    %482 = vector.extract_strided_slice %467 {offsets = [0, 96], sizes = [2, 32], strides = [1, 1]} : vector<2x128xf32> to vector<2x32xf32>
    %483 = arith.negf %482 : vector<2x32xf32>
    %484 = math.exp %483 : vector<2x32xf32>
    %cst_135 = arith.constant 1.000000e+00 : f32
    %485 = vector.broadcast %cst_135 : f32 to vector<2x32xf32>
    %486 = arith.addf %485, %484 : vector<2x32xf32>
    %487 = arith.divf %485, %486 : vector<2x32xf32>
    %488 = arith.mulf %479, %421 : vector<2x32xf32>
    %489 = arith.mulf %473, %481 : vector<2x32xf32>
    %490 = arith.addf %488, %489 : vector<2x32xf32>
    %491 = math.tanh %490 : vector<2x32xf32>
    %492 = arith.mulf %487, %491 : vector<2x32xf32>
    %493 = arith.index_cast %c6_i32 : i32 to index
    %c0_136 = arith.constant 0 : index
    %c0_137 = arith.constant 0 : index
    %494 = vector.load %arg16[%493, %c0_136, %c0_137] : memref<8x2x32xf32, #tpu.memory_space<vmem>>, vector<1x2x32xf32>
    %495 = vector.shape_cast %494 : vector<1x2x32xf32> to vector<2x32xf32>
    %496 = vector.shape_cast %465 : vector<2x32xf32> to vector<1x2x32xf32>
    tpu.vector_store %arg16[%493, %c0_136, %c0_137], %496 {strides = array<i32>} : memref<8x2x32xf32, #tpu.memory_space<vmem>>, vector<1x2x32xf32>,
    %497 = arith.index_cast %432 : i32 to index
    %c0_138 = arith.constant 0 : index
    %c0_139 = arith.constant 0 : index
    %498 = vector.load %arg17[%497, %c0_138, %c0_139] : memref<8x2x32xf32, #tpu.memory_space<vmem>>, vector<1x2x32xf32>
    %499 = vector.shape_cast %498 : vector<1x2x32xf32> to vector<2x32xf32>
    %500 = vector.shape_cast %492 : vector<2x32xf32> to vector<1x2x32xf32>
    tpu.vector_store %arg17[%497, %c0_138, %c0_139], %500 {strides = array<i32>} : memref<8x2x32xf32, #tpu.memory_space<vmem>>, vector<1x2x32xf32>,
    %c7_i32_140 = arith.constant 7 : i32
    %c7_i32_141 = arith.constant 7 : i32
    %501 = arith.subi %c7_i32_141, %c7_i32_140 : i32
    %c2_i32_142 = arith.constant 2 : i32
    %502 = arith.muli %c7_i32_140, %c2_i32_142 : i32
    %503 = arith.index_cast %502 : i32 to index
    %c0_143 = arith.constant 0 : index
    %504 = vector.load %arg14[%503, %c0_143] : memref<16x256xf32, #tpu.memory_space<vmem>>, vector<2x128xf32>
    %c2_i32_144 = arith.constant 2 : i32
    %505 = arith.muli %501, %c2_i32_144 : i32
    %506 = arith.index_cast %505 : i32 to index
    %c128_145 = arith.constant 128 : index
    %507 = vector.load %arg14[%506, %c128_145] : memref<16x256xf32, #tpu.memory_space<vmem>>, vector<2x128xf32>
    %cst_146 = arith.constant dense<0.000000e+00> : vector<2x128xf32>
    %508 = tpu.matmul %465, %14, %cst_146 {dimension_numbers = #tpu.dot_dimension_numbers<[1], [0], [0], [1], [0, 0, 1, 1], [], []>} : vector<2x32xf32>, vector<32x128xf32>, vector<2x128xf32> -> vector<2x128xf32>
    %509 = arith.addf %504, %508 : vector<2x128xf32>
    %510 = vector.extract_strided_slice %509 {offsets = [0, 0], sizes = [2, 32], strides = [1, 1]} : vector<2x128xf32> to vector<2x32xf32>
    %511 = arith.negf %510 : vector<2x32xf32>
    %512 = math.exp %511 : vector<2x32xf32>
    %cst_147 = arith.constant 1.000000e+00 : f32
    %513 = vector.broadcast %cst_147 : f32 to vector<2x32xf32>
    %514 = arith.addf %513, %512 : vector<2x32xf32>
    %515 = arith.divf %513, %514 : vector<2x32xf32>
    %516 = vector.extract_strided_slice %509 {offsets = [0, 32], sizes = [2, 32], strides = [1, 1]} : vector<2x128xf32> to vector<2x32xf32>
    %517 = arith.negf %516 : vector<2x32xf32>
    %518 = math.exp %517 : vector<2x32xf32>
    %cst_148 = arith.constant 1.000000e+00 : f32
    %519 = vector.broadcast %cst_148 : f32 to vector<2x32xf32>
    %520 = arith.addf %519, %518 : vector<2x32xf32>
    %521 = arith.divf %519, %520 : vector<2x32xf32>
    %522 = vector.extract_strided_slice %509 {offsets = [0, 64], sizes = [2, 32], strides = [1, 1]} : vector<2x128xf32> to vector<2x32xf32>
    %523 = math.tanh %522 : vector<2x32xf32>
    %524 = vector.extract_strided_slice %509 {offsets = [0, 96], sizes = [2, 32], strides = [1, 1]} : vector<2x128xf32> to vector<2x32xf32>
    %525 = arith.negf %524 : vector<2x32xf32>
    %526 = math.exp %525 : vector<2x32xf32>
    %cst_149 = arith.constant 1.000000e+00 : f32
    %527 = vector.broadcast %cst_149 : f32 to vector<2x32xf32>
    %528 = arith.addf %527, %526 : vector<2x32xf32>
    %529 = arith.divf %527, %528 : vector<2x32xf32>
    %530 = arith.mulf %521, %463 : vector<2x32xf32>
    %531 = arith.mulf %515, %523 : vector<2x32xf32>
    %532 = arith.addf %530, %531 : vector<2x32xf32>
    %533 = math.tanh %532 : vector<2x32xf32>
    %534 = arith.mulf %529, %533 : vector<2x32xf32>
    %cst_150 = arith.constant dense<0.000000e+00> : vector<2x128xf32>
    %535 = tpu.matmul %492, %15, %cst_150 {dimension_numbers = #tpu.dot_dimension_numbers<[1], [0], [0], [1], [0, 0, 1, 1], [], []>} : vector<2x32xf32>, vector<32x128xf32>, vector<2x128xf32> -> vector<2x128xf32>
    %536 = arith.addf %507, %535 : vector<2x128xf32>
    %537 = vector.extract_strided_slice %536 {offsets = [0, 0], sizes = [2, 32], strides = [1, 1]} : vector<2x128xf32> to vector<2x32xf32>
    %538 = arith.negf %537 : vector<2x32xf32>
    %539 = math.exp %538 : vector<2x32xf32>
    %cst_151 = arith.constant 1.000000e+00 : f32
    %540 = vector.broadcast %cst_151 : f32 to vector<2x32xf32>
    %541 = arith.addf %540, %539 : vector<2x32xf32>
    %542 = arith.divf %540, %541 : vector<2x32xf32>
    %543 = vector.extract_strided_slice %536 {offsets = [0, 32], sizes = [2, 32], strides = [1, 1]} : vector<2x128xf32> to vector<2x32xf32>
    %544 = arith.negf %543 : vector<2x32xf32>
    %545 = math.exp %544 : vector<2x32xf32>
    %cst_152 = arith.constant 1.000000e+00 : f32
    %546 = vector.broadcast %cst_152 : f32 to vector<2x32xf32>
    %547 = arith.addf %546, %545 : vector<2x32xf32>
    %548 = arith.divf %546, %547 : vector<2x32xf32>
    %549 = vector.extract_strided_slice %536 {offsets = [0, 64], sizes = [2, 32], strides = [1, 1]} : vector<2x128xf32> to vector<2x32xf32>
    %550 = math.tanh %549 : vector<2x32xf32>
    %551 = vector.extract_strided_slice %536 {offsets = [0, 96], sizes = [2, 32], strides = [1, 1]} : vector<2x128xf32> to vector<2x32xf32>
    %552 = arith.negf %551 : vector<2x32xf32>
    %553 = math.exp %552 : vector<2x32xf32>
    %cst_153 = arith.constant 1.000000e+00 : f32
    %554 = vector.broadcast %cst_153 : f32 to vector<2x32xf32>
    %555 = arith.addf %554, %553 : vector<2x32xf32>
    %556 = arith.divf %554, %555 : vector<2x32xf32>
    %557 = arith.mulf %548, %490 : vector<2x32xf32>
    %558 = arith.mulf %542, %550 : vector<2x32xf32>
    %559 = arith.addf %557, %558 : vector<2x32xf32>
    %560 = math.tanh %559 : vector<2x32xf32>
    %561 = arith.mulf %556, %560 : vector<2x32xf32>
    %562 = arith.index_cast %c7_i32_140 : i32 to index
    %c0_154 = arith.constant 0 : index
    %c0_155 = arith.constant 0 : index
    %563 = vector.load %arg16[%562, %c0_154, %c0_155] : memref<8x2x32xf32, #tpu.memory_space<vmem>>, vector<1x2x32xf32>
    %564 = vector.shape_cast %563 : vector<1x2x32xf32> to vector<2x32xf32>
    %565 = vector.shape_cast %534 : vector<2x32xf32> to vector<1x2x32xf32>
    tpu.vector_store %arg16[%562, %c0_154, %c0_155], %565 {strides = array<i32>} : memref<8x2x32xf32, #tpu.memory_space<vmem>>, vector<1x2x32xf32>,
    %566 = arith.index_cast %501 : i32 to index
    %c0_156 = arith.constant 0 : index
    %c0_157 = arith.constant 0 : index
    %567 = vector.load %arg17[%566, %c0_156, %c0_157] : memref<8x2x32xf32, #tpu.memory_space<vmem>>, vector<1x2x32xf32>
    %568 = vector.shape_cast %567 : vector<1x2x32xf32> to vector<2x32xf32>
    %569 = vector.shape_cast %561 : vector<2x32xf32> to vector<1x2x32xf32>
    tpu.vector_store %arg17[%566, %c0_156, %c0_157], %569 {strides = array<i32>} : memref<8x2x32xf32, #tpu.memory_space<vmem>>, vector<1x2x32xf32>,
    %c8_i32 = arith.constant 8 : i32
    %570 = tpu.concatenate %534, %561 in 1 : vector<2x32xf32>, vector<2x32xf32> -> vector<2x64xf32>
    %571 = tpu.concatenate %532, %559 in 1 : vector<2x32xf32>, vector<2x32xf32> -> vector<2x64xf32>
    %c0_i32_158 = arith.constant 0 : i32
    %c2_i32_159 = arith.constant 2 : i32
    %572 = arith.muli %c0_i32_158, %c2_i32_159 : i32
    %573 = arith.index_cast %572 : i32 to index
    %c0_160 = arith.constant 0 : index
    %574 = vector.load %arg15[%573, %c0_160] : memref<16x256xf32, #tpu.memory_space<vmem>>, vector<2x256xf32>
    %cst_161 = arith.constant dense<0.000000e+00> : vector<2x256xf32>
    %575 = tpu.matmul %570, %16, %cst_161 {dimension_numbers = #tpu.dot_dimension_numbers<[1], [0], [0], [1], [0, 0, 1, 1], [], []>} : vector<2x64xf32>, vector<64x256xf32>, vector<2x256xf32> -> vector<2x256xf32>
    %576 = arith.addf %574, %575 : vector<2x256xf32>
    %577 = vector.extract_strided_slice %576 {offsets = [0, 0], sizes = [2, 64], strides = [1, 1]} : vector<2x256xf32> to vector<2x64xf32>
    %578 = arith.negf %577 : vector<2x64xf32>
    %579 = math.exp %578 : vector<2x64xf32>
    %cst_162 = arith.constant 1.000000e+00 : f32
    %580 = vector.broadcast %cst_162 : f32 to vector<2x64xf32>
    %581 = arith.addf %580, %579 : vector<2x64xf32>
    %582 = arith.divf %580, %581 : vector<2x64xf32>
    %583 = vector.extract_strided_slice %576 {offsets = [0, 64], sizes = [2, 64], strides = [1, 1]} : vector<2x256xf32> to vector<2x64xf32>
    %584 = arith.negf %583 : vector<2x64xf32>
    %585 = math.exp %584 : vector<2x64xf32>
    %cst_163 = arith.constant 1.000000e+00 : f32
    %586 = vector.broadcast %cst_163 : f32 to vector<2x64xf32>
    %587 = arith.addf %586, %585 : vector<2x64xf32>
    %588 = arith.divf %586, %587 : vector<2x64xf32>
    %589 = vector.extract_strided_slice %576 {offsets = [0, 128], sizes = [2, 64], strides = [1, 1]} : vector<2x256xf32> to vector<2x64xf32>
    %590 = math.tanh %589 : vector<2x64xf32>
    %591 = vector.extract_strided_slice %576 {offsets = [0, 192], sizes = [2, 64], strides = [1, 1]} : vector<2x256xf32> to vector<2x64xf32>
    %592 = arith.negf %591 : vector<2x64xf32>
    %593 = math.exp %592 : vector<2x64xf32>
    %cst_164 = arith.constant 1.000000e+00 : f32
    %594 = vector.broadcast %cst_164 : f32 to vector<2x64xf32>
    %595 = arith.addf %594, %593 : vector<2x64xf32>
    %596 = arith.divf %594, %595 : vector<2x64xf32>
    %597 = arith.mulf %588, %571 : vector<2x64xf32>
    %598 = arith.mulf %582, %590 : vector<2x64xf32>
    %599 = arith.addf %597, %598 : vector<2x64xf32>
    %600 = math.tanh %599 : vector<2x64xf32>
    %601 = arith.mulf %596, %600 : vector<2x64xf32>
    %602 = arith.index_cast %c0_i32_158 : i32 to index
    %c0_165 = arith.constant 0 : index
    %c0_166 = arith.constant 0 : index
    %603 = vector.load %arg18[%602, %c0_165, %c0_166] : memref<8x2x64xf32, #tpu.memory_space<vmem>>, vector<1x2x64xf32>
    %604 = vector.shape_cast %603 : vector<1x2x64xf32> to vector<2x64xf32>
    %605 = vector.shape_cast %601 : vector<2x64xf32> to vector<1x2x64xf32>
    tpu.vector_store %arg18[%602, %c0_165, %c0_166], %605 {strides = array<i32>} : memref<8x2x64xf32, #tpu.memory_space<vmem>>, vector<1x2x64xf32>,
    %c1_i32_167 = arith.constant 1 : i32
    %c2_i32_168 = arith.constant 2 : i32
    %606 = arith.muli %c1_i32_167, %c2_i32_168 : i32
    %607 = arith.index_cast %606 : i32 to index
    %c0_169 = arith.constant 0 : index
    %608 = vector.load %arg15[%607, %c0_169] : memref<16x256xf32, #tpu.memory_space<vmem>>, vector<2x256xf32>
    %cst_170 = arith.constant dense<0.000000e+00> : vector<2x256xf32>
    %609 = tpu.matmul %601, %16, %cst_170 {dimension_numbers = #tpu.dot_dimension_numbers<[1], [0], [0], [1], [0, 0, 1, 1], [], []>} : vector<2x64xf32>, vector<64x256xf32>, vector<2x256xf32> -> vector<2x256xf32>
    %610 = arith.addf %608, %609 : vector<2x256xf32>
    %611 = vector.extract_strided_slice %610 {offsets = [0, 0], sizes = [2, 64], strides = [1, 1]} : vector<2x256xf32> to vector<2x64xf32>
    %612 = arith.negf %611 : vector<2x64xf32>
    %613 = math.exp %612 : vector<2x64xf32>
    %cst_171 = arith.constant 1.000000e+00 : f32
    %614 = vector.broadcast %cst_171 : f32 to vector<2x64xf32>
    %615 = arith.addf %614, %613 : vector<2x64xf32>
    %616 = arith.divf %614, %615 : vector<2x64xf32>
    %617 = vector.extract_strided_slice %610 {offsets = [0, 64], sizes = [2, 64], strides = [1, 1]} : vector<2x256xf32> to vector<2x64xf32>
    %618 = arith.negf %617 : vector<2x64xf32>
    %619 = math.exp %618 : vector<2x64xf32>
    %cst_172 = arith.constant 1.000000e+00 : f32
    %620 = vector.broadcast %cst_172 : f32 to vector<2x64xf32>
    %621 = arith.addf %620, %619 : vector<2x64xf32>
    %622 = arith.divf %620, %621 : vector<2x64xf32>
    %623 = vector.extract_strided_slice %610 {offsets = [0, 128], sizes = [2, 64], strides = [1, 1]} : vector<2x256xf32> to vector<2x64xf32>
    %624 = math.tanh %623 : vector<2x64xf32>
    %625 = vector.extract_strided_slice %610 {offsets = [0, 192], sizes = [2, 64], strides = [1, 1]} : vector<2x256xf32> to vector<2x64xf32>
    %626 = arith.negf %625 : vector<2x64xf32>
    %627 = math.exp %626 : vector<2x64xf32>
    %cst_173 = arith.constant 1.000000e+00 : f32
    %628 = vector.broadcast %cst_173 : f32 to vector<2x64xf32>
    %629 = arith.addf %628, %627 : vector<2x64xf32>
    %630 = arith.divf %628, %629 : vector<2x64xf32>
    %631 = arith.mulf %622, %599 : vector<2x64xf32>
    %632 = arith.mulf %616, %624 : vector<2x64xf32>
    %633 = arith.addf %631, %632 : vector<2x64xf32>
    %634 = math.tanh %633 : vector<2x64xf32>
    %635 = arith.mulf %630, %634 : vector<2x64xf32>
    %636 = arith.index_cast %c1_i32_167 : i32 to index
    %c0_174 = arith.constant 0 : index
    %c0_175 = arith.constant 0 : index
    %637 = vector.load %arg18[%636, %c0_174, %c0_175] : memref<8x2x64xf32, #tpu.memory_space<vmem>>, vector<1x2x64xf32>
    %638 = vector.shape_cast %637 : vector<1x2x64xf32> to vector<2x64xf32>
    %639 = vector.shape_cast %635 : vector<2x64xf32> to vector<1x2x64xf32>
    tpu.vector_store %arg18[%636, %c0_174, %c0_175], %639 {strides = array<i32>} : memref<8x2x64xf32, #tpu.memory_space<vmem>>, vector<1x2x64xf32>,
    %c2_i32_176 = arith.constant 2 : i32
    %c2_i32_177 = arith.constant 2 : i32
    %640 = arith.muli %c2_i32_176, %c2_i32_177 : i32
    %641 = arith.index_cast %640 : i32 to index
    %c0_178 = arith.constant 0 : index
    %642 = vector.load %arg15[%641, %c0_178] : memref<16x256xf32, #tpu.memory_space<vmem>>, vector<2x256xf32>
    %cst_179 = arith.constant dense<0.000000e+00> : vector<2x256xf32>
    %643 = tpu.matmul %635, %16, %cst_179 {dimension_numbers = #tpu.dot_dimension_numbers<[1], [0], [0], [1], [0, 0, 1, 1], [], []>} : vector<2x64xf32>, vector<64x256xf32>, vector<2x256xf32> -> vector<2x256xf32>
    %644 = arith.addf %642, %643 : vector<2x256xf32>
    %645 = vector.extract_strided_slice %644 {offsets = [0, 0], sizes = [2, 64], strides = [1, 1]} : vector<2x256xf32> to vector<2x64xf32>
    %646 = arith.negf %645 : vector<2x64xf32>
    %647 = math.exp %646 : vector<2x64xf32>
    %cst_180 = arith.constant 1.000000e+00 : f32
    %648 = vector.broadcast %cst_180 : f32 to vector<2x64xf32>
    %649 = arith.addf %648, %647 : vector<2x64xf32>
    %650 = arith.divf %648, %649 : vector<2x64xf32>
    %651 = vector.extract_strided_slice %644 {offsets = [0, 64], sizes = [2, 64], strides = [1, 1]} : vector<2x256xf32> to vector<2x64xf32>
    %652 = arith.negf %651 : vector<2x64xf32>
    %653 = math.exp %652 : vector<2x64xf32>
    %cst_181 = arith.constant 1.000000e+00 : f32
    %654 = vector.broadcast %cst_181 : f32 to vector<2x64xf32>
    %655 = arith.addf %654, %653 : vector<2x64xf32>
    %656 = arith.divf %654, %655 : vector<2x64xf32>
    %657 = vector.extract_strided_slice %644 {offsets = [0, 128], sizes = [2, 64], strides = [1, 1]} : vector<2x256xf32> to vector<2x64xf32>
    %658 = math.tanh %657 : vector<2x64xf32>
    %659 = vector.extract_strided_slice %644 {offsets = [0, 192], sizes = [2, 64], strides = [1, 1]} : vector<2x256xf32> to vector<2x64xf32>
    %660 = arith.negf %659 : vector<2x64xf32>
    %661 = math.exp %660 : vector<2x64xf32>
    %cst_182 = arith.constant 1.000000e+00 : f32
    %662 = vector.broadcast %cst_182 : f32 to vector<2x64xf32>
    %663 = arith.addf %662, %661 : vector<2x64xf32>
    %664 = arith.divf %662, %663 : vector<2x64xf32>
    %665 = arith.mulf %656, %633 : vector<2x64xf32>
    %666 = arith.mulf %650, %658 : vector<2x64xf32>
    %667 = arith.addf %665, %666 : vector<2x64xf32>
    %668 = math.tanh %667 : vector<2x64xf32>
    %669 = arith.mulf %664, %668 : vector<2x64xf32>
    %670 = arith.index_cast %c2_i32_176 : i32 to index
    %c0_183 = arith.constant 0 : index
    %c0_184 = arith.constant 0 : index
    %671 = vector.load %arg18[%670, %c0_183, %c0_184] : memref<8x2x64xf32, #tpu.memory_space<vmem>>, vector<1x2x64xf32>
    %672 = vector.shape_cast %671 : vector<1x2x64xf32> to vector<2x64xf32>
    %673 = vector.shape_cast %669 : vector<2x64xf32> to vector<1x2x64xf32>
    tpu.vector_store %arg18[%670, %c0_183, %c0_184], %673 {strides = array<i32>} : memref<8x2x64xf32, #tpu.memory_space<vmem>>, vector<1x2x64xf32>,
    %c3_i32_185 = arith.constant 3 : i32
    %c2_i32_186 = arith.constant 2 : i32
    %674 = arith.muli %c3_i32_185, %c2_i32_186 : i32
    %675 = arith.index_cast %674 : i32 to index
    %c0_187 = arith.constant 0 : index
    %676 = vector.load %arg15[%675, %c0_187] : memref<16x256xf32, #tpu.memory_space<vmem>>, vector<2x256xf32>
    %cst_188 = arith.constant dense<0.000000e+00> : vector<2x256xf32>
    %677 = tpu.matmul %669, %16, %cst_188 {dimension_numbers = #tpu.dot_dimension_numbers<[1], [0], [0], [1], [0, 0, 1, 1], [], []>} : vector<2x64xf32>, vector<64x256xf32>, vector<2x256xf32> -> vector<2x256xf32>
    %678 = arith.addf %676, %677 : vector<2x256xf32>
    %679 = vector.extract_strided_slice %678 {offsets = [0, 0], sizes = [2, 64], strides = [1, 1]} : vector<2x256xf32> to vector<2x64xf32>
    %680 = arith.negf %679 : vector<2x64xf32>
    %681 = math.exp %680 : vector<2x64xf32>
    %cst_189 = arith.constant 1.000000e+00 : f32
    %682 = vector.broadcast %cst_189 : f32 to vector<2x64xf32>
    %683 = arith.addf %682, %681 : vector<2x64xf32>
    %684 = arith.divf %682, %683 : vector<2x64xf32>
    %685 = vector.extract_strided_slice %678 {offsets = [0, 64], sizes = [2, 64], strides = [1, 1]} : vector<2x256xf32> to vector<2x64xf32>
    %686 = arith.negf %685 : vector<2x64xf32>
    %687 = math.exp %686 : vector<2x64xf32>
    %cst_190 = arith.constant 1.000000e+00 : f32
    %688 = vector.broadcast %cst_190 : f32 to vector<2x64xf32>
    %689 = arith.addf %688, %687 : vector<2x64xf32>
    %690 = arith.divf %688, %689 : vector<2x64xf32>
    %691 = vector.extract_strided_slice %678 {offsets = [0, 128], sizes = [2, 64], strides = [1, 1]} : vector<2x256xf32> to vector<2x64xf32>
    %692 = math.tanh %691 : vector<2x64xf32>
    %693 = vector.extract_strided_slice %678 {offsets = [0, 192], sizes = [2, 64], strides = [1, 1]} : vector<2x256xf32> to vector<2x64xf32>
    %694 = arith.negf %693 : vector<2x64xf32>
    %695 = math.exp %694 : vector<2x64xf32>
    %cst_191 = arith.constant 1.000000e+00 : f32
    %696 = vector.broadcast %cst_191 : f32 to vector<2x64xf32>
    %697 = arith.addf %696, %695 : vector<2x64xf32>
    %698 = arith.divf %696, %697 : vector<2x64xf32>
    %699 = arith.mulf %690, %667 : vector<2x64xf32>
    %700 = arith.mulf %684, %692 : vector<2x64xf32>
    %701 = arith.addf %699, %700 : vector<2x64xf32>
    %702 = math.tanh %701 : vector<2x64xf32>
    %703 = arith.mulf %698, %702 : vector<2x64xf32>
    %704 = arith.index_cast %c3_i32_185 : i32 to index
    %c0_192 = arith.constant 0 : index
    %c0_193 = arith.constant 0 : index
    %705 = vector.load %arg18[%704, %c0_192, %c0_193] : memref<8x2x64xf32, #tpu.memory_space<vmem>>, vector<1x2x64xf32>
    %706 = vector.shape_cast %705 : vector<1x2x64xf32> to vector<2x64xf32>
    %707 = vector.shape_cast %703 : vector<2x64xf32> to vector<1x2x64xf32>
    tpu.vector_store %arg18[%704, %c0_192, %c0_193], %707 {strides = array<i32>} : memref<8x2x64xf32, #tpu.memory_space<vmem>>, vector<1x2x64xf32>,
    %c4_i32_194 = arith.constant 4 : i32
    %c2_i32_195 = arith.constant 2 : i32
    %708 = arith.muli %c4_i32_194, %c2_i32_195 : i32
    %709 = arith.index_cast %708 : i32 to index
    %c0_196 = arith.constant 0 : index
    %710 = vector.load %arg15[%709, %c0_196] : memref<16x256xf32, #tpu.memory_space<vmem>>, vector<2x256xf32>
    %cst_197 = arith.constant dense<0.000000e+00> : vector<2x256xf32>
    %711 = tpu.matmul %703, %16, %cst_197 {dimension_numbers = #tpu.dot_dimension_numbers<[1], [0], [0], [1], [0, 0, 1, 1], [], []>} : vector<2x64xf32>, vector<64x256xf32>, vector<2x256xf32> -> vector<2x256xf32>
    %712 = arith.addf %710, %711 : vector<2x256xf32>
    %713 = vector.extract_strided_slice %712 {offsets = [0, 0], sizes = [2, 64], strides = [1, 1]} : vector<2x256xf32> to vector<2x64xf32>
    %714 = arith.negf %713 : vector<2x64xf32>
    %715 = math.exp %714 : vector<2x64xf32>
    %cst_198 = arith.constant 1.000000e+00 : f32
    %716 = vector.broadcast %cst_198 : f32 to vector<2x64xf32>
    %717 = arith.addf %716, %715 : vector<2x64xf32>
    %718 = arith.divf %716, %717 : vector<2x64xf32>
    %719 = vector.extract_strided_slice %712 {offsets = [0, 64], sizes = [2, 64], strides = [1, 1]} : vector<2x256xf32> to vector<2x64xf32>
    %720 = arith.negf %719 : vector<2x64xf32>
    %721 = math.exp %720 : vector<2x64xf32>
    %cst_199 = arith.constant 1.000000e+00 : f32
    %722 = vector.broadcast %cst_199 : f32 to vector<2x64xf32>
    %723 = arith.addf %722, %721 : vector<2x64xf32>
    %724 = arith.divf %722, %723 : vector<2x64xf32>
    %725 = vector.extract_strided_slice %712 {offsets = [0, 128], sizes = [2, 64], strides = [1, 1]} : vector<2x256xf32> to vector<2x64xf32>
    %726 = math.tanh %725 : vector<2x64xf32>
    %727 = vector.extract_strided_slice %712 {offsets = [0, 192], sizes = [2, 64], strides = [1, 1]} : vector<2x256xf32> to vector<2x64xf32>
    %728 = arith.negf %727 : vector<2x64xf32>
    %729 = math.exp %728 : vector<2x64xf32>
    %cst_200 = arith.constant 1.000000e+00 : f32
    %730 = vector.broadcast %cst_200 : f32 to vector<2x64xf32>
    %731 = arith.addf %730, %729 : vector<2x64xf32>
    %732 = arith.divf %730, %731 : vector<2x64xf32>
    %733 = arith.mulf %724, %701 : vector<2x64xf32>
    %734 = arith.mulf %718, %726 : vector<2x64xf32>
    %735 = arith.addf %733, %734 : vector<2x64xf32>
    %736 = math.tanh %735 : vector<2x64xf32>
    %737 = arith.mulf %732, %736 : vector<2x64xf32>
    %738 = arith.index_cast %c4_i32_194 : i32 to index
    %c0_201 = arith.constant 0 : index
    %c0_202 = arith.constant 0 : index
    %739 = vector.load %arg18[%738, %c0_201, %c0_202] : memref<8x2x64xf32, #tpu.memory_space<vmem>>, vector<1x2x64xf32>
    %740 = vector.shape_cast %739 : vector<1x2x64xf32> to vector<2x64xf32>
    %741 = vector.shape_cast %737 : vector<2x64xf32> to vector<1x2x64xf32>
    tpu.vector_store %arg18[%738, %c0_201, %c0_202], %741 {strides = array<i32>} : memref<8x2x64xf32, #tpu.memory_space<vmem>>, vector<1x2x64xf32>,
    %c5_i32_203 = arith.constant 5 : i32
    %c2_i32_204 = arith.constant 2 : i32
    %742 = arith.muli %c5_i32_203, %c2_i32_204 : i32
    %743 = arith.index_cast %742 : i32 to index
    %c0_205 = arith.constant 0 : index
    %744 = vector.load %arg15[%743, %c0_205] : memref<16x256xf32, #tpu.memory_space<vmem>>, vector<2x256xf32>
    %cst_206 = arith.constant dense<0.000000e+00> : vector<2x256xf32>
    %745 = tpu.matmul %737, %16, %cst_206 {dimension_numbers = #tpu.dot_dimension_numbers<[1], [0], [0], [1], [0, 0, 1, 1], [], []>} : vector<2x64xf32>, vector<64x256xf32>, vector<2x256xf32> -> vector<2x256xf32>
    %746 = arith.addf %744, %745 : vector<2x256xf32>
    %747 = vector.extract_strided_slice %746 {offsets = [0, 0], sizes = [2, 64], strides = [1, 1]} : vector<2x256xf32> to vector<2x64xf32>
    %748 = arith.negf %747 : vector<2x64xf32>
    %749 = math.exp %748 : vector<2x64xf32>
    %cst_207 = arith.constant 1.000000e+00 : f32
    %750 = vector.broadcast %cst_207 : f32 to vector<2x64xf32>
    %751 = arith.addf %750, %749 : vector<2x64xf32>
    %752 = arith.divf %750, %751 : vector<2x64xf32>
    %753 = vector.extract_strided_slice %746 {offsets = [0, 64], sizes = [2, 64], strides = [1, 1]} : vector<2x256xf32> to vector<2x64xf32>
    %754 = arith.negf %753 : vector<2x64xf32>
    %755 = math.exp %754 : vector<2x64xf32>
    %cst_208 = arith.constant 1.000000e+00 : f32
    %756 = vector.broadcast %cst_208 : f32 to vector<2x64xf32>
    %757 = arith.addf %756, %755 : vector<2x64xf32>
    %758 = arith.divf %756, %757 : vector<2x64xf32>
    %759 = vector.extract_strided_slice %746 {offsets = [0, 128], sizes = [2, 64], strides = [1, 1]} : vector<2x256xf32> to vector<2x64xf32>
    %760 = math.tanh %759 : vector<2x64xf32>
    %761 = vector.extract_strided_slice %746 {offsets = [0, 192], sizes = [2, 64], strides = [1, 1]} : vector<2x256xf32> to vector<2x64xf32>
    %762 = arith.negf %761 : vector<2x64xf32>
    %763 = math.exp %762 : vector<2x64xf32>
    %cst_209 = arith.constant 1.000000e+00 : f32
    %764 = vector.broadcast %cst_209 : f32 to vector<2x64xf32>
    %765 = arith.addf %764, %763 : vector<2x64xf32>
    %766 = arith.divf %764, %765 : vector<2x64xf32>
    %767 = arith.mulf %758, %735 : vector<2x64xf32>
    %768 = arith.mulf %752, %760 : vector<2x64xf32>
    %769 = arith.addf %767, %768 : vector<2x64xf32>
    %770 = math.tanh %769 : vector<2x64xf32>
    %771 = arith.mulf %766, %770 : vector<2x64xf32>
    %772 = arith.index_cast %c5_i32_203 : i32 to index
    %c0_210 = arith.constant 0 : index
    %c0_211 = arith.constant 0 : index
    %773 = vector.load %arg18[%772, %c0_210, %c0_211] : memref<8x2x64xf32, #tpu.memory_space<vmem>>, vector<1x2x64xf32>
    %774 = vector.shape_cast %773 : vector<1x2x64xf32> to vector<2x64xf32>
    %775 = vector.shape_cast %771 : vector<2x64xf32> to vector<1x2x64xf32>
    tpu.vector_store %arg18[%772, %c0_210, %c0_211], %775 {strides = array<i32>} : memref<8x2x64xf32, #tpu.memory_space<vmem>>, vector<1x2x64xf32>,
    %c6_i32_212 = arith.constant 6 : i32
    %c2_i32_213 = arith.constant 2 : i32
    %776 = arith.muli %c6_i32_212, %c2_i32_213 : i32
    %777 = arith.index_cast %776 : i32 to index
    %c0_214 = arith.constant 0 : index
    %778 = vector.load %arg15[%777, %c0_214] : memref<16x256xf32, #tpu.memory_space<vmem>>, vector<2x256xf32>
    %cst_215 = arith.constant dense<0.000000e+00> : vector<2x256xf32>
    %779 = tpu.matmul %771, %16, %cst_215 {dimension_numbers = #tpu.dot_dimension_numbers<[1], [0], [0], [1], [0, 0, 1, 1], [], []>} : vector<2x64xf32>, vector<64x256xf32>, vector<2x256xf32> -> vector<2x256xf32>
    %780 = arith.addf %778, %779 : vector<2x256xf32>
    %781 = vector.extract_strided_slice %780 {offsets = [0, 0], sizes = [2, 64], strides = [1, 1]} : vector<2x256xf32> to vector<2x64xf32>
    %782 = arith.negf %781 : vector<2x64xf32>
    %783 = math.exp %782 : vector<2x64xf32>
    %cst_216 = arith.constant 1.000000e+00 : f32
    %784 = vector.broadcast %cst_216 : f32 to vector<2x64xf32>
    %785 = arith.addf %784, %783 : vector<2x64xf32>
    %786 = arith.divf %784, %785 : vector<2x64xf32>
    %787 = vector.extract_strided_slice %780 {offsets = [0, 64], sizes = [2, 64], strides = [1, 1]} : vector<2x256xf32> to vector<2x64xf32>
    %788 = arith.negf %787 : vector<2x64xf32>
    %789 = math.exp %788 : vector<2x64xf32>
    %cst_217 = arith.constant 1.000000e+00 : f32
    %790 = vector.broadcast %cst_217 : f32 to vector<2x64xf32>
    %791 = arith.addf %790, %789 : vector<2x64xf32>
    %792 = arith.divf %790, %791 : vector<2x64xf32>
    %793 = vector.extract_strided_slice %780 {offsets = [0, 128], sizes = [2, 64], strides = [1, 1]} : vector<2x256xf32> to vector<2x64xf32>
    %794 = math.tanh %793 : vector<2x64xf32>
    %795 = vector.extract_strided_slice %780 {offsets = [0, 192], sizes = [2, 64], strides = [1, 1]} : vector<2x256xf32> to vector<2x64xf32>
    %796 = arith.negf %795 : vector<2x64xf32>
    %797 = math.exp %796 : vector<2x64xf32>
    %cst_218 = arith.constant 1.000000e+00 : f32
    %798 = vector.broadcast %cst_218 : f32 to vector<2x64xf32>
    %799 = arith.addf %798, %797 : vector<2x64xf32>
    %800 = arith.divf %798, %799 : vector<2x64xf32>
    %801 = arith.mulf %792, %769 : vector<2x64xf32>
    %802 = arith.mulf %786, %794 : vector<2x64xf32>
    %803 = arith.addf %801, %802 : vector<2x64xf32>
    %804 = math.tanh %803 : vector<2x64xf32>
    %805 = arith.mulf %800, %804 : vector<2x64xf32>
    %806 = arith.index_cast %c6_i32_212 : i32 to index
    %c0_219 = arith.constant 0 : index
    %c0_220 = arith.constant 0 : index
    %807 = vector.load %arg18[%806, %c0_219, %c0_220] : memref<8x2x64xf32, #tpu.memory_space<vmem>>, vector<1x2x64xf32>
    %808 = vector.shape_cast %807 : vector<1x2x64xf32> to vector<2x64xf32>
    %809 = vector.shape_cast %805 : vector<2x64xf32> to vector<1x2x64xf32>
    tpu.vector_store %arg18[%806, %c0_219, %c0_220], %809 {strides = array<i32>} : memref<8x2x64xf32, #tpu.memory_space<vmem>>, vector<1x2x64xf32>,
    %c7_i32_221 = arith.constant 7 : i32
    %c2_i32_222 = arith.constant 2 : i32
    %810 = arith.muli %c7_i32_221, %c2_i32_222 : i32
    %811 = arith.index_cast %810 : i32 to index
    %c0_223 = arith.constant 0 : index
    %812 = vector.load %arg15[%811, %c0_223] : memref<16x256xf32, #tpu.memory_space<vmem>>, vector<2x256xf32>
    %cst_224 = arith.constant dense<0.000000e+00> : vector<2x256xf32>
    %813 = tpu.matmul %805, %16, %cst_224 {dimension_numbers = #tpu.dot_dimension_numbers<[1], [0], [0], [1], [0, 0, 1, 1], [], []>} : vector<2x64xf32>, vector<64x256xf32>, vector<2x256xf32> -> vector<2x256xf32>
    %814 = arith.addf %812, %813 : vector<2x256xf32>
    %815 = vector.extract_strided_slice %814 {offsets = [0, 0], sizes = [2, 64], strides = [1, 1]} : vector<2x256xf32> to vector<2x64xf32>
    %816 = arith.negf %815 : vector<2x64xf32>
    %817 = math.exp %816 : vector<2x64xf32>
    %cst_225 = arith.constant 1.000000e+00 : f32
    %818 = vector.broadcast %cst_225 : f32 to vector<2x64xf32>
    %819 = arith.addf %818, %817 : vector<2x64xf32>
    %820 = arith.divf %818, %819 : vector<2x64xf32>
    %821 = vector.extract_strided_slice %814 {offsets = [0, 64], sizes = [2, 64], strides = [1, 1]} : vector<2x256xf32> to vector<2x64xf32>
    %822 = arith.negf %821 : vector<2x64xf32>
    %823 = math.exp %822 : vector<2x64xf32>
    %cst_226 = arith.constant 1.000000e+00 : f32
    %824 = vector.broadcast %cst_226 : f32 to vector<2x64xf32>
    %825 = arith.addf %824, %823 : vector<2x64xf32>
    %826 = arith.divf %824, %825 : vector<2x64xf32>
    %827 = vector.extract_strided_slice %814 {offsets = [0, 128], sizes = [2, 64], strides = [1, 1]} : vector<2x256xf32> to vector<2x64xf32>
    %828 = math.tanh %827 : vector<2x64xf32>
    %829 = vector.extract_strided_slice %814 {offsets = [0, 192], sizes = [2, 64], strides = [1, 1]} : vector<2x256xf32> to vector<2x64xf32>
    %830 = arith.negf %829 : vector<2x64xf32>
    %831 = math.exp %830 : vector<2x64xf32>
    %cst_227 = arith.constant 1.000000e+00 : f32
    %832 = vector.broadcast %cst_227 : f32 to vector<2x64xf32>
    %833 = arith.addf %832, %831 : vector<2x64xf32>
    %834 = arith.divf %832, %833 : vector<2x64xf32>
    %835 = arith.mulf %826, %803 : vector<2x64xf32>
    %836 = arith.mulf %820, %828 : vector<2x64xf32>
    %837 = arith.addf %835, %836 : vector<2x64xf32>
    %838 = math.tanh %837 : vector<2x64xf32>
    %839 = arith.mulf %834, %838 : vector<2x64xf32>
    %840 = arith.index_cast %c7_i32_221 : i32 to index
    %c0_228 = arith.constant 0 : index
    %c0_229 = arith.constant 0 : index
    %841 = vector.load %arg18[%840, %c0_228, %c0_229] : memref<8x2x64xf32, #tpu.memory_space<vmem>>, vector<1x2x64xf32>
    %842 = vector.shape_cast %841 : vector<1x2x64xf32> to vector<2x64xf32>
    %843 = vector.shape_cast %839 : vector<2x64xf32> to vector<1x2x64xf32>
    tpu.vector_store %arg18[%840, %c0_228, %c0_229], %843 {strides = array<i32>} : memref<8x2x64xf32, #tpu.memory_space<vmem>>, vector<1x2x64xf32>,
    %c8_i32_230 = arith.constant 8 : i32
    %c0_231 = arith.constant 0 : index
    %c0_232 = arith.constant 0 : index
    %c0_233 = arith.constant 0 : index
    %844 = vector.load %arg16[%c0_231, %c0_232, %c0_233] : memref<8x2x32xf32, #tpu.memory_space<vmem>>, vector<8x2x32xf32>
    %c0_234 = arith.constant 0 : index
    %c0_235 = arith.constant 0 : index
    %c0_236 = arith.constant 0 : index
    %845 = vector.load %arg17[%c0_234, %c0_235, %c0_236] : memref<8x2x32xf32, #tpu.memory_space<vmem>>, vector<8x2x32xf32>
    %c0_237 = arith.constant 0 : index
    %c0_238 = arith.constant 0 : index
    %c0_239 = arith.constant 0 : index
    %846 = vector.load %arg18[%c0_237, %c0_238, %c0_239] : memref<8x2x64xf32, #tpu.memory_space<vmem>>, vector<8x2x64xf32>
    %847 = vector.extract_strided_slice %844 {offsets = [0, 0, 0], sizes = [8, 1, 32], strides = [1, 1, 1]} : vector<8x2x32xf32> to vector<8x1x32xf32>
    %848 = vector.shape_cast %847 : vector<8x1x32xf32> to vector<8x32xf32>
    %849 = vector.extract_strided_slice %845 {offsets = [0, 0, 0], sizes = [8, 1, 32], strides = [1, 1, 1]} : vector<8x2x32xf32> to vector<8x1x32xf32>
    %850 = vector.shape_cast %849 : vector<8x1x32xf32> to vector<8x32xf32>
    %851 = tpu.concatenate %848, %850 in 1 : vector<8x32xf32>, vector<8x32xf32> -> vector<8x64xf32>
    %852 = vector.extract_strided_slice %846 {offsets = [0, 0, 0], sizes = [8, 1, 64], strides = [1, 1, 1]} : vector<8x2x64xf32> to vector<8x1x64xf32>
    %853 = vector.shape_cast %852 : vector<8x1x64xf32> to vector<8x64xf32>
    %cst_240 = arith.constant dense<0.000000e+00> : vector<8x8xf32>
    %854 = tpu.matmul %853, %851, %cst_240 {dimension_numbers = #tpu.dot_dimension_numbers<[1], [1], [0], [0], [0, 0, 1, 0], [], []>} : vector<8x64xf32>, vector<8x64xf32>, vector<8x8xf32> -> vector<8x8xf32>
    %cst_241 = arith.constant dense<0xFF800000> : vector<8xf32>
    %855 = vector.multi_reduction <maximumf>, %854, %cst_241 [1] : vector<8x8xf32> to vector<8xf32>
    %856 = vector.shape_cast %855 : vector<8xf32> to vector<8x1xf32>
    %857 = vector.broadcast %856 : vector<8x1xf32> to vector<8x8xf32>
    %858 = arith.subf %854, %857 : vector<8x8xf32>
    %859 = math.exp %858 : vector<8x8xf32>
    %cst_242 = arith.constant dense<0.000000e+00> : vector<8xf32>
    %860 = vector.multi_reduction <add>, %859, %cst_242 [1] : vector<8x8xf32> to vector<8xf32>
    %861 = vector.shape_cast %860 : vector<8xf32> to vector<8x1xf32>
    %862 = tpu.reciprocal %861 {approx = true} : vector<8x1xf32> -> vector<8x1xf32>
    %863 = vector.broadcast %862 : vector<8x1xf32> to vector<8x8xf32>
    %864 = arith.mulf %859, %863 : vector<8x8xf32>
    %cst_243 = arith.constant dense<0.000000e+00> : vector<8x64xf32>
    %865 = tpu.matmul %864, %851, %cst_243 {dimension_numbers = #tpu.dot_dimension_numbers<[1], [0], [0], [1], [0, 0, 1, 1], [], []>} : vector<8x8xf32>, vector<8x64xf32>, vector<8x64xf32> -> vector<8x64xf32>
    %866 = tpu.concatenate %853, %865 in 1 : vector<8x64xf32>, vector<8x64xf32> -> vector<8x128xf32>
    %867 = vector.extract_strided_slice %844 {offsets = [0, 1, 0], sizes = [8, 1, 32], strides = [1, 1, 1]} : vector<8x2x32xf32> to vector<8x1x32xf32>
    %868 = vector.shape_cast %867 : vector<8x1x32xf32> to vector<8x32xf32>
    %869 = vector.extract_strided_slice %845 {offsets = [0, 1, 0], sizes = [8, 1, 32], strides = [1, 1, 1]} : vector<8x2x32xf32> to vector<8x1x32xf32>
    %870 = vector.shape_cast %869 : vector<8x1x32xf32> to vector<8x32xf32>
    %871 = tpu.concatenate %868, %870 in 1 : vector<8x32xf32>, vector<8x32xf32> -> vector<8x64xf32>
    %872 = vector.extract_strided_slice %846 {offsets = [0, 1, 0], sizes = [8, 1, 64], strides = [1, 1, 1]} : vector<8x2x64xf32> to vector<8x1x64xf32>
    %873 = vector.shape_cast %872 : vector<8x1x64xf32> to vector<8x64xf32>
    %cst_244 = arith.constant dense<0.000000e+00> : vector<8x8xf32>
    %874 = tpu.matmul %873, %871, %cst_244 {dimension_numbers = #tpu.dot_dimension_numbers<[1], [1], [0], [0], [0, 0, 1, 0], [], []>} : vector<8x64xf32>, vector<8x64xf32>, vector<8x8xf32> -> vector<8x8xf32>
    %cst_245 = arith.constant dense<0xFF800000> : vector<8xf32>
    %875 = vector.multi_reduction <maximumf>, %874, %cst_245 [1] : vector<8x8xf32> to vector<8xf32>
    %876 = vector.shape_cast %875 : vector<8xf32> to vector<8x1xf32>
    %877 = vector.broadcast %876 : vector<8x1xf32> to vector<8x8xf32>
    %878 = arith.subf %874, %877 : vector<8x8xf32>
    %879 = math.exp %878 : vector<8x8xf32>
    %cst_246 = arith.constant dense<0.000000e+00> : vector<8xf32>
    %880 = vector.multi_reduction <add>, %879, %cst_246 [1] : vector<8x8xf32> to vector<8xf32>
    %881 = vector.shape_cast %880 : vector<8xf32> to vector<8x1xf32>
    %882 = tpu.reciprocal %881 {approx = true} : vector<8x1xf32> -> vector<8x1xf32>
    %883 = vector.broadcast %882 : vector<8x1xf32> to vector<8x8xf32>
    %884 = arith.mulf %879, %883 : vector<8x8xf32>
    %cst_247 = arith.constant dense<0.000000e+00> : vector<8x64xf32>
    %885 = tpu.matmul %884, %871, %cst_247 {dimension_numbers = #tpu.dot_dimension_numbers<[1], [0], [0], [1], [0, 0, 1, 1], [], []>} : vector<8x8xf32>, vector<8x64xf32>, vector<8x64xf32> -> vector<8x64xf32>
    %886 = tpu.concatenate %873, %885 in 1 : vector<8x64xf32>, vector<8x64xf32> -> vector<8x128xf32>
    %887 = tpu.concatenate %866, %886 in 0 : vector<8x128xf32>, vector<8x128xf32> -> vector<16x128xf32>
    %c0_248 = arith.constant 0 : index
    %c0_249 = arith.constant 0 : index
    %888 = vector.load %arg9[%c0_248, %c0_249] : memref<128x64xf32, #tpu.memory_space<vmem>>, vector<128x64xf32>
    %cst_250 = arith.constant dense<0.000000e+00> : vector<16x64xf32>
    %889 = tpu.matmul %887, %888, %cst_250 {dimension_numbers = #tpu.dot_dimension_numbers<[1], [0], [0], [1], [0, 0, 1, 1], [], []>} : vector<16x128xf32>, vector<128x64xf32>, vector<16x64xf32> -> vector<16x64xf32>
    %c0_251 = arith.constant 0 : index
    %c0_252 = arith.constant 0 : index
    %890 = vector.load %arg10[%c0_251, %c0_252] : memref<1x64xf32, #tpu.memory_space<vmem>>, vector<1x64xf32>
    %891 = vector.broadcast %890 : vector<1x64xf32> to vector<16x64xf32>
    %892 = arith.addf %889, %891 : vector<16x64xf32>
    %893 = math.tanh %892 : vector<16x64xf32>
    %c0_253 = arith.constant 0 : index
    %c0_254 = arith.constant 0 : index
    %894 = vector.load %arg11[%c0_253, %c0_254] : memref<64x128xf32, #tpu.memory_space<vmem>>, vector<64x128xf32>
    %cst_255 = arith.constant dense<0.000000e+00> : vector<16x128xf32>
    %895 = tpu.matmul %893, %894, %cst_255 {dimension_numbers = #tpu.dot_dimension_numbers<[1], [0], [0], [1], [0, 0, 1, 1], [], []>} : vector<16x64xf32>, vector<64x128xf32>, vector<16x128xf32> -> vector<16x128xf32>
    %c0_256 = arith.constant 0 : index
    %c0_257 = arith.constant 0 : index
    %896 = vector.load %arg12[%c0_256, %c0_257] : memref<1x128xf32, #tpu.memory_space<vmem>>, vector<1x128xf32>
    %897 = vector.broadcast %896 : vector<1x128xf32> to vector<16x128xf32>
    %898 = arith.addf %895, %897 : vector<16x128xf32>
    %c0_258 = arith.constant 0 : index
    %c0_259 = arith.constant 0 : index
    %899 = vector.load %arg13[%c0_258, %c0_259] : memref<16x128xf32, #tpu.memory_space<vmem>>, vector<16x128xf32>
    tpu.vector_store %arg13[%c0_258, %c0_259], %898 {strides = array<i32>} : memref<16x128xf32, #tpu.memory_space<vmem>>, vector<16x128xf32>,
    return
  }
}

</mosaic_0001>

<bundles_post_ra>
// kernel: seq2seq_attn_forward.1
= control target key start
LH: loop header
LB: loop body
LE: loop exit
PB: predicated region body
PF: predicated region fallthrough
CT: control target
= control target key end

     0   :  { %v4412_v4 = vmov 0.0   ;;  %vm4413_vm0 = vmmov 0   ;;  %vm67_vm1 = vcmask 261120   ;;  %s5453_s0 = inlined_call_operand.vmem [shape: f32[16,32], index: 0, kind: input, shape index: {}]   ;;  %s5454_s1 = inlined_call_operand.vmem [shape: f32[16,32], index: 1, kind: input, shape index: {}]   ;;  %s5455_s2 = inlined_call_operand.vmem [shape: f32[32,256], index: 2, kind: input, shape index: {}]   ;;  %s5456_s3 = inlined_call_operand.vmem [shape: f32[32,128], index: 3, kind: input, shape index: {}]   ;;  %s5457_s4 = inlined_call_operand.vmem [shape: f32[32,128], index: 4, kind: input, shape index: {}]   ;;  %s5458_s5 = inlined_call_operand.vmem [shape: f32[1,256], index: 5, kind: input, shape index: {}]   ;;  %s5459_s6 = inlined_call_operand.vmem [shape: f32[32,256], index: 6, kind: input, shape index: {}]   ;;  %s5460_s7 = inlined_call_operand.vmem [shape: f32[64,256], index: 7, kind: input, shape index: {}]   ;;  %s5461_s8 = inlined_call_operand.vmem [shape: f32[1,256], index: 8, kind: input, shape index: {}]   ;;  %s5462_s9 = inlined_call_operand.vmem [shape: f32[128,64], index: 9, kind: input, shape index: {}]   ;;  %s5463_s10 = inlined_call_operand.vmem [shape: f32[1,64], index: 10, kind: input, shape index: {}]   ;;  %s5464_s11 = inlined_call_operand.vmem [shape: f32[64,128], index: 11, kind: input, shape index: {}]   ;;  %s5465_s12 = inlined_call_operand.vmem [shape: f32[1,128], index: 12, kind: input, shape index: {}]   ;;  %s5466_s13 = inlined_call_operand.hbm [shape: f32[16,128], index: 13, kind: output, shape index: {}]  }
   0x1   :  { %v54_v0 = vld [vmem:[%s5455_s2 + $0x38] sm:$0xff]  ;;  %v53_v1 = vld [vmem:[%s5455_s2 + $0x30] sm:$0xff]  ;;  %v52_v2 = vld [vmem:[%s5455_s2 + $0x28] sm:$0xff]  ;;  %138 = vmatprep.mubr.f32.mxu1 %v4412_v4  ;;  %3888 = vmatprep.subr.mxu0 %v4412_v4 }
   0x2   :  { %98 = vmatprep.subr.mxu1 %v54_v0  ;;  %v51_v3 = vld [vmem:[%s5455_s2 + $0x20] sm:$0xff]  ;;  %v50_v5 = vld [vmem:[%s5455_s2 + $0x18] sm:$0xff]  ;;  %v49_v6 = vld [vmem:[%s5455_s2 + $0x10] sm:$0xff]  ;;  %3896 = vmatprep.mubr.msk.f32.mxu0 %vm4413_vm0, %v4412_v4 }
   0x3   :  { %99 = vmatpush1.msra.mxu1 %v53_v1  ;;  %v48_v7 = vld [vmem:[%s5455_s2 + $0x8] sm:$0xff]  ;;  %v4518_v8 = vld [vmem:[%s5456_s3 + $0x18] sm:$0xff]  ;;  %v47_v9 = vld [vmem:[%s5455_s2] sm:$0xff] }
   0x4   :  { %100 = vmatprep.subr.mxu1 %v52_v2  ;;  %3889 = vmatpush3.msra.mxu0 %v4518_v8  ;;  %v4527_v10 = vld [vmem:[%s5456_s3 + $0x10] sm:$0xff]  ;;  %v45_v11 = vld [vmem:[%s5453_s0] sm:$0xff]  ;;  %v164_v12 = vld [vmem:[%s5459_s6 + $0x38] sm:$0xff] }
   0x5   :  { %101 = vmatpush1.msra.mxu1 %v51_v3  ;;  %3890 = vmatprep.subr.mxu0 %v4412_v4  ;;  %v163_v13 = vld [vmem:[%s5459_s6 + $0x30] sm:$0xff]  ;;  %v162_v14 = vld [vmem:[%s5459_s6 + $0x28] sm:$0xff]  ;;  %v161_v16 = vld [vmem:[%s5459_s6 + $0x20] sm:$0xff] }
   0x6   :  { %102 = vmatprep.subr.mxu1 %v50_v5  ;;  %3891 = vmatpush3.msra.mxu0 %v4527_v10  ;;  %v4547_v15 = vld [vmem:[%s5456_s3 + $0x8] sm:$0xff] }
   0x7   :  { %103 = vmatpush1.msra.mxu1 %v49_v6  ;;  %3892 = vmatprep.subr.mxu0 %v4412_v4 }
   0x8   :  { %104 = vmatprep.subr.mxu1 %v48_v7 }
   0x9   :  { %105 = vmatpush1.msra.mxu1 %v47_v9 }
   0xa   :  { %3704 = vmatmul.mubr.msk.f32.vlgmr.msra.gmra.mxu1 %vm67_vm1, %v45_v11  ;;  %207 = vmatprep.subr.mxu1 %v164_v12 }
   0xb   :  { %18 = vsyncpa [#allocation8], 0  ;;  %208 = vmatpush1.msra.mxu1 %v163_v13  ;;  %144 = vmatprep.mubr.f32.mxu1 %v4412_v4  ;;  %v46_v17 = vld [vmem:[%s5453_s0 + $0x8] sm:$0xff]  ;;  %v160_v18 = vld [vmem:[%s5459_s6 + $0x18] sm:$0xff]  ;;  %v57_v29 = vlaneseq  ;;  %vm490_vm2 = vcmask 254976   ;;  %vm497_vm3 = vcmask 261126  }
   0xc   :  { %209 = vmatprep.subr.mxu1 %v162_v14  ;;  %v159_v19 = vld [vmem:[%s5459_s6 + $0x10] sm:$0xff]  ;;  %3893 = vmatpush3.msra.mxu0 %v4547_v15  ;;  %v158_v20 = vld [vmem:[%s5459_s6 + $0x8] sm:$0xff]  ;;  %v4571_v21 = vld [vmem:[%s5456_s3] sm:$0xff]  ;;  %vm2081_vm4 = vcmask 523264   ;;  %vm2188_vm5 = vcmask 517120   ;;  %vm715_vm6 = vcmask 257026  }
   0xd   :  { %210 = vmatpush1.msra.mxu1 %v161_v16  ;;  %3894 = vmatprep.subr.mxu0 %v4412_v4  ;;  %v157_v22 = vld [vmem:[%s5459_s6] sm:$0xff]  ;;  %v4585_v24 = vld [vmem:[%s5457_s4 + $0x18] sm:$0xff]  ;;  %v4593_v25 = vld [vmem:[%s5457_s4 + $0x10] sm:$0xff]  ;;  %v58_v30 = vshrl.u32 %v57_v29, 7  ;;  %vm722_vm7 = vcmask 259076   ;;  %vm2539_vm8 = vcmask 523270  }
   0xe   :  { %3705 = vmatmul.mubr.msk.f32.gmra.mxu1 %vm67_vm1, %v46_v17  ;;  %211 = vmatprep.subr.mxu1 %v160_v18  ;;  %v155_v23 = vld [vmem:[%s5454_s1] sm:$0xff]  ;;  %v156_v26 = vld [vmem:[%s5454_s1 + $0x8] sm:$0xff]  ;;  %vm2421_vm9 = vcmask 521220   ;;  %vm3036_vm10 = vcmask 1042434   ;;  %vm3033_vm11 = vcmask 1041409   ;;  %vm3039_vm12 = vcmask 1043459  }
   0xf   :  { %212 = vmatpush1.msra.mxu1 %v159_v19  ;;  %247 = vmatprep.mubr.f32.mxu1 %v4412_v4  ;;  %v4604_v27 = vld [vmem:[%s5457_s4 + $0x8] sm:$0xff]  ;;  %v4614_v28 = vld [vmem:[%s5457_s4] sm:$0xff]  ;;  %v59_v31 = vsub.s32 0, %v58_v30  ;;  %v63_v33 = vsub.s32 1, %v58_v30  ;;  %vm3042_vm13 = vcmask 1044484   ;;  %vm3045_vm14 = vcmask 1045509  }
  0x10   :  { %213 = vmatprep.subr.mxu1 %v158_v20  ;;  %3895 = vmatpush3.msra.mxu0 %v4571_v21  ;;  %v55_v32 = vld [vmem:[%s5458_s5] sm:$0x3]  ;;  %s4414_s5 = smov 64   ;;  %vm3048_vm15 = vcmask 1046534  }
  0x11   :  { %214 = vmatpush1.msra.mxu1 %v157_v22  ;;  %3897 = vmatmul.mubr.f32.vlgmr.msra.gmra.mxu0 %v4412_v4  ;;  %v60_v34 = vrot.slane %v55_v32, %v59_v31  ;;  %v64_v35 = vrot.slane %v55_v32, %v63_v33  ;;  %v165_v39 = vld [vmem:[%s5461_s8] sm:$0x3]  ;;  %s4415_s8 = smov 32  }
  0x12   :  { %3706 = vmatmul.mubr.msk.f32.vlgmr.msra.gmra.mxu1 %vm67_vm1, %v155_v23  ;;  %3899 = vmatprep.subr.mxu1 %v4412_v4  ;;  %v170_v43 = vrot.slane %v165_v39, %v59_v31  ;;  %v174_v46 = vrot.slane %v165_v39, %v63_v33 }
  0x13   :  { %3900 = vmatpush3.msra.mxu1 %v4585_v24  ;;  %253 = vmatprep.mubr.f32.mxu1 %v4412_v4 }
  0x14   :  { %3901 = vmatprep.subr.mxu1 %v4412_v4  ;;  %3910 = vmatprep.subr.mxu0 %v4412_v4 }
  0x15   :  { %3902 = vmatpush3.msra.mxu1 %v4593_v25  ;;  %3911 = vmatpush3.msra.mxu0 %v4518_v8 }
  0x16   :  { %3707 = vmatmul.mubr.msk.f32.gmra.mxu1 %vm67_vm1, %v156_v26  ;;  %3903 = vmatprep.subr.mxu1 %v4412_v4 }
  0x17   :  { %3904 = vmatpush3.msra.mxu1 %v4604_v27  ;;  %3907 = vmatprep.mubr.msk.f32.mxu1 %vm4413_vm0, %v4412_v4 }
  0x18   :  { %3905 = vmatprep.subr.mxu1 %v4412_v4  ;;  %3912 = vmatprep.subr.mxu0 %v4412_v4 }
  0x19   :  { %3906 = vmatpush3.msra.mxu1 %v4614_v28  ;;  %3913 = vmatpush3.msra.mxu0 %v4527_v10 }
  0x1a   :  { %3908 = vmatmul.mubr.f32.vlgmr.msra.gmra.mxu1 %v4412_v4  ;;  %3921 = vmatprep.subr.mxu1 %v4412_v4 }
  0x1b   :  { %3922 = vmatpush3.msra.mxu1 %v4585_v24  ;;  %3914 = vmatprep.subr.mxu0 %v4412_v4 }
  0x1c   :  { %3923 = vmatprep.subr.mxu1 %v4412_v4  ;;  %3915 = vmatpush3.msra.mxu0 %v4547_v15 }
  0x1d   :  { %3924 = vmatpush3.msra.mxu1 %v4593_v25  ;;  %3929 = vmatprep.mubr.msk.f32.mxu1 %vm4413_vm0, %v4412_v4 }
  0x1e   :  { %3925 = vmatprep.subr.mxu1 %v4412_v4  ;;  %3916 = vmatprep.subr.mxu0 %v4412_v4 }
  0x1f   :  { %3926 = vmatpush3.msra.mxu1 %v4604_v27  ;;  %3917 = vmatpush3.msra.mxu0 %v4571_v21 }
  0x20   :  { %3927 = vmatprep.subr.mxu1 %v4412_v4  ;;  %3918 = vmatprep.mubr.msk.f32.mxu0 %vm4413_vm0, %v4412_v4 }
  0x21   :  { %3928 = vmatpush3.msra.mxu1 %v4614_v28  ;;  %3932 = vmatprep.subr.mxu0 %v4412_v4 }
  0x22   :  { %3943 = vmatprep.subr.mxu1 %v4412_v4 }
  0xca   :  { %v140_v36 = vpop.f32.mrf.mxu1 }
  0xcb   :  { %v141_v37 = vadd.f32 %v140_v36, %v60_v34 }
  0xcc   :  { %v142_v38 = vpop.f32.mrf.mxu1 }
  0xcd   :  { %151 = vst [vmem:[#allocation2 + $0x10] sm:$0xff] %v141_v37  ;;  %v143_v40 = vadd.f32 %v142_v38, %v64_v35 }
  0xce   :  { %v146_v41 = vpop.f32.mrf.mxu1 }
  0xcf   :  { %152 = vst [vmem:[#allocation2] sm:$0xff] %v143_v40  ;;  %v147_v42 = vadd.f32 %v146_v41, %v60_v34 }
  0xd0   :  { %v148_v44 = vpop.f32.mrf.mxu1 }
  0xd1   :  { %153 = vst [vmem:[#allocation2 + $0x18] sm:$0xff] %v147_v42  ;;  %v149_v45 = vadd.f32 %v148_v44, %v64_v35  ;;  %v359_v47 = vpop.f32.mrf.mxu0 }
  0xd2   :  { %v249_v48 = vpop.f32.mrf.mxu1 }
  0xd3   :  { %154 = vst [vmem:[#allocation2 + $0x8] sm:$0xff] %v149_v45  ;;  %v250_v49 = vadd.f32 %v249_v48, %v170_v43  ;;  %v3898_v50 = vpop.f32.mrf.mxu0 }
  0xd4   :  { %v251_v51 = vpop.f32.mrf.mxu1  ;;  %v288_v59 = vld [vmem:[#allocation2 + $0x10] sm:$0x3]  ;;  %v499_v45 = vld [vmem:[#allocation2 + $0x10] sm:$0xc] }
  0xd5   :  { %260 = vst [vmem:[#allocation3] sm:$0xff] %v250_v49  ;;  %v252_v52 = vadd.f32 %v251_v51, %v174_v46  ;;  %v363_v63 = vadd.f32 %v359_v47, %v288_v59 }
  0xd6   :  { %v255_v53 = vpop.f32.mrf.mxu1 }
  0xd7   :  { %261 = vst [vmem:[#allocation3 + $0x18] sm:$0xff] %v252_v52  ;;  %v256_v54 = vadd.f32 %v255_v53, %v170_v43  ;;  %v3708_v3 = vmul.f32 -1.442695, %v363_v63 }
  0xd8   :  { %v257_v55 = vpop.f32.mrf.mxu1 }
  0xd9   :  { %262 = vst [vmem:[#allocation3 + $0x8] sm:$0xff] %v256_v54  ;;  %v258_v56 = vadd.f32 %v257_v55, %v174_v46 }
  0xda   :  { %v454_v57 = vpop.f32.mrf.mxu1  ;;  %v289_v60 = vld [vmem:[#allocation2 + $0x8] sm:$0xc0]  ;;  %v500_v40 = vld [vmem:[#allocation2 + $0x8] sm:$0x30] }
  0xdb   :  { %263 = vst [vmem:[#allocation3 + $0x10] sm:$0xff] %v258_v56  ;;  %v459_v58 = vrot.slane %v454_v57, 2 }
  0xdc   :  { %v3909_v61 = vpop.f32.mrf.mxu1 }
  0xdd   :  { %v461_v62 = vadd.f32 %v459_v58, %v289_v60 }
  0xdf   :  { %4146 = vtanh.f32 %v461_v62  ;;  %v3709_v2 = vmul.f32 -1.442695, %v461_v62 }
  0xe0   :  { %4148 = vtanh.f32 %v363_v63 }
  0xe1   :  { %4150 = vpow2.f32 %v3709_v2 }
  0xe2   :  { %4152 = vpow2.f32 %v3708_v3 }
  0xec   :  { %v4147_v0 = vpop.eup %4146 }
  0xed   :  { %471 = vrot.lane.b32.xlu0 %v4147_v0, %s4414_s5  ;;  %v4149_v1 = vpop.eup %4148 }
  0xee   :  { %v4151_v5 = vpop.eup %4150 }
  0xef   :  { %v465_v6 = vadd.f32 1.0, %v4151_v5  ;;  %v4153_v7 = vpop.eup %4152 }
  0xf0   :  { %v367_v9 = vadd.f32 1.0, %v4153_v7 }
  0xf1   :  { %373 = vrot.lane.b32.xlu0 %v4149_v1, %s4414_s5  ;;  %4154 = vrcp.f32 %v465_v6 }
  0xf2   :  { %4156 = vrcp.f32 %v367_v9 }
  0xfe   :  { %v4155_v11 = vpop.eup %4154 }
  0xff   :  { %v4157_v14 = vpop.eup %4156  ;;  %v469_v18 = vmul.f32 0.0, %v4155_v11 }
 0x100   :  { %v371_v22 = vmul.f32 0.0, %v4157_v14 }
 0x15f   :  { %v472_v12 = vpop.permute.xlu0 %471 }
 0x160   :  { %v474_v13 = vmul.f32 %v4155_v11, %v472_v12 }
 0x162   :  { %476 = vrot.lane.b32.xlu1 %v474_v13, %s4415_s8 }
 0x163   :  { %v374_v16 = vpop.permute.xlu0 %373 }
 0x164   :  { %v376_v17 = vmul.f32 %v4157_v14, %v374_v16 }
 0x166   :  { %378 = vrot.lane.b32.xlu1 %v376_v17, %s4415_s8 }
 0x1d4   :  { %v477_v19 = vpop.permute.xlu1 %476 }
 0x1d5   :  { %v4652_v20 = vadd.f32 %v477_v19, %v469_v18 }
 0x1d7   :  { %4158 = vtanh.f32 %v4652_v20  ;;  %v691_v62 = vrot.slane %v4652_v20, 2 }
 0x1d8   :  { %v379_v23 = vpop.permute.xlu1 %378 }
 0x1d9   :  { %v4655_v26 = vadd.f32 %v379_v23, %v371_v22  ;;  %v725_v23 = vld [vmem:[#allocation2 + $0x8] sm:$0xc] }
 0x1db   :  { %4160 = vtanh.f32 %v4655_v26  ;;  %v585_v0 = vrot.slane %v4655_v26, 6 }
 0x1e4   :  { %v4159_v29 = vpop.eup %4158 }
 0x1e5   :  { %482 = vrot.lane.b32.xlu0 %v4159_v29, %s4414_s5 }
 0x1e8   :  { %v4161_v30 = vpop.eup %4160 }
 0x1e9   :  { %384 = vrot.lane.b32.xlu1 %v4161_v30, %s4414_s5 }
 0x257   :  { %v483_v31 = vpop.permute.xlu0 %482 }
 0x258   :  { %v4660_v32 = vmul.f32 %v4155_v11, %v483_v31 }
 0x25a   :  { %v604_v33 = vrot.slane %v4660_v32, 6 }
 0x25b   :  { %v385_v34 = vpop.permute.xlu1 %384 }
 0x25c   :  { %v387_v35 = vmul.f32 %v4157_v14, %v385_v34  ;;  %605 = vrot.lane.b32.xlu1 %v604_v33, %s4415_s8  ;;  %v724_v33 = vld [vmem:[#allocation2 + $0x10] sm:$0x30] }
 0x25e   :  { %487 = vrot.lane.b32.xlu0 %v387_v35, %s4415_s8 }
 0x2ce   :  { %v606_v36 = vpop.permute.xlu1 %605 }
 0x2cf   :  { %3930 = vmatmul.mubr.msk.f32.vlgmr.msra.gmra.mxu1 %vm67_vm1, %v606_v36 }
 0x2d0   :  { %v488_v37 = vpop.permute.xlu0 %487  ;;  %3944 = vmatpush3.msra.mxu1 %v4585_v24  ;;  %3951 = vmatprep.mubr.msk.f32.mxu1 %vm4413_vm0, %v4412_v4 }
 0x2d1   :  { %491 = vst.msk [vmem:[#allocation4] sm:$0x3] %vm490_vm2, %v488_v37  ;;  %3919 = vmatmul.mubr.msk.f32.vlgmr.msra.gmra.mxu0 %vm67_vm1, %v488_v37  ;;  %3945 = vmatprep.subr.mxu1 %v4412_v4 }
 0x2d2   :  { %3933 = vmatpush3.msra.mxu0 %v4518_v8  ;;  %3946 = vmatpush3.msra.mxu1 %v4593_v25 }
 0x2d3   :  { %3934 = vmatprep.subr.mxu0 %v4412_v4  ;;  %3947 = vmatprep.subr.mxu1 %v4412_v4 }
 0x2d4   :  { %3935 = vmatpush3.msra.mxu0 %v4527_v10  ;;  %3948 = vmatpush3.msra.mxu1 %v4604_v27 }
 0x2d5   :  { %3936 = vmatprep.subr.mxu0 %v4412_v4  ;;  %3949 = vmatprep.subr.mxu1 %v4412_v4 }
 0x2d6   :  { %3937 = vmatpush3.msra.mxu0 %v4547_v15  ;;  %3950 = vmatpush3.msra.mxu1 %v4614_v28 }
 0x2d7   :  { %3938 = vmatprep.subr.mxu0 %v4412_v4  ;;  %3940 = vmatprep.mubr.msk.f32.mxu0 %vm4413_vm0, %v4412_v4 }
 0x2d8   :  { %3939 = vmatpush3.msra.mxu0 %v4571_v21  ;;  %3965 = vmatprep.subr.mxu1 %v4412_v4 }
 0x2d9   :  { %3954 = vmatprep.subr.mxu0 %v4412_v4 }
 0x38f   :  { %v675_v38 = vpop.f32.mrf.mxu1 }
 0x390   :  { %v680_v39 = vrot.slane %v675_v38, 4 }
 0x391   :  { %v569_v41 = vpop.f32.mrf.mxu0  ;;  %v3931_v42 = vpop.f32.mrf.mxu1 }
 0x392   :  { %v682_v43 = vadd.f32 %v680_v39, %v500_v40  ;;  %v574_v44 = vrot.slane %v569_v41, 6 }
 0x393   :  { %v3920_v46 = vpop.f32.mrf.mxu0 }
 0x394   :  { %4162 = vtanh.f32 %v682_v43  ;;  %v576_v47 = vadd.f32 %v574_v44, %v499_v45  ;;  %v3713_v50 = vmul.f32 -1.442695, %v682_v43 }
 0x396   :  { %4164 = vtanh.f32 %v576_v47  ;;  %v3711_v51 = vmul.f32 -1.442695, %v576_v47 }
 0x397   :  { %4166 = vpow2.f32 %v3713_v50 }
 0x398   :  { %4168 = vpow2.f32 %v3711_v51 }
 0x3a1   :  { %v4163_v48 = vpop.eup %4162 }
 0x3a2   :  { %695 = vrot.lane.b32.xlu1 %v4163_v48, %s4414_s5 }
 0x3a3   :  { %v4165_v49 = vpop.eup %4164 }
 0x3a4   :  { %589 = vrot.lane.b32.xlu0 %v4165_v49, %s4414_s5  ;;  %v4167_v52 = vpop.eup %4166 }
 0x3a5   :  { %v4169_v53 = vpop.eup %4168  ;;  %v686_v54 = vadd.f32 1.0, %v4167_v52 }
 0x3a6   :  { %v580_v55 = vadd.f32 1.0, %v4169_v53 }
 0x3a7   :  { %4170 = vrcp.f32 %v686_v54 }
 0x3a8   :  { %4172 = vrcp.f32 %v580_v55 }
 0x3b4   :  { %v4171_v56 = vpop.eup %4170 }
 0x3b5   :  { %v4173_v59 = vpop.eup %4172  ;;  %v693_v63 = vmul.f32 %v4171_v56, %v691_v62 }
 0x3b6   :  { %v587_v3 = vmul.f32 %v4173_v59, %v585_v0 }
 0x414   :  { %v696_v57 = vpop.permute.xlu1 %695 }
 0x415   :  { %v698_v58 = vmul.f32 %v4171_v56, %v696_v57 }
 0x416   :  { %v590_v60 = vpop.permute.xlu0 %589 }
 0x417   :  { %700 = vrot.lane.b32.xlu1 %v698_v58, %s4415_s8  ;;  %v592_v61 = vmul.f32 %v4173_v59, %v590_v60 }
 0x419   :  { %594 = vrot.lane.b32.xlu0 %v592_v61, %s4415_s8 }
 0x489   :  { %v701_v1 = vpop.permute.xlu1 %700 }
 0x48a   :  { %v4694_v2 = vadd.f32 %v701_v1, %v693_v63 }
 0x48b   :  { %v595_v5 = vpop.permute.xlu0 %594 }
 0x48c   :  { %4174 = vtanh.f32 %v4694_v2  ;;  %v4697_v6 = vadd.f32 %v595_v5, %v587_v3  ;;  %v919_v50 = vrot.slane %v4694_v2, 2  ;;  %v951_v5 = vld [vmem:[#allocation2 + $0x8] sm:$0x3] }
 0x48e   :  { %4176 = vtanh.f32 %v4697_v6  ;;  %v813_v52 = vrot.slane %v4697_v6, 6 }
 0x499   :  { %v4175_v7 = vpop.eup %4174 }
 0x49a   :  { %706 = vrot.lane.b32.xlu1 %v4175_v7, %s4414_s5 }
 0x49b   :  { %v4177_v9 = vpop.eup %4176 }
 0x49c   :  { %600 = vrot.lane.b32.xlu0 %v4177_v9, %s4414_s5 }
 0x50c   :  { %v707_v11 = vpop.permute.xlu1 %706 }
 0x50d   :  { %v4702_v12 = vmul.f32 %v4171_v56, %v707_v11 }
 0x50e   :  { %v601_v14 = vpop.permute.xlu0 %600 }
 0x50f   :  { %v832_v13 = vrot.slane %v4702_v12, 4  ;;  %v4705_v16 = vmul.f32 %v4173_v59, %v601_v14  ;;  %v950_v14 = vld [vmem:[#allocation2 + $0x10] sm:$0xc0] }
 0x511   :  { %833 = vrot.lane.b32.xlu1 %v832_v13, %s4415_s8  ;;  %v726_v17 = vrot.slane %v4705_v16, 2 }
 0x513   :  { %727 = vrot.lane.b32.xlu0 %v726_v17, %s4415_s8 }
 0x583   :  { %v834_v18 = vpop.permute.xlu1 %833 }
 0x584   :  { %3952 = vmatmul.mubr.msk.f32.vlgmr.msra.gmra.mxu1 %vm67_vm1, %v834_v18 }
 0x585   :  { %3966 = vmatpush3.msra.mxu1 %v4585_v24  ;;  %3973 = vmatprep.mubr.msk.f32.mxu1 %vm4413_vm0, %v4412_v4  ;;  %v728_v19 = vpop.permute.xlu0 %727 }
 0x586   :  { %3967 = vmatprep.subr.mxu1 %v4412_v4  ;;  %3941 = vmatmul.mubr.msk.f32.vlgmr.msra.gmra.mxu0 %vm67_vm1, %v728_v19 }
 0x587   :  { %3968 = vmatpush3.msra.mxu1 %v4593_v25  ;;  %3955 = vmatpush3.msra.mxu0 %v4518_v8 }
 0x588   :  { %3969 = vmatprep.subr.mxu1 %v4412_v4  ;;  %3956 = vmatprep.subr.mxu0 %v4412_v4 }
 0x589   :  { %3970 = vmatpush3.msra.mxu1 %v4604_v27  ;;  %3957 = vmatpush3.msra.mxu0 %v4527_v10 }
 0x58a   :  { %3971 = vmatprep.subr.mxu1 %v4412_v4  ;;  %3958 = vmatprep.subr.mxu0 %v4412_v4 }
 0x58b   :  { %3972 = vmatpush3.msra.mxu1 %v4614_v28  ;;  %3959 = vmatpush3.msra.mxu0 %v4547_v15 }
 0x58c   :  { %3962 = vmatprep.mubr.msk.f32.mxu0 %vm4413_vm0, %v4412_v4  ;;  %3960 = vmatprep.subr.mxu0 %v4412_v4 }
 0x58d   :  { %3987 = vmatprep.subr.mxu1 %v4412_v4  ;;  %3961 = vmatpush3.msra.mxu0 %v4571_v21 }
 0x58e   :  { %3976 = vmatprep.subr.mxu0 %v4412_v4 }
 0x644   :  { %v903_v20 = vpop.f32.mrf.mxu1 }
 0x645   :  { %v908_v22 = vrot.slane %v903_v20, 6 }
 0x646   :  { %v3953_v26 = vpop.f32.mrf.mxu1  ;;  %v797_v30 = vpop.f32.mrf.mxu0 }
 0x647   :  { %v910_v29 = vadd.f32 %v908_v22, %v725_v23  ;;  %v802_v31 = vrot.slane %v797_v30, 4 }
 0x648   :  { %v3942_v34 = vpop.f32.mrf.mxu0 }
 0x649   :  { %4178 = vtanh.f32 %v910_v29  ;;  %v804_v35 = vadd.f32 %v802_v31, %v724_v33  ;;  %v3717_v38 = vmul.f32 -1.442695, %v910_v29 }
 0x64b   :  { %4180 = vtanh.f32 %v804_v35  ;;  %v3715_v39 = vmul.f32 -1.442695, %v804_v35 }
 0x64c   :  { %4182 = vpow2.f32 %v3717_v38 }
 0x64d   :  { %4184 = vpow2.f32 %v3715_v39 }
 0x656   :  { %v4179_v36 = vpop.eup %4178 }
 0x657   :  { %923 = vrot.lane.b32.xlu1 %v4179_v36, %s4414_s5 }
 0x658   :  { %v4181_v37 = vpop.eup %4180 }
 0x659   :  { %817 = vrot.lane.b32.xlu0 %v4181_v37, %s4414_s5  ;;  %v4183_v40 = vpop.eup %4182 }
 0x65a   :  { %v4185_v41 = vpop.eup %4184  ;;  %v914_v42 = vadd.f32 1.0, %v4183_v40 }
 0x65b   :  { %v808_v43 = vadd.f32 1.0, %v4185_v41 }
 0x65c   :  { %4186 = vrcp.f32 %v914_v42 }
 0x65d   :  { %4188 = vrcp.f32 %v808_v43 }
 0x669   :  { %v4187_v44 = vpop.eup %4186 }
 0x66a   :  { %v4189_v47 = vpop.eup %4188  ;;  %v921_v51 = vmul.f32 %v4187_v44, %v919_v50 }
 0x66b   :  { %v815_v55 = vmul.f32 %v4189_v47, %v813_v52 }
 0x6c9   :  { %v924_v45 = vpop.permute.xlu1 %923 }
 0x6ca   :  { %v926_v46 = vmul.f32 %v4187_v44, %v924_v45 }
 0x6cb   :  { %v818_v48 = vpop.permute.xlu0 %817 }
 0x6cc   :  { %928 = vrot.lane.b32.xlu1 %v926_v46, %s4415_s8  ;;  %v820_v49 = vmul.f32 %v4189_v47, %v818_v48 }
 0x6ce   :  { %822 = vrot.lane.b32.xlu0 %v820_v49, %s4415_s8 }
 0x73e   :  { %v929_v53 = vpop.permute.xlu1 %928 }
 0x73f   :  { %v4738_v54 = vadd.f32 %v929_v53, %v921_v51 }
 0x740   :  { %v823_v56 = vpop.permute.xlu0 %822 }
 0x741   :  { %4190 = vtanh.f32 %v4738_v54  ;;  %v4741_v57 = vadd.f32 %v823_v56, %v815_v55  ;;  %v1142_v39 = vrot.slane %v4738_v54, 2 }
 0x743   :  { %4192 = vtanh.f32 %v4741_v57  ;;  %v1039_v43 = vrot.slane %v4741_v57, 6 }
 0x74e   :  { %v4191_v58 = vpop.eup %4190 }
 0x74f   :  { %934 = vrot.lane.b32.xlu1 %v4191_v58, %s4414_s5  ;;  %v1174_v58 = vld [vmem:[#allocation2] sm:$0xc0] }
 0x750   :  { %v4193_v59 = vpop.eup %4192 }
 0x751   :  { %828 = vrot.lane.b32.xlu0 %v4193_v59, %s4414_s5 }
 0x7c1   :  { %v935_v60 = vpop.permute.xlu1 %934 }
 0x7c2   :  { %v4746_v61 = vmul.f32 %v4187_v44, %v935_v60 }
 0x7c3   :  { %v829_v63 = vpop.permute.xlu0 %828 }
 0x7c4   :  { %v1058_v62 = vrot.slane %v4746_v61, 2  ;;  %v4749_v0 = vmul.f32 %v4189_v47, %v829_v63 }
 0x7c6   :  { %1059 = vrot.lane.b32.xlu1 %v1058_v62, %s4415_s8  ;;  %v952_v1 = vrot.slane %v4749_v0, 4  ;;  %v1173_v62 = vld [vmem:[#allocation2 + $0x18] sm:$0x3] }
 0x7c8   :  { %953 = vrot.lane.b32.xlu0 %v952_v1, %s4415_s8 }
 0x838   :  { %v1060_v2 = vpop.permute.xlu1 %1059 }
 0x839   :  { %3974 = vmatmul.mubr.msk.f32.vlgmr.msra.gmra.mxu1 %vm67_vm1, %v1060_v2 }
 0x83a   :  { %3988 = vmatpush3.msra.mxu1 %v4585_v24  ;;  %3995 = vmatprep.mubr.msk.f32.mxu1 %vm4413_vm0, %v4412_v4  ;;  %v954_v3 = vpop.permute.xlu0 %953 }
 0x83b   :  { %3989 = vmatprep.subr.mxu1 %v4412_v4  ;;  %3963 = vmatmul.mubr.msk.f32.vlgmr.msra.gmra.mxu0 %vm67_vm1, %v954_v3 }
 0x83c   :  { %3990 = vmatpush3.msra.mxu1 %v4593_v25  ;;  %3977 = vmatpush3.msra.mxu0 %v4518_v8 }
 0x83d   :  { %3991 = vmatprep.subr.mxu1 %v4412_v4  ;;  %3978 = vmatprep.subr.mxu0 %v4412_v4 }
 0x83e   :  { %3992 = vmatpush3.msra.mxu1 %v4604_v27  ;;  %3979 = vmatpush3.msra.mxu0 %v4527_v10 }
 0x83f   :  { %3993 = vmatprep.subr.mxu1 %v4412_v4  ;;  %3980 = vmatprep.subr.mxu0 %v4412_v4 }
 0x840   :  { %3994 = vmatpush3.msra.mxu1 %v4614_v28  ;;  %3981 = vmatpush3.msra.mxu0 %v4547_v15 }
 0x841   :  { %3984 = vmatprep.mubr.msk.f32.mxu0 %vm4413_vm0, %v4412_v4  ;;  %3982 = vmatprep.subr.mxu0 %v4412_v4 }
 0x842   :  { %4009 = vmatprep.subr.mxu1 %v4412_v4  ;;  %3983 = vmatpush3.msra.mxu0 %v4571_v21 }
 0x843   :  { %3998 = vmatprep.subr.mxu0 %v4412_v4 }
 0x8f9   :  { %v1129_v6 = vpop.f32.mrf.mxu1 }
 0x8fa   :  { %v1133_v7 = vadd.f32 %v1129_v6, %v951_v5 }
 0x8fb   :  { %v3975_v9 = vpop.f32.mrf.mxu1  ;;  %v1023_v11 = vpop.f32.mrf.mxu0 }
 0x8fc   :  { %4194 = vtanh.f32 %v1133_v7  ;;  %v1028_v13 = vrot.slane %v1023_v11, 2  ;;  %v3721_v22 = vmul.f32 -1.442695, %v1133_v7 }
 0x8fd   :  { %v3964_v17 = vpop.f32.mrf.mxu0 }
 0x8fe   :  { %v1030_v18 = vadd.f32 %v1028_v13, %v950_v14 }
 0x900   :  { %4196 = vtanh.f32 %v1030_v18  ;;  %v3719_v23 = vmul.f32 -1.442695, %v1030_v18 }
 0x901   :  { %4198 = vpow2.f32 %v3721_v22 }
 0x902   :  { %4200 = vpow2.f32 %v3719_v23 }
 0x909   :  { %v4195_v19 = vpop.eup %4194 }
 0x90a   :  { %1146 = vrot.lane.b32.xlu0 %v4195_v19, %s4414_s5 }
 0x90d   :  { %v4197_v20 = vpop.eup %4196 }
 0x90e   :  { %1043 = vrot.lane.b32.xlu1 %v4197_v20, %s4414_s5  ;;  %v4199_v26 = vpop.eup %4198 }
 0x90f   :  { %v1137_v29 = vadd.f32 1.0, %v4199_v26  ;;  %v4201_v30 = vpop.eup %4200 }
 0x910   :  { %v1034_v31 = vadd.f32 1.0, %v4201_v30 }
 0x911   :  { %4202 = vrcp.f32 %v1137_v29 }
 0x912   :  { %4204 = vrcp.f32 %v1034_v31 }
 0x91e   :  { %v4203_v33 = vpop.eup %4202 }
 0x91f   :  { %v4205_v36 = vpop.eup %4204  ;;  %v1144_v40 = vmul.f32 %v4203_v33, %v1142_v39 }
 0x920   :  { %v1041_v44 = vmul.f32 %v4205_v36, %v1039_v43 }
 0x97c   :  { %v1147_v34 = vpop.permute.xlu0 %1146 }
 0x97d   :  { %v1149_v35 = vmul.f32 %v4203_v33, %v1147_v34 }
 0x97f   :  { %1151 = vrot.lane.b32.xlu0 %v1149_v35, %s4415_s8 }
 0x980   :  { %v1044_v37 = vpop.permute.xlu1 %1043 }
 0x981   :  { %v1046_v38 = vmul.f32 %v4205_v36, %v1044_v37 }
 0x983   :  { %1048 = vrot.lane.b32.xlu1 %v1046_v38, %s4415_s8 }
 0x9f1   :  { %v1152_v41 = vpop.permute.xlu0 %1151 }
 0x9f2   :  { %v4781_v42 = vadd.f32 %v1152_v41, %v1144_v40 }
 0x9f4   :  { %4206 = vtanh.f32 %v4781_v42  ;;  %v1362_v26 = vrot.slane %v4781_v42, 2 }
 0x9f5   :  { %v1049_v45 = vpop.permute.xlu1 %1048 }
 0x9f6   :  { %v4785_v46 = vadd.f32 %v1049_v45, %v1041_v44 }
 0x9f8   :  { %4208 = vtanh.f32 %v4785_v46 }
 0xa01   :  { %v4207_v47 = vpop.eup %4206 }
 0xa02   :  { %1157 = vrot.lane.b32.xlu0 %v4207_v47, %s4414_s5 }
 0xa05   :  { %v4209_v48 = vpop.eup %4208 }
 0xa06   :  { %1054 = vrot.lane.b32.xlu1 %v4209_v48, %s4414_s5 }
 0xa74   :  { %v1158_v49 = vpop.permute.xlu0 %1157 }
 0xa75   :  { %v1160_v50 = vmul.f32 %v4203_v33, %v1158_v49  ;;  %v1259_v33 = vrot.slane %v4785_v46, 6 }
 0xa77   :  { %1168 = vrot.lane.b32.xlu0 %v1160_v50, %s4415_s8 }
 0xa78   :  { %v1055_v51 = vpop.permute.xlu1 %1054 }
 0xa79   :  { %v4791_v52 = vmul.f32 %v4205_v36, %v1055_v51 }
 0xa7b   :  { %v1175_v53 = vrot.slane %v4791_v52, 6 }
 0xa7d   :  { %1176 = vrot.lane.b32.xlu1 %v1175_v53, %s4415_s8 }
 0xae9   :  { %v1169_v54 = vpop.permute.xlu0 %1168 }
 0xaea   :  { %1172 = vst.msk [vmem:[#allocation5 + $0x8] sm:$0x3] %vm490_vm2, %v1169_v54  ;;  %3996 = vmatmul.mubr.msk.f32.vlgmr.msra.gmra.mxu1 %vm67_vm1, %v1169_v54 }
 0xaeb   :  { %4010 = vmatpush3.msra.mxu1 %v4585_v24  ;;  %4017 = vmatprep.mubr.msk.f32.mxu1 %vm4413_vm0, %v4412_v4 }
 0xaec   :  { %4011 = vmatprep.subr.mxu1 %v4412_v4 }
 0xaed   :  { %4012 = vmatpush3.msra.mxu1 %v4593_v25 }
 0xaee   :  { %4013 = vmatprep.subr.mxu1 %v4412_v4 }
 0xaef   :  { %4014 = vmatpush3.msra.mxu1 %v4604_v27  ;;  %v1177_v55 = vpop.permute.xlu1 %1176 }
 0xaf0   :  { %4015 = vmatprep.subr.mxu1 %v4412_v4  ;;  %3985 = vmatmul.mubr.msk.f32.vlgmr.msra.gmra.mxu0 %vm67_vm1, %v1177_v55 }
 0xaf1   :  { %4016 = vmatpush3.msra.mxu1 %v4614_v28  ;;  %3999 = vmatpush3.msra.mxu0 %v4518_v8 }
 0xaf2   :  { %4006 = vmatprep.mubr.msk.f32.mxu0 %vm4413_vm0, %v4412_v4  ;;  %4000 = vmatprep.subr.mxu0 %v4412_v4 }
 0xaf3   :  { %4031 = vmatprep.subr.mxu1 %v4412_v4  ;;  %4001 = vmatpush3.msra.mxu0 %v4527_v10 }
 0xaf4   :  { %4002 = vmatprep.subr.mxu0 %v4412_v4 }
 0xaf5   :  { %4003 = vmatpush3.msra.mxu0 %v4547_v15 }
 0xaf6   :  { %4004 = vmatprep.subr.mxu0 %v4412_v4 }
 0xaf7   :  { %4005 = vmatpush3.msra.mxu0 %v4571_v21 }
 0xaf8   :  { %4020 = vmatprep.subr.mxu0 %v4412_v4 }
 0xbaa   :  { %v1346_v56 = vpop.f32.mrf.mxu1 }
 0xbab   :  { %v1351_v57 = vrot.slane %v1346_v56, 2 }
 0xbac   :  { %v3997_v59 = vpop.f32.mrf.mxu1 }
 0xbad   :  { %v1353_v60 = vadd.f32 %v1351_v57, %v1174_v58 }
 0xbaf   :  { %4210 = vtanh.f32 %v1353_v60  ;;  %v3725_v6 = vmul.f32 -1.442695, %v1353_v60 }
 0xbb0   :  { %v1246_v63 = vpop.f32.mrf.mxu0 }
 0xbb1   :  { %v1250_v1 = vadd.f32 %v1246_v63, %v1173_v62 }
 0xbb2   :  { %v3986_v2 = vpop.f32.mrf.mxu0 }
 0xbb3   :  { %4212 = vtanh.f32 %v1250_v1  ;;  %v3723_v7 = vmul.f32 -1.442695, %v1250_v1 }
 0xbb4   :  { %4214 = vpow2.f32 %v3725_v6 }
 0xbb5   :  { %4216 = vpow2.f32 %v3723_v7 }
 0xbbc   :  { %v4211_v3 = vpop.eup %4210 }
 0xbbd   :  { %1366 = vrot.lane.b32.xlu0 %v4211_v3, %s4414_s5 }
 0xbc0   :  { %v4213_v5 = vpop.eup %4212 }
 0xbc1   :  { %1263 = vrot.lane.b32.xlu1 %v4213_v5, %s4414_s5  ;;  %v4215_v9 = vpop.eup %4214 }
 0xbc2   :  { %v1357_v11 = vadd.f32 1.0, %v4215_v9  ;;  %v4217_v13 = vpop.eup %4216 }
 0xbc3   :  { %v1254_v14 = vadd.f32 1.0, %v4217_v13 }
 0xbc4   :  { %4218 = vrcp.f32 %v1357_v11 }
 0xbc5   :  { %4220 = vrcp.f32 %v1254_v14 }
 0xbd1   :  { %v4219_v17 = vpop.eup %4218 }
 0xbd2   :  { %v4221_v20 = vpop.eup %4220  ;;  %v1364_v29 = vmul.f32 %v4219_v17, %v1362_v26 }
 0xbd3   :  { %v1261_v34 = vmul.f32 %v4221_v20, %v1259_v33  ;;  %v4384_v33 = vld [vmem:[%s5456_s3 + $0x18] sm:$0xff] }
 0xc2f   :  { %v1367_v18 = vpop.permute.xlu0 %1366 }
 0xc30   :  { %v1369_v19 = vmul.f32 %v4219_v17, %v1367_v18 }
 0xc32   :  { %1371 = vrot.lane.b32.xlu0 %v1369_v19, %s4415_s8 }
 0xc33   :  { %v1264_v22 = vpop.permute.xlu1 %1263 }
 0xc34   :  { %v1266_v23 = vmul.f32 %v4221_v20, %v1264_v22 }
 0xc36   :  { %1268 = vrot.lane.b32.xlu1 %v1266_v23, %s4415_s8 }
 0xca4   :  { %v1372_v30 = vpop.permute.xlu0 %1371 }
 0xca5   :  { %v4823_v31 = vadd.f32 %v1372_v30, %v1364_v29  ;;  %v4382_v29 = vld [vmem:[%s5457_s4 + $0x18] sm:$0xff] }
 0xca7   :  { %4222 = vtanh.f32 %v4823_v31  ;;  %v1585_v1 = vrot.slane %v4823_v31, 2  ;;  %v4383_v31 = vld [vmem:[%s5457_s4 + $0x10] sm:$0xff] }
 0xca8   :  { %v1269_v35 = vpop.permute.xlu1 %1268 }
 0xca9   :  { %v4827_v36 = vadd.f32 %v1269_v35, %v1261_v34  ;;  %v4385_v34 = vld [vmem:[%s5457_s4 + $0x8] sm:$0xff]  ;;  %v4386_v35 = vld [vmem:[%s5456_s3 + $0x10] sm:$0xff] }
 0xcab   :  { %4224 = vtanh.f32 %v4827_v36  ;;  %v1479_v3 = vrot.slane %v4827_v36, 6  ;;  %v4387_v36 = vld [vmem:[%s5457_s4] sm:$0xff] }
 0xcb4   :  { %v4223_v37 = vpop.eup %4222 }
 0xcb5   :  { %1377 = vrot.lane.b32.xlu0 %v4223_v37, %s4414_s5  ;;  %v4388_v37 = vld [vmem:[%s5456_s3 + $0x8] sm:$0xff] }
 0xcb8   :  { %v4225_v38 = vpop.eup %4224 }
 0xcb9   :  { %1274 = vrot.lane.b32.xlu1 %v4225_v38, %s4414_s5  ;;  %v4389_v38 = vld [vmem:[%s5456_s3] sm:$0xff] }
 0xd27   :  { %v1378_v39 = vpop.permute.xlu0 %1377 }
 0xd28   :  { %v4832_v40 = vmul.f32 %v4219_v17, %v1378_v39 }
 0xd2a   :  { %v1498_v41 = vrot.slane %v4832_v40, 6 }
 0xd2b   :  { %v1275_v42 = vpop.permute.xlu1 %1274 }
 0xd2c   :  { %1499 = vrot.lane.b32.xlu1 %v1498_v41, %s4415_s8  ;;  %v1277_v43 = vmul.f32 %v4221_v20, %v1275_v42  ;;  %v1617_v42 = vld [vmem:[#allocation2] sm:$0xc] }
 0xd2e   :  { %1382 = vrot.lane.b32.xlu0 %v1277_v43, %s4415_s8 }
 0xd9e   :  { %v1500_v44 = vpop.permute.xlu1 %1499 }
 0xd9f   :  { %4018 = vmatmul.mubr.msk.f32.vlgmr.msra.gmra.mxu1 %vm67_vm1, %v1500_v44 }
 0xda0   :  { %4032 = vmatpush3.msra.mxu1 %v4585_v24  ;;  %4039 = vmatprep.mubr.msk.f32.mxu1 %vm4413_vm0, %v4412_v4  ;;  %v1383_v45 = vpop.permute.xlu0 %1382  ;;  %v1394_v24 = vld [vmem:[#allocation2] sm:$0x30] }
 0xda1   :  { %4033 = vmatprep.subr.mxu1 %v4412_v4  ;;  %1386 = vst.msk [vmem:[#allocation4 + $0x8] sm:$0x3] %vm490_vm2, %v1383_v45  ;;  %4007 = vmatmul.mubr.msk.f32.vlgmr.msra.gmra.mxu0 %vm67_vm1, %v1383_v45 }
 0xda2   :  { %4034 = vmatpush3.msra.mxu1 %v4593_v25  ;;  %4021 = vmatpush3.msra.mxu0 %v4518_v8 }
 0xda3   :  { %4035 = vmatprep.subr.mxu1 %v4412_v4  ;;  %4022 = vmatprep.subr.mxu0 %v4412_v4 }
 0xda4   :  { %4036 = vmatpush3.msra.mxu1 %v4604_v27  ;;  %4023 = vmatpush3.msra.mxu0 %v4527_v10 }
 0xda5   :  { %4037 = vmatprep.subr.mxu1 %v4412_v4  ;;  %4024 = vmatprep.subr.mxu0 %v4412_v4 }
 0xda6   :  { %4038 = vmatpush3.msra.mxu1 %v4614_v28  ;;  %4025 = vmatpush3.msra.mxu0 %v4547_v15  ;;  %v1393_v15 = vld [vmem:[#allocation2 + $0x18] sm:$0xc] }
 0xda7   :  { %4028 = vmatprep.mubr.msk.f32.mxu0 %vm4413_vm0, %v4412_v4  ;;  %4026 = vmatprep.subr.mxu0 %v4412_v4 }
 0xda8   :  { %4053 = vmatprep.subr.mxu1 %v4412_v4  ;;  %4027 = vmatpush3.msra.mxu0 %v4571_v21 }
 0xda9   :  { %4042 = vmatprep.subr.mxu0 %v4412_v4 }
 0xe5f   :  { %v1569_v8 = vpop.f32.mrf.mxu1 }
 0xe60   :  { %v1574_v10 = vrot.slane %v1569_v8, 4 }
 0xe61   :  { %v4019_v25 = vpop.f32.mrf.mxu1  ;;  %v1463_v46 = vpop.f32.mrf.mxu0 }
 0xe62   :  { %v1576_v27 = vadd.f32 %v1574_v10, %v1394_v24  ;;  %v1468_v28 = vrot.slane %v1463_v46, 6  ;;  %v1616_v10 = vld [vmem:[#allocation2 + $0x18] sm:$0x30] }
 0xe63   :  { %v4008_v47 = vpop.f32.mrf.mxu0 }
 0xe64   :  { %4226 = vtanh.f32 %v1576_v27  ;;  %v1470_v48 = vadd.f32 %v1468_v28, %v1393_v15  ;;  %v3729_v21 = vmul.f32 -1.442695, %v1576_v27 }
 0xe66   :  { %4228 = vtanh.f32 %v1470_v48  ;;  %v3727_v51 = vmul.f32 -1.442695, %v1470_v48 }
 0xe67   :  { %4230 = vpow2.f32 %v3729_v21 }
 0xe68   :  { %4232 = vpow2.f32 %v3727_v51 }
 0xe71   :  { %v4227_v49 = vpop.eup %4226 }
 0xe72   :  { %1589 = vrot.lane.b32.xlu1 %v4227_v49, %s4414_s5 }
 0xe73   :  { %v4229_v50 = vpop.eup %4228 }
 0xe74   :  { %1483 = vrot.lane.b32.xlu0 %v4229_v50, %s4414_s5  ;;  %v4231_v53 = vpop.eup %4230 }
 0xe75   :  { %v4233_v54 = vpop.eup %4232  ;;  %v1580_v55 = vadd.f32 1.0, %v4231_v53 }
 0xe76   :  { %v1474_v56 = vadd.f32 1.0, %v4233_v54 }
 0xe77   :  { %4234 = vrcp.f32 %v1580_v55 }
 0xe78   :  { %4236 = vrcp.f32 %v1474_v56 }
 0xe84   :  { %v4235_v57 = vpop.eup %4234 }
 0xe85   :  { %v4237_v60 = vpop.eup %4236  ;;  %v1587_v2 = vmul.f32 %v4235_v57, %v1585_v1 }
 0xe86   :  { %v1481_v7 = vmul.f32 %v4237_v60, %v1479_v3 }
 0xee4   :  { %v1590_v58 = vpop.permute.xlu1 %1589 }
 0xee5   :  { %v1592_v59 = vmul.f32 %v4235_v57, %v1590_v58 }
 0xee6   :  { %v1484_v62 = vpop.permute.xlu0 %1483 }
 0xee7   :  { %1594 = vrot.lane.b32.xlu1 %v1592_v59, %s4415_s8  ;;  %v1486_v63 = vmul.f32 %v4237_v60, %v1484_v62 }
 0xee9   :  { %1488 = vrot.lane.b32.xlu0 %v1486_v63, %s4415_s8 }
 0xf59   :  { %v1595_v5 = vpop.permute.xlu1 %1594 }
 0xf5a   :  { %v4866_v6 = vadd.f32 %v1595_v5, %v1587_v2 }
 0xf5b   :  { %v1489_v9 = vpop.permute.xlu0 %1488 }
 0xf5c   :  { %4238 = vtanh.f32 %v4866_v6  ;;  %v4869_v11 = vadd.f32 %v1489_v9, %v1481_v7 }
 0xf5e   :  { %4240 = vtanh.f32 %v4869_v11  ;;  %v1705_v59 = vrot.slane %v4869_v11, 6 }
 0xf69   :  { %v4239_v13 = vpop.eup %4238 }
 0xf6a   :  { %1600 = vrot.lane.b32.xlu1 %v4239_v13, %s4414_s5 }
 0xf6b   :  { %v4241_v14 = vpop.eup %4240 }
 0xf6c   :  { %1494 = vrot.lane.b32.xlu0 %v4241_v14, %s4414_s5 }
 0xfdc   :  { %v1601_v17 = vpop.permute.xlu1 %1600 }
 0xfdd   :  { %v4874_v18 = vmul.f32 %v4235_v57, %v1601_v17  ;;  %v1811_v57 = vrot.slane %v4866_v6, 2 }
 0xfde   :  { %v1495_v20 = vpop.permute.xlu0 %1494 }
 0xfdf   :  { %v1724_v19 = vrot.slane %v4874_v18, 4  ;;  %v4877_v22 = vmul.f32 %v4237_v60, %v1495_v20  ;;  %v1843_v20 = vld [vmem:[#allocation2] sm:$0x3] }
 0xfe1   :  { %1725 = vrot.lane.b32.xlu1 %v1724_v19, %s4415_s8  ;;  %v1618_v23 = vrot.slane %v4877_v22, 2 }
 0xfe3   :  { %1619 = vrot.lane.b32.xlu0 %v1618_v23, %s4415_s8 }
0x1053   :  { %v1726_v26 = vpop.permute.xlu1 %1725 }
0x1054   :  { %4040 = vmatmul.mubr.msk.f32.vlgmr.msra.gmra.mxu1 %vm67_vm1, %v1726_v26 }
0x1055   :  { %4054 = vmatpush3.msra.mxu1 %v4382_v29  ;;  %4061 = vmatprep.mubr.msk.f32.mxu1 %vm4413_vm0, %v4412_v4  ;;  %v1620_v30 = vpop.permute.xlu0 %1619 }
0x1056   :  { %4055 = vmatprep.subr.mxu1 %v4412_v4  ;;  %4029 = vmatmul.mubr.msk.f32.vlgmr.msra.gmra.mxu0 %vm67_vm1, %v1620_v30 }
0x1057   :  { %4056 = vmatpush3.msra.mxu1 %v4383_v31  ;;  %4043 = vmatpush3.msra.mxu0 %v4384_v33  ;;  %v1842_v33 = vld [vmem:[#allocation2 + $0x18] sm:$0xc0] }
0x1058   :  { %4057 = vmatprep.subr.mxu1 %v4412_v4  ;;  %4044 = vmatprep.subr.mxu0 %v4412_v4 }
0x1059   :  { %4058 = vmatpush3.msra.mxu1 %v4385_v34  ;;  %4045 = vmatpush3.msra.mxu0 %v4386_v35 }
0x105a   :  { %4059 = vmatprep.subr.mxu1 %v4412_v4  ;;  %4046 = vmatprep.subr.mxu0 %v4412_v4 }
0x105b   :  { %4060 = vmatpush3.msra.mxu1 %v4387_v36  ;;  %4047 = vmatpush3.msra.mxu0 %v4388_v37 }
0x105c   :  { %4050 = vmatprep.mubr.msk.f32.mxu0 %vm4413_vm0, %v4412_v4  ;;  %4048 = vmatprep.subr.mxu0 %v4412_v4 }
0x105d   :  { %4049 = vmatpush3.msra.mxu0 %v4389_v38 }
0x1114   :  { %v1795_v39 = vpop.f32.mrf.mxu1 }
0x1115   :  { %v1800_v41 = vrot.slane %v1795_v39, 6 }
0x1116   :  { %v4041_v43 = vpop.f32.mrf.mxu1  ;;  %v1689_v45 = vpop.f32.mrf.mxu0 }
0x1117   :  { %v1802_v44 = vadd.f32 %v1800_v41, %v1617_v42  ;;  %v1694_v8 = vrot.slane %v1689_v45, 4 }
0x1118   :  { %v4030_v24 = vpop.f32.mrf.mxu0 }
0x1119   :  { %4242 = vtanh.f32 %v1802_v44  ;;  %v1696_v25 = vadd.f32 %v1694_v8, %v1616_v10  ;;  %v3733_v28 = vmul.f32 -1.442695, %v1802_v44 }
0x111b   :  { %4244 = vtanh.f32 %v1696_v25  ;;  %v3731_v15 = vmul.f32 -1.442695, %v1696_v25 }
0x111c   :  { %4246 = vpow2.f32 %v3733_v28 }
0x111d   :  { %4248 = vpow2.f32 %v3731_v15 }
0x1126   :  { %v4243_v27 = vpop.eup %4242 }
0x1127   :  { %1815 = vrot.lane.b32.xlu1 %v4243_v27, %s4414_s5 }
0x1128   :  { %v4245_v46 = vpop.eup %4244 }
0x1129   :  { %1709 = vrot.lane.b32.xlu0 %v4245_v46, %s4414_s5  ;;  %v4247_v47 = vpop.eup %4246 }
0x112a   :  { %v4249_v48 = vpop.eup %4248  ;;  %v1806_v49 = vadd.f32 1.0, %v4247_v47 }
0x112b   :  { %v1700_v50 = vadd.f32 1.0, %v4249_v48 }
0x112c   :  { %4250 = vrcp.f32 %v1806_v49 }
0x112d   :  { %4252 = vrcp.f32 %v1700_v50 }
0x1139   :  { %v4251_v21 = vpop.eup %4250 }
0x113a   :  { %v4253_v54 = vpop.eup %4252  ;;  %v1813_v58 = vmul.f32 %v4251_v21, %v1811_v57  ;;  %v4983_v57 = vld [vmem:[%s5460_s7 + $0x58] sm:$0xff] }
0x113b   :  { %v1707_v63 = vmul.f32 %v4253_v54, %v1705_v59  ;;  %v4996_v59 = vld [vmem:[%s5460_s7 + $0x48] sm:$0xff] }
0x1199   :  { %v1816_v51 = vpop.permute.xlu1 %1815 }
0x119a   :  { %v1818_v53 = vmul.f32 %v4251_v21, %v1816_v51  ;;  %v4959_v51 = vld [vmem:[%s5460_s7 + $0x78] sm:$0xff] }
0x119b   :  { %v1710_v55 = vpop.permute.xlu0 %1709  ;;  %2100 = vmatprep.subr.mxu0 %v4959_v51  ;;  %2210 = vmatprep.subr.mxu1 %v4959_v51 }
0x119c   :  { %1820 = vrot.lane.b32.xlu1 %v1818_v53, %s4415_s8  ;;  %v1712_v56 = vmul.f32 %v4253_v54, %v1710_v55  ;;  %v4964_v53 = vld [vmem:[%s5460_s7 + $0x70] sm:$0xff] }
0x119e   :  { %1714 = vrot.lane.b32.xlu0 %v1712_v56, %s4415_s8  ;;  %v4975_v56 = vld [vmem:[%s5460_s7 + $0x60] sm:$0xff] }
0x120e   :  { %v1821_v60 = vpop.permute.xlu1 %1820 }
0x120f   :  { %v1823_v62 = vadd.f32 %v1821_v60, %v1813_v58  ;;  %v4989_v58 = vld [vmem:[%s5460_s7 + $0x50] sm:$0xff]  ;;  %v5003_v60 = vld [vmem:[%s5460_s7 + $0x40] sm:$0xff] }
0x1210   :  { %v1715_v1 = vpop.permute.xlu0 %1714 }
0x1211   :  { %4254 = vtanh.f32 %v1823_v62  ;;  %v1717_v2 = vadd.f32 %v1715_v1, %v1707_v63  ;;  %v2034_v46 = vrot.slane %v1823_v62, 2  ;;  %v5010_v63 = vld [vmem:[%s5460_s7 + $0x38] sm:$0xff]  ;;  %v5018_v1 = vld [vmem:[%s5460_s7 + $0x30] sm:$0xff] }
0x1213   :  { %4256 = vtanh.f32 %v1717_v2  ;;  %v1931_v48 = vrot.slane %v1717_v2, 6  ;;  %v5024_v2 = vld [vmem:[%s5460_s7 + $0x28] sm:$0xff] }
0x121e   :  { %v4255_v3 = vpop.eup %4254 }
0x121f   :  { %1826 = vrot.lane.b32.xlu1 %v4255_v3, %s4414_s5  ;;  %v5038_v3 = vld [vmem:[%s5460_s7 + $0x20] sm:$0xff] }
0x1220   :  { %v4257_v5 = vpop.eup %4256 }
0x1221   :  { %1720 = vrot.lane.b32.xlu0 %v4257_v5, %s4414_s5  ;;  %v5043_v5 = vld [vmem:[%s5460_s7 + $0x18] sm:$0xff] }
0x1291   :  { %v1827_v7 = vpop.permute.xlu1 %1826 }
0x1292   :  { %v4926_v9 = vmul.f32 %v4251_v21, %v1827_v7  ;;  %v5052_v7 = vld [vmem:[%s5460_s7 + $0x10] sm:$0xff] }
0x1293   :  { %v1721_v13 = vpop.permute.xlu0 %1720 }
0x1294   :  { %v1950_v6 = vrot.slane %v4926_v9, 2  ;;  %v4929_v11 = vmul.f32 %v4253_v54, %v1721_v13  ;;  %v4969_v54 = vld [vmem:[%s5460_s7 + $0x68] sm:$0xff]  ;;  %v5065_v13 = vld [vmem:[%s5460_s7] sm:$0xff] }
0x1296   :  { %1951 = vrot.lane.b32.xlu1 %v1950_v6, %s4415_s8  ;;  %v1844_v14 = vrot.slane %v4929_v11, 4  ;;  %v5058_v6 = vld [vmem:[%s5460_s7 + $0x8] sm:$0xff]  ;;  %s4416_s7 = smov 96  }
0x1298   :  { %1845 = vrot.lane.b32.xlu0 %v1844_v14, %s4415_s8 }
0x1308   :  { %v1952_v17 = vpop.permute.xlu1 %1951 }
0x1309   :  { %4062 = vmatmul.mubr.msk.f32.vlgmr.msra.gmra.mxu1 %vm67_vm1, %v1952_v17 }
0x130a   :  { %2258 = vmatprep.mubr.f32.mxu1 %v4412_v4  ;;  %v1846_v19 = vpop.permute.xlu0 %1845  ;;  %2211 = vmatpush1.msra.mxu1 %v4964_v53 }
0x130b   :  { %4051 = vmatmul.mubr.msk.f32.vlgmr.msra.gmra.mxu0 %vm67_vm1, %v1846_v19  ;;  %2212 = vmatprep.subr.mxu1 %v4969_v54 }
0x130c   :  { %2148 = vmatprep.mubr.f32.mxu0 %v4412_v4  ;;  %2101 = vmatpush1.msra.mxu0 %v4964_v53 }
0x130d   :  { %2102 = vmatprep.subr.mxu0 %v4969_v54  ;;  %2213 = vmatpush1.msra.mxu1 %v4975_v56 }
0x130e   :  { %2103 = vmatpush1.msra.mxu0 %v4975_v56  ;;  %2214 = vmatprep.subr.mxu1 %v4983_v57 }
0x130f   :  { %2104 = vmatprep.subr.mxu0 %v4983_v57  ;;  %2215 = vmatpush1.msra.mxu1 %v4989_v58 }
0x1310   :  { %2105 = vmatpush1.msra.mxu0 %v4989_v58  ;;  %2216 = vmatprep.subr.mxu1 %v4996_v59 }
0x1311   :  { %2106 = vmatprep.subr.mxu0 %v4996_v59  ;;  %2217 = vmatpush1.msra.mxu1 %v5003_v60 }
0x1312   :  { %2107 = vmatpush1.msra.mxu0 %v5003_v60  ;;  %2218 = vmatprep.subr.mxu1 %v5010_v63 }
0x1313   :  { %2108 = vmatprep.subr.mxu0 %v5010_v63  ;;  %2219 = vmatpush1.msra.mxu1 %v5018_v1 }
0x1314   :  { %2109 = vmatpush1.msra.mxu0 %v5018_v1  ;;  %2220 = vmatprep.subr.mxu1 %v5024_v2 }
0x1315   :  { %2110 = vmatprep.subr.mxu0 %v5024_v2  ;;  %2221 = vmatpush1.msra.mxu1 %v5038_v3 }
0x1316   :  { %2111 = vmatpush1.msra.mxu0 %v5038_v3  ;;  %2222 = vmatprep.subr.mxu1 %v5043_v5 }
0x1317   :  { %2112 = vmatprep.subr.mxu0 %v5043_v5  ;;  %2223 = vmatpush1.msra.mxu1 %v5052_v7 }
0x1318   :  { %2113 = vmatpush1.msra.mxu0 %v5052_v7  ;;  %2224 = vmatprep.subr.mxu1 %v5058_v6 }
0x1319   :  { %2114 = vmatprep.subr.mxu0 %v5058_v6  ;;  %2225 = vmatpush1.msra.mxu1 %v5065_v13 }
0x131a   :  { %2115 = vmatpush1.msra.mxu0 %v5065_v13  ;;  %2446 = vmatprep.subr.mxu1 %v4959_v51 }
0x131b   :  { %2328 = vmatprep.subr.mxu0 %v4959_v51 }
0x13c9   :  { %v2021_v23 = vpop.f32.mrf.mxu1 }
0x13ca   :  { %v2025_v26 = vadd.f32 %v2021_v23, %v1843_v20 }
0x13cb   :  { %v4063_v29 = vpop.f32.mrf.mxu1  ;;  %v1915_v30 = vpop.f32.mrf.mxu0 }
0x13cc   :  { %4258 = vtanh.f32 %v2025_v26  ;;  %v1920_v31 = vrot.slane %v1915_v30, 2  ;;  %v3737_v38 = vmul.f32 -1.442695, %v2025_v26 }
0x13cd   :  { %v4052_v34 = vpop.f32.mrf.mxu0 }
0x13ce   :  { %v1922_v35 = vadd.f32 %v1920_v31, %v1842_v33 }
0x13d0   :  { %4260 = vtanh.f32 %v1922_v35  ;;  %v3735_v39 = vmul.f32 -1.442695, %v1922_v35 }
0x13d1   :  { %4262 = vpow2.f32 %v3737_v38 }
0x13d2   :  { %4264 = vpow2.f32 %v3735_v39 }
0x13d9   :  { %v4259_v36 = vpop.eup %4258 }
0x13da   :  { %2038 = vrot.lane.b32.xlu0 %v4259_v36, %s4414_s5 }
0x13dd   :  { %v4261_v37 = vpop.eup %4260 }
0x13de   :  { %1935 = vrot.lane.b32.xlu1 %v4261_v37, %s4414_s5  ;;  %v4263_v41 = vpop.eup %4262  ;;  %v2077_v37 = vld [vmem:[#allocation3] sm:$0x3] }
0x13df   :  { %v2029_v42 = vadd.f32 1.0, %v4263_v41  ;;  %v4265_v43 = vpop.eup %4264 }
0x13e0   :  { %v1926_v44 = vadd.f32 1.0, %v4265_v43  ;;  %v2078_v43 = vld [vmem:[#allocation3 + $0x18] sm:$0x3] }
0x13e1   :  { %4266 = vrcp.f32 %v2029_v42 }
0x13e2   :  { %4268 = vrcp.f32 %v1926_v44 }
0x13ee   :  { %v4940_v45 = vpop.eup %4266 }
0x13ef   :  { %v4944_v24 = vpop.eup %4268  ;;  %v2036_v28 = vmul.f32 %v4940_v45, %v2034_v46 }
0x13f0   :  { %v1933_v49 = vmul.f32 %v4944_v24, %v1931_v48 }
0x144c   :  { %v2039_v8 = vpop.permute.xlu0 %2038 }
0x144d   :  { %v2041_v10 = vmul.f32 %v4940_v45, %v2039_v8 }
0x144f   :  { %2043 = vrot.lane.b32.xlu0 %v2041_v10, %s4415_s8 }
0x1450   :  { %v1936_v25 = vpop.permute.xlu1 %1935 }
0x1451   :  { %v1938_v27 = vmul.f32 %v4944_v24, %v1936_v25 }
0x1453   :  { %1940 = vrot.lane.b32.xlu1 %v1938_v27, %s4415_s8 }
0x14c1   :  { %v2044_v15 = vpop.permute.xlu0 %2043 }
0x14c2   :  { %v4949_v47 = vadd.f32 %v2044_v15, %v2036_v28 }
0x14c4   :  { %4270 = vtanh.f32 %v4949_v47  ;;  %v2074_v33 = vrot.slane %v4949_v47, 2 }
0x14c5   :  { %v1941_v50 = vpop.permute.xlu1 %1940 }
0x14c6   :  { %v4953_v21 = vadd.f32 %v1941_v50, %v1933_v49 }
0x14c8   :  { %4272 = vtanh.f32 %v4953_v21 }
0x14d1   :  { %v4271_v55 = vpop.eup %4270 }
0x14d2   :  { %2049 = vrot.lane.b32.xlu0 %v4271_v55, %s4414_s5 }
0x14d5   :  { %v4273_v62 = vpop.eup %4272 }
0x14d6   :  { %1946 = vrot.lane.b32.xlu1 %v4273_v62, %s4414_s5 }
0x1544   :  { %v2050_v14 = vpop.permute.xlu0 %2049 }
0x1545   :  { %v5073_v17 = vmul.f32 %v4940_v45, %v2050_v14 }
0x1547   :  { %v2064_v19 = vrot.slane %v5073_v17, 2 }
0x1548   :  { %v1947_v20 = vpop.permute.xlu1 %1946 }
0x1549   :  { %2065 = vrot.lane.b32.xlu1 %v2064_v19, %s4414_s5  ;;  %v1949_v23 = vmul.f32 %v4944_v24, %v1947_v20  ;;  %v2190_v20 = vld [vmem:[#allocation3] sm:$0xc] }
0x154b   :  { %2054 = vrot.lane.b32.xlu0 %v1949_v23, %s4415_s8 }
0x154f   :  { %2070 = vrot.lane.b32.xlu0 %v4953_v21, %s4416_s7  ;;  %s4417_s7 = smov [#allocation7]  }
0x15bb   :  { %v2066_v26 = vpop.permute.xlu1 %2065 }
0x15bd   :  { %v2055_v29 = vpop.permute.xlu0 %2054 }
0x15be   :  { %2058 = vst.msk [vmem:[#allocation4 + $0x8] sm:$0xc0] %vm497_vm3, %v2055_v29  ;;  %v2068_v30 = vsel %vm67_vm1, %v2055_v29, %v2066_v26 }
0x15bf   :  { %v2080_v31 = vrot.slane %v2068_v30, 6 }
0x15c1   :  { %3738 = vmatmul.mubr.msk.f32.vlgmr.msra.gmra.mxu0 %vm2081_vm4, %v2080_v31  ;;  %v2071_v34 = vpop.permute.xlu0 %2070  ;;  %v2191_v31 = vld [vmem:[#allocation3 + $0x18] sm:$0xc] }
0x15c2   :  { %v2076_v35 = vsel %vm67_vm1, %v2071_v34, %v2074_v33  ;;  %2329 = vmatpush1.msra.mxu0 %v4964_v53  ;;  %2376 = vmatprep.mubr.f32.mxu0 %v4412_v4 }
0x15c3   :  { %v2171_v36 = vrot.slane %v2076_v35, 6  ;;  %2330 = vmatprep.subr.mxu0 %v4969_v54 }
0x15c4   :  { %2331 = vmatpush1.msra.mxu0 %v4975_v56 }
0x15c5   :  { %2172 = vrot.lane.b32.xlu1 %v2171_v36, %s4414_s5  ;;  %2332 = vmatprep.subr.mxu0 %v4983_v57 }
0x15c6   :  { %2333 = vmatpush1.msra.mxu0 %v4989_v58 }
0x15c7   :  { %2334 = vmatprep.subr.mxu0 %v4996_v59 }
0x15c8   :  { %2335 = vmatpush1.msra.mxu0 %v5003_v60 }
0x15c9   :  { %2336 = vmatprep.subr.mxu0 %v5010_v63 }
0x15ca   :  { %2337 = vmatpush1.msra.mxu0 %v5018_v1 }
0x15cb   :  { %2338 = vmatprep.subr.mxu0 %v5024_v2 }
0x15cc   :  { %2339 = vmatpush1.msra.mxu0 %v5038_v3 }
0x15cd   :  { %2340 = vmatprep.subr.mxu0 %v5043_v5 }
0x15ce   :  { %2341 = vmatpush1.msra.mxu0 %v5052_v7 }
0x15cf   :  { %2342 = vmatprep.subr.mxu0 %v5058_v6 }
0x15d0   :  { %2343 = vmatpush1.msra.mxu0 %v5065_v13 }
0x15d1   :  { %2564 = vmatprep.subr.mxu0 %v4959_v51 }
0x1637   :  { %v2173_v28 = vpop.permute.xlu1 %2172 }
0x1681   :  { %v2150_v38 = vpop.f32.mrf.mxu0 }
0x1682   :  { %v2155_v39 = vadd.f32 %v2150_v38, %v2077_v37 }
0x1683   :  { %v2152_v42 = vpop.f32.mrf.mxu0 }
0x1684   :  { %v3739_v41 = vmul.f32 -1.442695, %v2155_v39  ;;  %v2156_v44 = vadd.f32 %v2152_v42, %v2078_v43 }
0x1686   :  { %4274 = vpow2.f32 %v3739_v41  ;;  %v3740_v27 = vmul.f32 -1.442695, %v2156_v44 }
0x1687   :  { %4276 = vtanh.f32 %v2156_v44 }
0x1693   :  { %v4275_v45 = vpop.eup %4274 }
0x1694   :  { %v2160_v8 = vadd.f32 1.0, %v4275_v45  ;;  %v4277_v10 = vpop.eup %4276 }
0x1696   :  { %4278 = vrcp.f32 %v2160_v8 }
0x1697   :  { %4280 = vpow2.f32 %v3740_v27 }
0x16a3   :  { %v4279_v24 = vpop.eup %4278 }
0x16a4   :  { %v2176_v25 = vmul.f32 %v4279_v24, %v4277_v10  ;;  %v4281_v46 = vpop.eup %4280  ;;  %v2175_v47 = vmul.f32 %v4279_v24, %v2173_v28 }
0x16a5   :  { %v2167_v15 = vadd.f32 1.0, %v4281_v46 }
0x16a6   :  { %2178 = vrot.lane.b32.xlu0 %v2176_v25, %s4414_s5 }
0x16a7   :  { %4282 = vrcp.f32 %v2167_v15 }
0x16b4   :  { %v4283_v50 = vpop.eup %4282 }
0x1718   :  { %v2179_v48 = vpop.permute.xlu0 %2178 }
0x1719   :  { %v2181_v49 = vadd.f32 %v2179_v48, %v2175_v47  ;;  %v2305_v47 = vld [vmem:[#allocation3] sm:$0x30] }
0x171b   :  { %4284 = vtanh.f32 %v2181_v49  ;;  %v2287_v37 = vrot.slane %v2181_v49, 6 }
0x1728   :  { %v4285_v21 = vpop.eup %4284 }
0x1729   :  { %v2183_v55 = vmul.f32 %v4285_v21, %v4283_v50 }
0x172b   :  { %2185 = vrot.lane.b32.xlu1 %v2183_v55, %s4414_s5  ;;  %v2306_v55 = vld [vmem:[#allocation3 + $0x18] sm:$0x30] }
0x179d   :  { %v2186_v62 = vpop.permute.xlu1 %2185 }
0x179e   :  { %2189 = vst.msk [vmem:[#allocation6] sm:$0x3] %vm2188_vm5, %v2186_v62  ;;  %3741 = vmatmul.mubr.msk.f32.vlgmr.msra.gmra.mxu1 %vm2081_vm4, %v2186_v62 }
0x179f   :  { %2447 = vmatpush1.msra.mxu1 %v4964_v53  ;;  %2494 = vmatprep.mubr.f32.mxu1 %v4412_v4 }
0x17a0   :  { %2448 = vmatprep.subr.mxu1 %v4969_v54 }
0x17a1   :  { %2449 = vmatpush1.msra.mxu1 %v4975_v56 }
0x17a2   :  { %2450 = vmatprep.subr.mxu1 %v4983_v57 }
0x17a3   :  { %2451 = vmatpush1.msra.mxu1 %v4989_v58 }
0x17a4   :  { %2452 = vmatprep.subr.mxu1 %v4996_v59 }
0x17a5   :  { %2453 = vmatpush1.msra.mxu1 %v5003_v60 }
0x17a6   :  { %2454 = vmatprep.subr.mxu1 %v5010_v63 }
0x17a7   :  { %2455 = vmatpush1.msra.mxu1 %v5018_v1 }
0x17a8   :  { %2456 = vmatprep.subr.mxu1 %v5024_v2 }
0x17a9   :  { %2457 = vmatpush1.msra.mxu1 %v5038_v3 }
0x17aa   :  { %2458 = vmatprep.subr.mxu1 %v5043_v5 }
0x17ab   :  { %2459 = vmatpush1.msra.mxu1 %v5052_v7 }
0x17ac   :  { %2460 = vmatprep.subr.mxu1 %v5058_v6 }
0x17ad   :  { %2461 = vmatpush1.msra.mxu1 %v5065_v13 }
0x17ae   :  { %2672 = vmatprep.subr.mxu1 %v4959_v51 }
0x185e   :  { %v2260_v14 = vpop.f32.mrf.mxu1 }
0x185f   :  { %v2267_v19 = vrot.slane %v2260_v14, 6 }
0x1860   :  { %v2262_v29 = vpop.f32.mrf.mxu1 }
0x1861   :  { %v2271_v23 = vadd.f32 %v2267_v19, %v2190_v20  ;;  %v2268_v30 = vrot.slane %v2262_v29, 6 }
0x1863   :  { %v3742_v26 = vmul.f32 -1.442695, %v2271_v23  ;;  %v2272_v33 = vadd.f32 %v2268_v30, %v2191_v31 }
0x1865   :  { %4286 = vpow2.f32 %v3742_v26  ;;  %v3743_v42 = vmul.f32 -1.442695, %v2272_v33 }
0x1866   :  { %4288 = vtanh.f32 %v2272_v33 }
0x1872   :  { %v4287_v34 = vpop.eup %4286 }
0x1873   :  { %v2276_v35 = vadd.f32 1.0, %v4287_v34  ;;  %v4289_v36 = vpop.eup %4288 }
0x1875   :  { %4290 = vrcp.f32 %v2276_v35 }
0x1876   :  { %4292 = vpow2.f32 %v3743_v42 }
0x1882   :  { %v4291_v38 = vpop.eup %4290 }
0x1883   :  { %v2290_v39 = vmul.f32 %v4291_v38, %v4289_v36  ;;  %v2289_v41 = vmul.f32 %v4291_v38, %v2287_v37  ;;  %v4293_v43 = vpop.eup %4292 }
0x1884   :  { %v2283_v44 = vadd.f32 1.0, %v4293_v43 }
0x1885   :  { %2292 = vrot.lane.b32.xlu0 %v2290_v39, %s4414_s5 }
0x1886   :  { %4294 = vrcp.f32 %v2283_v44 }
0x1893   :  { %v4295_v10 = vpop.eup %4294 }
0x18f7   :  { %v2293_v45 = vpop.permute.xlu0 %2292 }
0x18f8   :  { %v2295_v8 = vadd.f32 %v2293_v45, %v2289_v41  ;;  %v2423_v45 = vld [vmem:[#allocation3] sm:$0xc0] }
0x18fa   :  { %4296 = vtanh.f32 %v2295_v8  ;;  %v2405_v23 = vrot.slane %v2295_v8, 6 }
0x1907   :  { %v4297_v24 = vpop.eup %4296 }
0x1908   :  { %v5125_v25 = vmul.f32 %v4297_v24, %v4295_v10 }
0x190a   :  { %v2307_v27 = vrot.slane %v5125_v25, 2 }
0x190c   :  { %2308 = vrot.lane.b32.xlu1 %v2307_v27, %s4414_s5 }
0x197e   :  { %v2309_v46 = vpop.permute.xlu1 %2308 }
0x197f   :  { %3744 = vmatmul.mubr.msk.f32.vlgmr.msra.gmra.mxu0 %vm2081_vm4, %v2309_v46  ;;  %v2424_v46 = vld [vmem:[#allocation3 + $0x18] sm:$0xc0] }
0x1980   :  { %2565 = vmatpush1.msra.mxu0 %v4964_v53  ;;  %2612 = vmatprep.mubr.f32.mxu0 %v4412_v4 }
0x1981   :  { %2566 = vmatprep.subr.mxu0 %v4969_v54 }
0x1982   :  { %2567 = vmatpush1.msra.mxu0 %v4975_v56 }
0x1983   :  { %2568 = vmatprep.subr.mxu0 %v4983_v57 }
0x1984   :  { %2569 = vmatpush1.msra.mxu0 %v4989_v58 }
0x1985   :  { %2570 = vmatprep.subr.mxu0 %v4996_v59 }
0x1986   :  { %2571 = vmatpush1.msra.mxu0 %v5003_v60 }
0x1987   :  { %2572 = vmatprep.subr.mxu0 %v5010_v63 }
0x1988   :  { %2573 = vmatpush1.msra.mxu0 %v5018_v1 }
0x1989   :  { %2574 = vmatprep.subr.mxu0 %v5024_v2 }
0x198a   :  { %2575 = vmatpush1.msra.mxu0 %v5038_v3 }
0x198b   :  { %2576 = vmatprep.subr.mxu0 %v5043_v5 }
0x198c   :  { %2577 = vmatpush1.msra.mxu0 %v5052_v7 }
0x198d   :  { %2578 = vmatprep.subr.mxu0 %v5058_v6 }
0x198e   :  { %2579 = vmatpush1.msra.mxu0 %v5065_v13 }
0x198f   :  { %2789 = vmatprep.subr.mxu0 %v4959_v51 }
0x1a3f   :  { %v2378_v28 = vpop.f32.mrf.mxu0 }
0x1a40   :  { %v2385_v15 = vrot.slane %v2378_v28, 4 }
0x1a41   :  { %v2380_v50 = vpop.f32.mrf.mxu0 }
0x1a42   :  { %v2389_v48 = vadd.f32 %v2385_v15, %v2305_v47  ;;  %v2386_v21 = vrot.slane %v2380_v50, 4 }
0x1a44   :  { %v3745_v49 = vmul.f32 -1.442695, %v2389_v48  ;;  %v2390_v62 = vadd.f32 %v2386_v21, %v2306_v55 }
0x1a46   :  { %4298 = vpow2.f32 %v3745_v49  ;;  %v3746_v31 = vmul.f32 -1.442695, %v2390_v62 }
0x1a47   :  { %4300 = vtanh.f32 %v2390_v62 }
0x1a53   :  { %v4299_v14 = vpop.eup %4298 }
0x1a54   :  { %v2394_v19 = vadd.f32 1.0, %v4299_v14  ;;  %v4301_v20 = vpop.eup %4300 }
0x1a56   :  { %4302 = vrcp.f32 %v2394_v19 }
0x1a57   :  { %4304 = vpow2.f32 %v3746_v31 }
0x1a63   :  { %v4303_v26 = vpop.eup %4302 }
0x1a64   :  { %v2408_v29 = vmul.f32 %v4303_v26, %v4301_v20  ;;  %v2407_v30 = vmul.f32 %v4303_v26, %v2405_v23  ;;  %v4305_v33 = vpop.eup %4304 }
0x1a65   :  { %v2401_v34 = vadd.f32 1.0, %v4305_v33  ;;  %v2541_v33 = vld [vmem:[#allocation3 + $0x8] sm:$0x3] }
0x1a66   :  { %2410 = vrot.lane.b32.xlu0 %v2408_v29, %s4414_s5 }
0x1a67   :  { %4306 = vrcp.f32 %v2401_v34 }
0x1a74   :  { %v4307_v37 = vpop.eup %4306 }
0x1ad8   :  { %v2411_v35 = vpop.permute.xlu0 %2410 }
0x1ad9   :  { %v2413_v36 = vadd.f32 %v2411_v35, %v2407_v30 }
0x1adb   :  { %4308 = vtanh.f32 %v2413_v36  ;;  %v2523_v49 = vrot.slane %v2413_v36, 6 }
0x1ae8   :  { %v4309_v38 = vpop.eup %4308 }
0x1ae9   :  { %v5148_v39 = vmul.f32 %v4309_v38, %v4307_v37  ;;  %v2542_v38 = vld [vmem:[#allocation3 + $0x10] sm:$0x3] }
0x1aeb   :  { %v2425_v41 = vrot.slane %v5148_v39, 4 }
0x1aed   :  { %2426 = vrot.lane.b32.xlu1 %v2425_v41, %s4414_s5 }
0x1b5f   :  { %v2427_v42 = vpop.permute.xlu1 %2426 }
0x1b60   :  { %3747 = vmatmul.mubr.msk.f32.vlgmr.msra.gmra.mxu1 %vm2081_vm4, %v2427_v42 }
0x1b61   :  { %2673 = vmatpush1.msra.mxu1 %v4964_v53  ;;  %2720 = vmatprep.mubr.f32.mxu1 %v4412_v4 }
0x1b62   :  { %2674 = vmatprep.subr.mxu1 %v4969_v54 }
0x1b63   :  { %2675 = vmatpush1.msra.mxu1 %v4975_v56 }
0x1b64   :  { %2676 = vmatprep.subr.mxu1 %v4983_v57 }
0x1b65   :  { %2677 = vmatpush1.msra.mxu1 %v4989_v58 }
0x1b66   :  { %2678 = vmatprep.subr.mxu1 %v4996_v59 }
0x1b67   :  { %2679 = vmatpush1.msra.mxu1 %v5003_v60 }
0x1b68   :  { %2680 = vmatprep.subr.mxu1 %v5010_v63 }
0x1b69   :  { %2681 = vmatpush1.msra.mxu1 %v5018_v1 }
0x1b6a   :  { %2682 = vmatprep.subr.mxu1 %v5024_v2 }
0x1b6b   :  { %2683 = vmatpush1.msra.mxu1 %v5038_v3 }
0x1b6c   :  { %2684 = vmatprep.subr.mxu1 %v5043_v5 }
0x1b6d   :  { %2685 = vmatpush1.msra.mxu1 %v5052_v7 }
0x1b6e   :  { %2686 = vmatprep.subr.mxu1 %v5058_v6 }
0x1b6f   :  { %2687 = vmatpush1.msra.mxu1 %v5065_v13 }
0x1b70   :  { %2906 = vmatprep.subr.mxu1 %v4959_v51 }
0x1c20   :  { %v2496_v43 = vpop.f32.mrf.mxu1 }
0x1c21   :  { %v2503_v44 = vrot.slane %v2496_v43, 2 }
0x1c22   :  { %v2498_v24 = vpop.f32.mrf.mxu1 }
0x1c23   :  { %v2507_v8 = vadd.f32 %v2503_v44, %v2423_v45  ;;  %v2504_v27 = vrot.slane %v2498_v24, 2 }
0x1c25   :  { %v3748_v10 = vmul.f32 -1.442695, %v2507_v8  ;;  %v2508_v28 = vadd.f32 %v2504_v27, %v2424_v46 }
0x1c27   :  { %4310 = vpow2.f32 %v3748_v10  ;;  %v3749_v51 = vmul.f32 -1.442695, %v2508_v28 }
0x1c28   :  { %4312 = vtanh.f32 %v2508_v28 }
0x1c34   :  { %v4311_v15 = vpop.eup %4310 }
0x1c35   :  { %v2512_v47 = vadd.f32 1.0, %v4311_v15  ;;  %v4313_v48 = vpop.eup %4312 }
0x1c37   :  { %4314 = vrcp.f32 %v2512_v47 }
0x1c38   :  { %4316 = vpow2.f32 %v3749_v51 }
0x1c44   :  { %v4315_v50 = vpop.eup %4314 }
0x1c45   :  { %v2526_v21 = vmul.f32 %v4315_v50, %v4313_v48  ;;  %v2525_v55 = vmul.f32 %v4315_v50, %v2523_v49  ;;  %v4317_v62 = vpop.eup %4316 }
0x1c46   :  { %v2519_v14 = vadd.f32 1.0, %v4317_v62 }
0x1c47   :  { %2528 = vrot.lane.b32.xlu0 %v2526_v21, %s4414_s5 }
0x1c48   :  { %4318 = vrcp.f32 %v2519_v14 }
0x1c55   :  { %v4319_v23 = vpop.eup %4318 }
0x1cb9   :  { %v2529_v19 = vpop.permute.xlu0 %2528 }
0x1cba   :  { %v2531_v20 = vadd.f32 %v2529_v19, %v2525_v55 }
0x1cbc   :  { %4320 = vtanh.f32 %v2531_v20  ;;  %v2635_v45 = vrot.slane %v2531_v20, 6 }
0x1cc9   :  { %v4321_v26 = vpop.eup %4320 }
0x1cca   :  { %v5171_v29 = vmul.f32 %v4321_v26, %v4319_v23 }
0x1ccc   :  { %v2543_v30 = vrot.slane %v5171_v29, 6 }
0x1cce   :  { %2544 = vrot.lane.b32.xlu1 %v2543_v30, %s4414_s5 }
0x1d40   :  { %v2545_v31 = vpop.permute.xlu1 %2544 }
0x1d41   :  { %3750 = vmatmul.mubr.msk.f32.vlgmr.msra.gmra.mxu0 %vm2081_vm4, %v2545_v31 }
0x1d42   :  { %2790 = vmatpush1.msra.mxu0 %v4964_v53  ;;  %2837 = vmatprep.mubr.f32.mxu0 %v4412_v4 }
0x1d43   :  { %2791 = vmatprep.subr.mxu0 %v4969_v54 }
0x1d44   :  { %2792 = vmatpush1.msra.mxu0 %v4975_v56 }
0x1d45   :  { %2793 = vmatprep.subr.mxu0 %v4983_v57 }
0x1d46   :  { %2794 = vmatpush1.msra.mxu0 %v4989_v58 }
0x1d47   :  { %2795 = vmatprep.subr.mxu0 %v4996_v59 }
0x1d48   :  { %2796 = vmatpush1.msra.mxu0 %v5003_v60 }
0x1d49   :  { %2797 = vmatprep.subr.mxu0 %v5010_v63 }
0x1d4a   :  { %2798 = vmatpush1.msra.mxu0 %v5018_v1 }
0x1d4b   :  { %2799 = vmatprep.subr.mxu0 %v5024_v2 }
0x1d4c   :  { %2800 = vmatpush1.msra.mxu0 %v5038_v3 }
0x1d4d   :  { %2801 = vmatprep.subr.mxu0 %v5043_v5 }
0x1d4e   :  { %2802 = vmatpush1.msra.mxu0 %v5052_v7 }
0x1d4f   :  { %2803 = vmatprep.subr.mxu0 %v5058_v6 }
0x1d50   :  { %2804 = vmatpush1.msra.mxu0 %v5065_v13 }
0x1d51   :  { %4064 = vmatprep.subr.mxu0 %v4412_v4 }
0x1e01   :  { %v2614_v34 = vpop.f32.mrf.mxu0 }
0x1e02   :  { %v2619_v35 = vadd.f32 %v2614_v34, %v2541_v33 }
0x1e03   :  { %v2616_v37 = vpop.f32.mrf.mxu0 }
0x1e04   :  { %v3751_v36 = vmul.f32 -1.442695, %v2619_v35  ;;  %v2620_v41 = vadd.f32 %v2616_v37, %v2542_v38 }
0x1e06   :  { %4322 = vpow2.f32 %v3751_v36  ;;  %v3752_v27 = vmul.f32 -1.442695, %v2620_v41  ;;  %v2766_v36 = vld [vmem:[#allocation3 + $0x8] sm:$0x30] }
0x1e07   :  { %4324 = vtanh.f32 %v2620_v41 }
0x1e13   :  { %v4323_v42 = vpop.eup %4322 }
0x1e14   :  { %v2624_v43 = vadd.f32 1.0, %v4323_v42  ;;  %v4325_v44 = vpop.eup %4324 }
0x1e16   :  { %4326 = vrcp.f32 %v2624_v43  ;;  %v2767_v43 = vld [vmem:[#allocation3 + $0x10] sm:$0x30] }
0x1e17   :  { %4328 = vpow2.f32 %v3752_v27 }
0x1e23   :  { %v4327_v8 = vpop.eup %4326 }
0x1e24   :  { %v2638_v10 = vmul.f32 %v4327_v8, %v4325_v44  ;;  %v2637_v24 = vmul.f32 %v4327_v8, %v2635_v45  ;;  %v4329_v46 = vpop.eup %4328 }
0x1e25   :  { %v2631_v28 = vadd.f32 1.0, %v4329_v46 }
0x1e26   :  { %2640 = vrot.lane.b32.xlu0 %v2638_v10, %s4414_s5 }
0x1e27   :  { %4330 = vrcp.f32 %v2631_v28 }
0x1e34   :  { %v4331_v48 = vpop.eup %4330 }
0x1e98   :  { %v2641_v15 = vpop.permute.xlu0 %2640 }
0x1e99   :  { %v2643_v47 = vadd.f32 %v2641_v15, %v2637_v24 }
0x1e9b   :  { %4332 = vtanh.f32 %v2643_v47 }
0x1ea8   :  { %v4333_v49 = vpop.eup %4332 }
0x1ea9   :  { %v2645_v50 = vmul.f32 %v4333_v49, %v4331_v48 }
0x1eab   :  { %2647 = vrot.lane.b32.xlu1 %v2645_v50, %s4414_s5 }
0x1f1d   :  { %v2648_v21 = vpop.permute.xlu1 %2647 }
0x1f1e   :  { %2651 = vst.msk [vmem:[#allocation6 + $0x8] sm:$0x3] %vm2188_vm5, %v2648_v21  ;;  %3753 = vmatmul.mubr.msk.f32.vlgmr.msra.gmra.mxu1 %vm2081_vm4, %v2648_v21  ;;  %vm2303_vm5 = vcmask 519170  }
0x1f1f   :  { %2907 = vmatpush1.msra.mxu1 %v4964_v53  ;;  %2954 = vmatprep.mubr.f32.mxu1 %v4412_v4 }
0x1f20   :  { %2908 = vmatprep.subr.mxu1 %v4969_v54 }
0x1f21   :  { %2909 = vmatpush1.msra.mxu1 %v4975_v56  ;;  %v2652_v56 = vld [vmem:[#allocation3 + $0x8] sm:$0xc] }
0x1f22   :  { %2910 = vmatprep.subr.mxu1 %v4983_v57 }
0x1f23   :  { %2911 = vmatpush1.msra.mxu1 %v4989_v58 }
0x1f24   :  { %2912 = vmatprep.subr.mxu1 %v4996_v59 }
0x1f25   :  { %2913 = vmatpush1.msra.mxu1 %v5003_v60 }
0x1f26   :  { %2914 = vmatprep.subr.mxu1 %v5010_v63  ;;  %v2653_v63 = vld [vmem:[#allocation3 + $0x10] sm:$0xc] }
0x1f27   :  { %2915 = vmatpush1.msra.mxu1 %v5018_v1 }
0x1f28   :  { %2916 = vmatprep.subr.mxu1 %v5024_v2 }
0x1f29   :  { %2917 = vmatpush1.msra.mxu1 %v5038_v3 }
0x1f2a   :  { %2918 = vmatprep.subr.mxu1 %v5043_v5 }
0x1f2b   :  { %2919 = vmatpush1.msra.mxu1 %v5052_v7  ;;  %v2749_v7 = vrot.slane %v2643_v47, 6 }
0x1f2c   :  { %2920 = vmatprep.subr.mxu1 %v5058_v6 }
0x1f2d   :  { %2921 = vmatpush1.msra.mxu1 %v5065_v13 }
0x1f2e   :  { %4069 = vmatprep.subr.mxu1 %v4412_v4 }
0x1fde   :  { %v2722_v53 = vpop.f32.mrf.mxu1 }
0x1fdf   :  { %v2729_v54 = vrot.slane %v2722_v53, 6 }
0x1fe0   :  { %v2724_v59 = vpop.f32.mrf.mxu1 }
0x1fe1   :  { %v2733_v57 = vadd.f32 %v2729_v54, %v2652_v56  ;;  %v2730_v60 = vrot.slane %v2724_v59, 6 }
0x1fe3   :  { %v3754_v58 = vmul.f32 -1.442695, %v2733_v57  ;;  %v2734_v1 = vadd.f32 %v2730_v60, %v2653_v63  ;;  %v2883_v63 = vld [vmem:[#allocation3 + $0x8] sm:$0xc0] }
0x1fe5   :  { %4334 = vpow2.f32 %v3754_v58  ;;  %v3755_v51 = vmul.f32 -1.442695, %v2734_v1 }
0x1fe6   :  { %4336 = vtanh.f32 %v2734_v1 }
0x1ff2   :  { %v4335_v2 = vpop.eup %4334 }
0x1ff3   :  { %v2738_v3 = vadd.f32 1.0, %v4335_v2  ;;  %v4337_v5 = vpop.eup %4336 }
0x1ff5   :  { %4338 = vrcp.f32 %v2738_v3 }
0x1ff6   :  { %4340 = vpow2.f32 %v3755_v51 }
0x2002   :  { %v4339_v6 = vpop.eup %4338 }
0x2003   :  { %v2752_v13 = vmul.f32 %v4339_v6, %v4337_v5  ;;  %v2751_v55 = vmul.f32 %v4339_v6, %v2749_v7  ;;  %v4341_v62 = vpop.eup %4340  ;;  %v2884_v7 = vld [vmem:[#allocation3 + $0x10] sm:$0xc0] }
0x2004   :  { %v2745_v14 = vadd.f32 1.0, %v4341_v62 }
0x2005   :  { %2754 = vrot.lane.b32.xlu0 %v2752_v13, %s4414_s5 }
0x2006   :  { %4342 = vrcp.f32 %v2745_v14 }
0x2013   :  { %v4343_v23 = vpop.eup %4342 }
0x2077   :  { %v2755_v19 = vpop.permute.xlu0 %2754 }
0x2078   :  { %v2757_v20 = vadd.f32 %v2755_v19, %v2751_v55 }
0x207a   :  { %4344 = vtanh.f32 %v2757_v20  ;;  %v2866_v24 = vrot.slane %v2757_v20, 6 }
0x2087   :  { %v4345_v26 = vpop.eup %4344 }
0x2088   :  { %v5215_v30 = vmul.f32 %v4345_v26, %v4343_v23 }
0x208a   :  { %v2768_v31 = vrot.slane %v5215_v30, 2 }
0x208c   :  { %2769 = vrot.lane.b32.xlu1 %v2768_v31, %s4414_s5 }
0x20fe   :  { %v2770_v33 = vpop.permute.xlu1 %2769 }
0x20ff   :  { %3756 = vmatmul.mubr.msk.f32.vlgmr.msra.gmra.mxu0 %vm2081_vm4, %v2770_v33 }
0x2100   :  { %4066 = vmatprep.mubr.msk.f32.mxu0 %vm4413_vm0, %v4412_v4 }
0x21bf   :  { %v2839_v34 = vpop.f32.mrf.mxu0 }
0x21c0   :  { %v2846_v35 = vrot.slane %v2839_v34, 4  ;;  %v3012_v34 = vld [vmem:[#allocation5 + $0x8] sm:$0x3] }
0x21c1   :  { %v2841_v41 = vpop.f32.mrf.mxu0 }
0x21c2   :  { %v2850_v37 = vadd.f32 %v2846_v35, %v2766_v36  ;;  %v2847_v42 = vrot.slane %v2841_v41, 4 }
0x21c4   :  { %v3757_v38 = vmul.f32 -1.442695, %v2850_v37  ;;  %v2851_v44 = vadd.f32 %v2847_v42, %v2767_v43 }
0x21c6   :  { %4346 = vpow2.f32 %v3757_v38  ;;  %v3758_v15 = vmul.f32 -1.442695, %v2851_v44 }
0x21c7   :  { %4348 = vtanh.f32 %v2851_v44 }
0x21d3   :  { %v4347_v45 = vpop.eup %4346 }
0x21d4   :  { %v2855_v8 = vadd.f32 1.0, %v4347_v45  ;;  %v4349_v10 = vpop.eup %4348 }
0x21d6   :  { %4350 = vrcp.f32 %v2855_v8 }
0x21d7   :  { %4352 = vpow2.f32 %v3758_v15 }
0x21e3   :  { %v4351_v27 = vpop.eup %4350 }
0x21e4   :  { %v2869_v46 = vmul.f32 %v4351_v27, %v4349_v10  ;;  %v2868_v28 = vmul.f32 %v4351_v27, %v2866_v24  ;;  %v4353_v47 = vpop.eup %4352  ;;  %v3068_v10 = vrot.slane %v3012_v34, 4 }
0x21e5   :  { %v2862_v48 = vadd.f32 1.0, %v4353_v47 }
0x21e6   :  { %2871 = vrot.lane.b32.xlu0 %v2869_v46, %s4414_s5 }
0x21e7   :  { %4354 = vrcp.f32 %v2862_v48 }
0x21f4   :  { %v4355_v21 = vpop.eup %4354 }
0x2258   :  { %v2872_v49 = vpop.permute.xlu0 %2871 }
0x2259   :  { %v2874_v50 = vadd.f32 %v2872_v49, %v2868_v28 }
0x225b   :  { %4356 = vtanh.f32 %v2874_v50  ;;  %v2983_v62 = vrot.slane %v2874_v50, 6 }
0x2268   :  { %v4357_v53 = vpop.eup %4356 }
0x2269   :  { %v2876_v54 = vmul.f32 %v4357_v53, %v4355_v21 }
0x226b   :  { %v2885_v56 = vrot.slane %v2876_v54, 4 }
0x226d   :  { %2886 = vrot.lane.b32.xlu1 %v2885_v56, %s4414_s5 }
0x2271   :  { %1837 = vrot.lane.b32.xlu1 %v4926_v9, %s4415_s8 }
0x2275   :  { %1388 = vrot.lane.b32.xlu1 %v4832_v40, %s4415_s8 }
0x2279   :  { %945 = vrot.lane.b32.xlu1 %v4746_v61, %s4415_s8 }
0x227d   :  { %493 = vrot.lane.b32.xlu1 %v4660_v32, %s4415_s8 }
0x2281   :  { %939 = vrot.lane.b32.xlu1 %v4749_v0, %s4415_s8 }
0x2285   :  { %1605 = vrot.lane.b32.xlu1 %v4877_v22, %s4415_s8 }
0x2289   :  { %1831 = vrot.lane.b32.xlu1 %v4929_v11, %s4415_s8 }
0x228d   :  { %2535 = vrot.lane.b32.xlu1 %v5171_v29, %s4414_s5 }
0x2291   :  { %2878 = vrot.lane.b32.xlu1 %v2876_v54, %s4414_s5 }
0x22df   :  { %v2887_v40 = vpop.permute.xlu1 %2886 }
0x22e0   :  { %3759 = vmatmul.mubr.msk.f32.vlgmr.msra.gmra.mxu1 %vm2081_vm4, %v2887_v40 }
0x22e1   :  { %4071 = vmatprep.mubr.msk.f32.mxu1 %vm4413_vm0, %v4412_v4 }
0x22e3   :  { %v1838_v32 = vpop.permute.xlu1 %1837 }
0x22e4   :  { %1841 = vst.msk [vmem:[#allocation5] sm:$0xc] %vm715_vm6, %v1838_v32 }
0x22e7   :  { %v1389_v61 = vpop.permute.xlu1 %1388 }
0x22e8   :  { %1392 = vst.msk [vmem:[#allocation5] sm:$0xc0] %vm497_vm3, %v1389_v61 }
0x22eb   :  { %v946_v0 = vpop.permute.xlu1 %945  ;;  %v3009_v31 = vld [vmem:[#allocation5 + $0x2] sm:$0x3] }
0x22ec   :  { %949 = vst.msk [vmem:[#allocation5 + $0x8] sm:$0xc] %vm715_vm6, %v946_v0  ;;  %v3062_v35 = vrot.slane %v3009_v31, 7  ;;  %v3020_v31 = vld [vmem:[#allocation6 + $0x8] sm:$0x3] }
0x22ef   :  { %v494_v22 = vpop.permute.xlu1 %493 }
0x22f0   :  { %498 = vst.msk [vmem:[#allocation5 + $0x8] sm:$0xc0] %vm497_vm3, %v494_v22 }
0x22f3   :  { %v940_v9 = vpop.permute.xlu1 %939  ;;  %v3013_v42 = vld [vmem:[#allocation5 + $0xa] sm:$0x3] }
0x22f4   :  { %943 = vst.msk [vmem:[#allocation4] sm:$0x30] %vm722_vm7, %v940_v9  ;;  %v3070_v46 = vrot.slane %v3013_v42, 3 }
0x22f7   :  { %v1606_v11 = vpop.permute.xlu1 %1605  ;;  %v3015_v15 = vld [vmem:[#allocation5 + $0xe] sm:$0x3] }
0x22f8   :  { %1609 = vst.msk [vmem:[#allocation4 + $0x8] sm:$0xc] %vm715_vm6, %v1606_v11  ;;  %v3074_v40 = vrot.slane %v3015_v15, 1 }
0x22fb   :  { %v1832_v29 = vpop.permute.xlu1 %1831  ;;  %v3002_v0 = vld [vmem:[#allocation4 + $0x4] sm:$0x3] }
0x22fc   :  { %1835 = vst.msk [vmem:[#allocation4 + $0x8] sm:$0x30] %vm722_vm7, %v1832_v29 }
0x22ff   :  { %v2536_v57 = vpop.permute.xlu1 %2535 }
0x2300   :  { %2540 = vst.msk [vmem:[#allocation6] sm:$0xc0] %vm2539_vm8, %v2536_v57  ;;  %v3000_v57 = vld [vmem:[#allocation4] sm:$0x3] }
0x2303   :  { %v2879_v58 = vpop.permute.xlu1 %2878 }
0x2304   :  { %2882 = vst.msk [vmem:[#allocation6 + $0x8] sm:$0x30] %vm2421_vm9, %v2879_v58  ;;  %v3035_v58 = vrot.slane %v3002_v0, 6 }
0x23a0   :  { %v2956_v59 = vpop.f32.mrf.mxu1 }
0x23a1   :  { %v2963_v60 = vrot.slane %v2956_v59, 2  ;;  %v3004_v59 = vld [vmem:[#allocation4 + $0x8] sm:$0x3] }
0x23a2   :  { %v2958_v3 = vpop.f32.mrf.mxu1 }
0x23a3   :  { %v2967_v1 = vadd.f32 %v2963_v60, %v2883_v63  ;;  %v2964_v5 = vrot.slane %v2958_v3, 2  ;;  %v3005_v3 = vld [vmem:[#allocation4 + $0xa] sm:$0x3] }
0x23a5   :  { %v3760_v2 = vmul.f32 -1.442695, %v2967_v1  ;;  %v2968_v6 = vadd.f32 %v2964_v5, %v2884_v7 }
0x23a7   :  { %4358 = vpow2.f32 %v3760_v2 }
0x23a8   :  { %4360 = vtanh.f32 %v2968_v6 }
0x23b4   :  { %v4359_v13 = vpop.eup %4358 }
0x23b5   :  { %v2972_v55 = vadd.f32 1.0, %v4359_v13  ;;  %v4361_v51 = vpop.eup %4360  ;;  %v3006_v13 = vld [vmem:[#allocation4 + $0xc] sm:$0x3] }
0x23b7   :  { %4362 = vrcp.f32 %v2972_v55  ;;  %v3041_v55 = vrot.slane %v3004_v59, 4 }
0x23c4   :  { %v4363_v14 = vpop.eup %4362 }
0x23c5   :  { %v2986_v19 = vmul.f32 %v4363_v14, %v4361_v51  ;;  %v2985_v20 = vmul.f32 %v4363_v14, %v2983_v62  ;;  %v3044_v51 = vrot.slane %v3005_v3, 3 }
0x23c7   :  { %2988 = vrot.lane.b32.xlu0 %v2986_v19, %s4414_s5 }
0x23cb   :  { %1611 = vrot.lane.b32.xlu0 %v4874_v18, %s4415_s8  ;;  %v3761_v18 = vmul.f32 -1.442695, %v2968_v6 }
0x23cd   :  { %4364 = vpow2.f32 %v3761_v18 }
0x23cf   :  { %2060 = vrot.lane.b32.xlu0 %v5073_v17, %s4415_s8 }
0x23d3   :  { %718 = vrot.lane.b32.xlu0 %v4702_v12, %s4415_s8 }
0x23d7   :  { %711 = vrot.lane.b32.xlu0 %v4705_v16, %s4415_s8 }
0x23da   :  { %v4365_v17 = vpop.eup %4364 }
0x23db   :  { %1162 = vrot.lane.b32.xlu0 %v4791_v52, %s4415_s8  ;;  %v2979_v23 = vadd.f32 1.0, %v4365_v17 }
0x23dd   :  { %4366 = vrcp.f32 %v2979_v23 }
0x23df   :  { %2299 = vrot.lane.b32.xlu0 %v5125_v25, %s4414_s5 }
0x23e3   :  { %2417 = vrot.lane.b32.xlu0 %v5148_v39, %s4414_s5  ;;  %v3011_v39 = vld [vmem:[#allocation5 + $0x6] sm:$0x3] }
0x23e4   :  { %v3066_v36 = vrot.slane %v3011_v39, 5  ;;  %v3019_v39 = vld [vmem:[#allocation6 + $0x6] sm:$0x3] }
0x23e7   :  { %2761 = vrot.lane.b32.xlu0 %v5215_v30, %s4414_s5 }
0x23ea   :  { %v4367_v33 = vpop.eup %4366 }
0x2439   :  { %v2989_v12 = vpop.permute.xlu0 %2988 }
0x243a   :  { %v2991_v26 = vadd.f32 %v2989_v12, %v2985_v20  ;;  %v3047_v20 = vrot.slane %v3006_v13, 2 }
0x243c   :  { %4368 = vtanh.f32 %v2991_v26 }
0x243d   :  { %v1612_v16 = vpop.permute.xlu0 %1611 }
0x243e   :  { %1615 = vst.msk [vmem:[#allocation5] sm:$0x30] %vm722_vm7, %v1612_v16  ;;  %v3016_v16 = vld [vmem:[#allocation6] sm:$0x3] }
0x243f   :  { %v3290_v34 = vrot.slane %v3016_v16, 1 }
0x2441   :  { %v2061_v52 = vpop.permute.xlu0 %2060 }
0x2442   :  { %2063 = vst.msk [vmem:[#allocation5] sm:$0x3] %vm490_vm2, %v2061_v52  ;;  %vm3051_vm2 = vcmask 1047559  }
0x2445   :  { %v719_v25 = vpop.permute.xlu0 %718  ;;  %v3010_v30 = vld [vmem:[#allocation5 + $0x4] sm:$0x3] }
0x2446   :  { %723 = vst.msk [vmem:[#allocation5 + $0x8] sm:$0x30] %vm722_vm7, %v719_v25  ;;  %v3064_v43 = vrot.slane %v3010_v30, 6 }
0x2449   :  { %v4369_v37 = vpop.eup %4368  ;;  %v712_v38 = vpop.permute.xlu0 %711  ;;  %v3008_v41 = vld [vmem:[#allocation5] sm:$0x3] }
0x244a   :  { %716 = vst.msk [vmem:[#allocation4] sm:$0xc] %vm715_vm6, %v712_v38  ;;  %v2993_v44 = vmul.f32 %v4369_v37, %v4367_v33  ;;  %v3276_v45 = vsel %vm3036_vm10, %v3062_v35, %v3008_v41  ;;  %v3063_v8 = vsel %vm3033_vm11, %v3062_v35, %v3008_v41  ;;  %v3092_v41 = vrot.slane %v3019_v39, 5 }
0x244b   :  { %v3277_v24 = vsel %vm3039_vm12, %v3064_v43, %v3276_v45  ;;  %v3065_v27 = vsel %vm3036_vm10, %v3064_v43, %v3063_v8  ;;  %v3294_v43 = vrot.slane %v3019_v39, 6 }
0x244c   :  { %2995 = vrot.lane.b32.xlu0 %v2993_v44, %s4414_s5  ;;  %v3278_v28 = vsel %vm3042_vm13, %v3066_v36, %v3277_v24  ;;  %v3067_v47 = vsel %vm3039_vm12, %v3066_v36, %v3065_v27  ;;  %v3094_v36 = vrot.slane %v3020_v31, 4  ;;  %v3022_v44 = vld [vmem:[#allocation6 + $0xc] sm:$0x3] }
0x244d   :  { %v1163_v48 = vpop.permute.xlu0 %1162  ;;  %v3014_v49 = vld [vmem:[#allocation5 + $0xc] sm:$0x3]  ;;  %v3279_v50 = vsel %vm3045_vm14, %v3068_v10, %v3278_v28  ;;  %v3069_v21 = vsel %vm3042_vm13, %v3068_v10, %v3067_v47  ;;  %v3296_v10 = vrot.slane %v3020_v31, 5 }
0x244e   :  { %1166 = vst.msk [vmem:[#allocation4] sm:$0xc0] %vm497_vm3, %v1163_v48  ;;  %v3072_v53 = vrot.slane %v3014_v49, 2  ;;  %v3280_v54 = vsel %vm3048_vm15, %v3070_v46, %v3279_v50  ;;  %v3071_v56 = vsel %vm3045_vm14, %v3070_v46, %v3069_v21  ;;  %v3098_v21 = vrot.slane %v3022_v44, 2 }
0x244f   :  { %vm3306_vm3 = vcmask 1046528  }
0x2450   :  { %v3281_v32 = vsel %vm3051_vm2, %v3072_v53, %v3280_v54  ;;  %v3073_v61 = vsel %vm3048_vm15, %v3072_v53, %v3071_v56  ;;  %v3300_v53 = vrot.slane %v3022_v44, 3  ;;  %v3505_v44 = vld [vmem:[%s5462_s9 + $0x78] sm:$0xff] }
0x2451   :  { %v2300_v22 = vpop.permute.xlu0 %2299  ;;  %3282 = vrot.lane.b32.xlu0 %v3281_v32, %s4415_s8  ;;  %v3075_v9 = vsel %vm3051_vm2, %v3074_v40, %v3073_v61  ;;  %v3001_v11 = vld [vmem:[#allocation4 + $0x2] sm:$0x3] }
0x2452   :  { %2304 = vst.msk [vmem:[#allocation6] sm:$0xc] %vm2303_vm5, %v2300_v22  ;;  %3076 = vrot.lane.b32.xlu1 %v3075_v9, %s4415_s8  ;;  %v3032_v29 = vrot.slane %v3001_v11, 7  ;;  %v3007_v11 = vld [vmem:[#allocation4 + $0xe] sm:$0x3] }
0x2454   :  { %v3268_v60 = vsel %vm3036_vm10, %v3032_v29, %v3000_v57  ;;  %v3034_v63 = vsel %vm3033_vm11, %v3032_v29, %v3000_v57  ;;  %v3050_v29 = vrot.slane %v3007_v11, 1 }
0x2455   :  { %v2418_v1 = vpop.permute.xlu0 %2417  ;;  %v3003_v2 = vld [vmem:[#allocation4 + $0x6] sm:$0x3]  ;;  %v3269_v5 = vsel %vm3039_vm12, %v3035_v58, %v3268_v60  ;;  %v3037_v7 = vsel %vm3036_vm10, %v3035_v58, %v3034_v63 }
0x2456   :  { %2422 = vst.msk [vmem:[#allocation6] sm:$0x30] %vm2421_vm9, %v2418_v1  ;;  %3284 = vrot.lane.b32.xlu1 %v3074_v40, %s4415_s8  ;;  %v3038_v6 = vrot.slane %v3003_v2, 5  ;;  %s3693_s8 = sshll.u32 %s4417_s7, 4  ;;  %s3694_s8 = int_to_ptr.vmem [resolvable:$true] %s3693_s8 }
0x2457   :  { %p4395_p1 = scmp.lt.s32.totalorder %s3694_s8, %s3694_s8 }
0x2458   :  { %v3270_v62 = vsel %vm3042_vm13, %v3038_v6, %v3269_v5  ;;  %v3040_v14 = vsel %vm3039_vm12, %v3038_v6, %v3037_v7 }
0x2459   :  { %v2762_v19 = vpop.permute.xlu0 %2761  ;;  %v3271_v18 = vsel %vm3045_vm14, %v3041_v55, %v3270_v62  ;;  %v3043_v17 = vsel %vm3042_vm13, %v3041_v55, %v3040_v14  ;;  %v3017_v23 = vld [vmem:[#allocation6 + $0x2] sm:$0x3] }
0x245a   :  { %2765 = vst.msk [vmem:[#allocation6 + $0x8] sm:$0xc] %vm2303_vm5, %v2762_v19  ;;  %v3272_v12 = vsel %vm3048_vm15, %v3044_v51, %v3271_v18  ;;  %v3046_v26 = vsel %vm3045_vm14, %v3044_v51, %v3043_v17  ;;  %v3088_v52 = vrot.slane %v3017_v23, 7  ;;  %v3291_v42 = vsel %vm3033_vm11, %v3017_v23, %v3290_v34 }
0x245b   :  { %v3049_v25 = vsel %vm3048_vm15, %v3047_v20, %v3046_v26  ;;  %v3273_v63 = vsel %vm3051_vm2, %v3047_v20, %v3272_v12 }
0x245c   :  { %v3469_v30 = vsel %vm3036_vm10, %v3088_v52, %v3016_v16  ;;  %v3089_v38 = vsel %vm3033_vm11, %v3088_v52, %v3016_v16  ;;  %v3052_v58 = vsel %vm3051_vm2, %v3050_v29, %v3049_v25 }
0x245d   :  { %v3018_v33 = vld [vmem:[#allocation6 + $0x4] sm:$0x3] }
0x245e   :  { %v3090_v35 = vrot.slane %v3018_v33, 6  ;;  %v3292_v37 = vrot.slane %v3018_v33, 7 }
0x2460   :  { %v3091_v45 = vsel %vm3036_vm10, %v3090_v35, %v3089_v38  ;;  %v3293_v8 = vsel %vm3036_vm10, %v3292_v37, %v3291_v42  ;;  %v3470_v24 = vsel %vm3039_vm12, %v3090_v35, %v3469_v30 }
0x2461   :  { %v3021_v27 = vld [vmem:[#allocation6 + $0xa] sm:$0x3]  ;;  %v3093_v46 = vsel %vm3039_vm12, %v3092_v41, %v3091_v45  ;;  %v3295_v28 = vsel %vm3039_vm12, %v3294_v43, %v3293_v8  ;;  %v3471_v15 = vsel %vm3042_vm13, %v3092_v41, %v3470_v24  ;;  %v3504_v45 = vld [vmem:[%s5462_s9 + $0x70] sm:$0xff] }
0x2462   :  { %v3095_v47 = vsel %vm3042_vm13, %v3094_v36, %v3093_v46  ;;  %v3096_v48 = vrot.slane %v3021_v27, 3  ;;  %v3297_v49 = vsel %vm3042_vm13, %v3296_v10, %v3295_v28  ;;  %v3298_v50 = vrot.slane %v3021_v27, 4  ;;  %v3503_v8 = vld [vmem:[%s5462_s9 + $0x68] sm:$0xff]  ;;  %v3501_v10 = vld [vmem:[%s5462_s9 + $0x58] sm:$0xff]  ;;  %v3500_v24 = vld [vmem:[%s5462_s9 + $0x50] sm:$0xff] }
0x2463   :  { %v3472_v54 = vsel %vm3045_vm14, %v3094_v36, %v3471_v15  ;;  %v3499_v27 = vld [vmem:[%s5462_s9 + $0x48] sm:$0xff]  ;;  %v3498_v46 = vld [vmem:[%s5462_s9 + $0x40] sm:$0xff]  ;;  %v3497_v28 = vld [vmem:[%s5462_s9 + $0x38] sm:$0xff] }
0x2464   :  { %v3097_v56 = vsel %vm3045_vm14, %v3096_v48, %v3095_v47  ;;  %v3299_v40 = vsel %vm3045_vm14, %v3298_v50, %v3297_v49  ;;  %v3473_v32 = vsel %vm3048_vm15, %v3096_v48, %v3472_v54  ;;  %v3496_v15 = vld [vmem:[%s5462_s9 + $0x30] sm:$0xff]  ;;  %v3495_v47 = vld [vmem:[%s5462_s9 + $0x28] sm:$0xff]  ;;  %v3494_v48 = vld [vmem:[%s5462_s9 + $0x20] sm:$0xff] }
0x2465   :  { %v3099_v61 = vsel %vm3048_vm15, %v3098_v21, %v3097_v56  ;;  %v3301_v0 = vsel %vm3048_vm15, %v3300_v53, %v3299_v40  ;;  %v5324_v22 = vsel %vm3051_vm2, %v3098_v21, %v3473_v32  ;;  %v3493_v49 = vld [vmem:[%s5462_s9 + $0x18] sm:$0xff]  ;;  %v3492_v50 = vld [vmem:[%s5462_s9 + $0x10] sm:$0xff]  ;;  %v3491_v21 = vld [vmem:[%s5462_s9 + $0x8] sm:$0xff] }
0x2466   :  { %v3490_v53 = vld [vmem:[%s5462_s9] sm:$0xff] }
0x24be   :  { %v2996_v9 = vpop.permute.xlu0 %2995 }
0x24bf   :  { %2999 = vst.msk [vmem:[#allocation6 + $0x8] sm:$0xc0] %vm2539_vm8, %v2996_v9 }
0x24c3   :  { %v3283_v57 = vpop.permute.xlu0 %3282 }
0x24c4   :  { %v3077_v59 = vpop.permute.xlu1 %3076  ;;  %v3288_v2 = vsel %vm67_vm1, %v3273_v63, %v3283_v57  ;;  %v3597_v63 = vld [vmem:[%s5464_s11 + $0x38] sm:$0xff] }
0x24c5   :  { %v3079_v60 = vsel %vm67_vm1, %v3052_v58, %v3077_v59  ;;  %v3307_v13 = vrot.slane %v3288_v2, 1  ;;  %v3596_v2 = vld [vmem:[%s5464_s11 + $0x30] sm:$0xff] }
0x24c6   :  { %4065 = vmatpush3.xpose.msk.msra.mxu0 %vm2081_vm4, %v3079_v60  ;;  %4070 = vmatpush3.msra.mxu1 %v3079_v60  ;;  %v5331_v1 = vld [vmem:[#allocation6 + $0xe] sm:$0x3] }
0x24c7   :  { %v3100_v3 = vrot.slane %v5331_v1, 1  ;;  %4074 = vmatprep.subr.mxu0 %v4412_v4  ;;  %4079 = vmatprep.subr.mxu1 %v4412_v4  ;;  %v3302_v51 = vrot.slane %v5331_v1, 2  ;;  %v3594_v1 = vld [vmem:[%s5464_s11 + $0x20] sm:$0xff] }
0x24c8   :  { %v3285_v5 = vpop.permute.xlu1 %3284 }
0x24c9   :  { %v3289_v7 = vsel %vm67_vm1, %v3050_v29, %v3285_v5  ;;  %v5341_v6 = vsel %vm3051_vm2, %v3100_v3, %v3099_v61  ;;  %v3303_v14 = vsel %vm3051_vm2, %v3302_v51, %v3301_v0  ;;  %vm3177_vm1 = vcmask 64512   ;;  %v3592_v5 = vld [vmem:[%s5464_s11 + $0x10] sm:$0xff] }
0x24ca   :  { %v3308_v55 = vrot.slane %v3289_v7, 1  ;;  %4067 = vmatmul.mubr.msk.f32.vlgmr.msra.gmra.mxu0 %vm2081_vm4, %v5341_v6  ;;  %v3591_v7 = vld [vmem:[%s5464_s11 + $0x8] sm:$0xff] }
0x24cb   :  { %4076 = vmatprep.mubr.msk.f32.mxu0 %vm4413_vm0, %v4412_v4 }
0x24cc   :  { %v3309_v62 = vsel %vm3306_vm3, %v3307_v13, %v3308_v55  ;;  %v3768_v13 = vld [vmem:[%s5463_s10] ss:$0 sm:$0xff]  ;;  %s4390_s10 = scalar_lea.vmem %s3694_s8, 256 }
0x24cd   :  { %4075 = vmatpush3.xpose.msk.msra.mxu0 %vm2081_vm4, %v3309_v62  ;;  %p4391_p0 = scmp.ne.s32.totalorder %s3694_s8, %s4390_s10  ;;  %p4396_p2 = scmp.lt.s32.totalorder %s4390_s10, %s4390_s10 }
0x24ce   :  { %4084 = vmatprep.subr.mxu0 %v3505_v44 }
0x24cf   :  { %p4397_p3 = por %p4396_p2, %p4395_p1 }
0x24d0   :  { %4077 = vmatmul.mubr.msk.f32.vlgmr.msra.gmra.mxu0 %vm2081_vm4, %v3303_v14 }
0x24d1   :  { %4085 = vmatpush3.msra.mxu0 %v3505_v44  ;;  %p4398_p4 = pnand %p4397_p3, %p4391_p0 }
0x24d2   :  { %4086 = vmatprep.subr.mxu0 %v3504_v45 }
0x24d3   :  { %4087 = vmatpush3.msra.mxu0 %v3504_v45 }
0x24d4   :  { %4088 = vmatprep.subr.mxu0 %v3503_v8 }
0x24d5   :  { %4089 = vmatpush3.msra.mxu0 %v3503_v8 }
0x258a   :  { %v3173_v19 = vpop.f32.mrf.mxu0 }
0x258b   :  { %v3178_v20 = vsel %vm3177_vm1, %v3173_v19, -inf }
0x258c   :  { %3179 = vmax.xlane.f32.xlu0 %v3178_v20  ;;  %v4068_v18 = vpop.f32.mrf.mxu0 }
0x258d   :  { %v3769_v18 = vld [vmem:[%s5465_s12] ss:$0 sm:$0xff] }
0x2590   :  { %v3380_v17 = vpop.f32.mrf.mxu0 }
0x2591   :  { %v3384_v23 = vsel %vm3177_vm1, %v3380_v17, -inf }
0x2592   :  { %3385 = vmax.xlane.f32.xlu1 %v3384_v23  ;;  %v4078_v12 = vpop.f32.mrf.mxu0 }
0x2615   :  { %v3180_v26 = vpop.xlane.xlu0 %3179 }
0x2616   :  { %v3181_v16 = vsub.f32 %v3173_v19, %v3180_v26 }
0x2618   :  { %v3182_v52 = vmul.f32 1.442695, %v3181_v16 }
0x261a   :  { %4370 = vpow2.f32 %v3182_v52 }
0x261b   :  { %v3386_v25 = vpop.xlane.xlu1 %3385 }
0x261c   :  { %v3387_v31 = vsub.f32 %v3380_v17, %v3386_v25 }
0x261e   :  { %v3388_v39 = vmul.f32 1.442695, %v3387_v31 }
0x2620   :  { %4372 = vpow2.f32 %v3388_v39 }
0x2627   :  { %v4371_v30 = vpop.eup %4370 }
0x2628   :  { %v3184_v33 = vsel %vm3177_vm1, %v4371_v30, 0.0 }
0x2629   :  { %3185 = vadd.xlane.f32.xlu0 %v3184_v33 }
0x262d   :  { %v4373_v34 = vpop.eup %4372 }
0x262e   :  { %v3390_v35 = vsel %vm3177_vm1, %v4373_v34, 0.0 }
0x262f   :  { %3391 = vadd.xlane.f32.xlu0 %v3390_v35 }
0x26b2   :  { %v3186_v36 = vpop.xlane.xlu0 %3185 }
0x26b3   :  { %4374 = vrcp.f32 %v3186_v36 }
0x26b8   :  { %v3392_v37 = vpop.xlane.xlu0 %3391 }
0x26b9   :  { %4376 = vrcp.f32 %v3392_v37 }
0x26c0   :  { %v4375_v38 = vpop.eup %4374 }
0x26c1   :  { %v3188_v41 = vmul.f32 %v4375_v38, %v4371_v30 }
0x26c3   :  { %4072 = vmatmul.mubr.msk.f32.vlgmr.msra.gmra.mxu1 %vm3177_vm1, %v3188_v41 }
0x26c4   :  { %4080 = vmatpush3.msra.mxu1 %v3309_v62  ;;  %4081 = vmatprep.mubr.msk.f32.mxu1 %vm4413_vm0, %v4412_v4  ;;  %v3502_v4 = vld [vmem:[%s5462_s9 + $0x60] sm:$0xff] }
0x26c5   :  { %4090 = vmatprep.subr.mxu0 %v3502_v4  ;;  %4119 = vmatprep.subr.mxu1 %v3597_v63 }
0x26c6   :  { %v4377_v42 = vpop.eup %4376  ;;  %4091 = vmatpush3.msra.mxu0 %v3502_v4 }
0x26c7   :  { %v3394_v43 = vmul.f32 %v4377_v42, %v4373_v34  ;;  %4092 = vmatprep.subr.mxu0 %v3501_v10 }
0x26c8   :  { %4093 = vmatpush3.msra.mxu0 %v3501_v10 }
0x26c9   :  { %4082 = vmatmul.mubr.msk.f32.vlgmr.msra.gmra.mxu1 %vm3177_vm1, %v3394_v43  ;;  %4094 = vmatprep.subr.mxu0 %v3500_v24 }
0x26ca   :  { %4095 = vmatpush3.msra.mxu0 %v3500_v24  ;;  %4120 = vmatpush3.msra.mxu1 %v3597_v63 }
0x26cb   :  { %4096 = vmatprep.subr.mxu0 %v3499_v27  ;;  %4121 = vmatprep.subr.mxu1 %v3596_v2 }
0x26cc   :  { %4097 = vmatpush3.msra.mxu0 %v3499_v27  ;;  %4122 = vmatpush3.msra.mxu1 %v3596_v2 }
0x26cd   :  { %4098 = vmatprep.subr.mxu0 %v3498_v46 }
0x26ce   :  { %4099 = vmatpush3.msra.mxu0 %v3498_v46 }
0x26cf   :  { %4100 = vmatprep.subr.mxu0 %v3497_v28 }
0x26d0   :  { %4101 = vmatpush3.msra.mxu0 %v3497_v28 }
0x26d1   :  { %4102 = vmatprep.subr.mxu0 %v3496_v15 }
0x26d2   :  { %4103 = vmatpush3.msra.mxu0 %v3496_v15 }
0x26d3   :  { %4104 = vmatprep.subr.mxu0 %v3495_v47 }
0x26d4   :  { %4105 = vmatpush3.msra.mxu0 %v3495_v47 }
0x26d5   :  { %4106 = vmatprep.subr.mxu0 %v3494_v48 }
0x26d6   :  { %4107 = vmatpush3.msra.mxu0 %v3494_v48 }
0x26d7   :  { %4108 = vmatprep.subr.mxu0 %v3493_v49 }
0x26d8   :  { %4109 = vmatpush3.msra.mxu0 %v3493_v49 }
0x26d9   :  { %4110 = vmatprep.subr.mxu0 %v3492_v50 }
0x26da   :  { %4111 = vmatpush3.msra.mxu0 %v3492_v50 }
0x26db   :  { %4112 = vmatprep.subr.mxu0 %v3491_v21 }
0x26dc   :  { %4113 = vmatpush3.msra.mxu0 %v3491_v21 }
0x26dd   :  { %4114 = vmatprep.subr.mxu0 %v3490_v53 }
0x26de   :  { %4115 = vmatpush3.msra.mxu0 %v3490_v53 }
0x2783   :  { %v3258_v54 = vpop.f32.mrf.mxu1 }
0x2784   :  { %3264 = vrot.lane.b32.xlu0 %v3258_v54, %s4414_s5 }
0x2785   :  { %v4073_v56 = vpop.f32.mrf.mxu1 }
0x2789   :  { %v3465_v40 = vpop.f32.mrf.mxu1 }
0x278a   :  { %v3478_v32 = vrot.slane %v3465_v40, 7 }
0x278b   :  { %v4083_v61 = vpop.f32.mrf.mxu1 }
0x278c   :  { %3479 = vrot.lane.b32.xlu1 %v3478_v32, %s4414_s5 }
0x27f6   :  { %v3265_v0 = vpop.permute.xlu0 %3264 }
0x27f7   :  { %v3267_v9 = vsel %vm2081_vm4, %v5341_v6, %v3265_v0  ;;  %v3590_v6 = vld [vmem:[%s5464_s11] sm:$0xff] }
0x27f8   :  { %4116 = vmatprep.mubr.f32.mxu0 %v3267_v9 }
0x27fe   :  { %v3480_v11 = vpop.permute.xlu1 %3479 }
0x27ff   :  { %v3482_v29 = vsel %vm2081_vm4, %v5324_v22, %v3480_v11  ;;  %v3483_v57 = vsel %vm2081_vm4, %v3100_v3, %v3480_v11  ;;  %v3595_v22 = vld [vmem:[%s5464_s11 + $0x28] sm:$0xff]  ;;  %v3593_v3 = vld [vmem:[%s5464_s11 + $0x18] sm:$0xff] }
0x2800   :  { %v3486_v58 = vrot.slane %v3482_v29, 1  ;;  %v3487_v59 = vrot.slane %v3483_v57, 1  ;;  %4123 = vmatprep.subr.mxu1 %v3595_v22 }
0x2801   :  { %4124 = vmatpush3.msra.mxu1 %v3595_v22 }
0x2802   :  { %v3488_v60 = vsel %vm3306_vm3, %v3486_v58, %v3487_v59  ;;  %4125 = vmatprep.subr.mxu1 %v3594_v1 }
0x2803   :  { %4117 = vmatmul.mubr.f32.vlgmr.msra.gmra.mxu0 %v3488_v60  ;;  %4126 = vmatpush3.msra.mxu1 %v3594_v1 }
0x2804   :  { %4127 = vmatprep.subr.mxu1 %v3593_v3 }
0x2805   :  { %4128 = vmatpush3.msra.mxu1 %v3593_v3 }
0x2806   :  { %4129 = vmatprep.subr.mxu1 %v3592_v5 }
0x2807   :  { %4130 = vmatpush3.msra.mxu1 %v3592_v5 }
0x2808   :  { %4131 = vmatprep.subr.mxu1 %v3591_v7 }
0x2809   :  { %4132 = vmatpush3.msra.mxu1 %v3591_v7 }
0x280a   :  { %4133 = vmatprep.subr.mxu1 %v3590_v6 }
0x280b   :  { %4134 = vmatpush3.msra.mxu1 %v3590_v6 }
0x28c3   :  { %v4118_v55 = vpop.f32.mrf.mxu0 }
0x28c4   :  { %v3585_v51 = vadd.f32 %v4118_v55, %v3768_v13 }
0x28c5   :  { %v3579_v62 = vpop.f32.mrf.mxu0 }
0x28c6   :  { %v3580_v14 = vadd.f32 %v3768_v13, %v3579_v62 }
0x28c8   :  { %4378 = vtanh.f32 %v3580_v14 }
0x28c9   :  { %4380 = vtanh.f32 %v3585_v51 }
0x28d5   :  { %v4379_v19 = vpop.eup %4378 }
0x28d6   :  { %v4381_v20 = vpop.eup %4380  ;;  %4135 = vmatprep.mubr.msk.f32.mxu1 %vm2081_vm4, %v4379_v19 }
0x28d7   :  { %4136 = vmatmul.mubr.msk.f32.vlgmr.msra.gmra.mxu1 %vm2081_vm4, %v4381_v20 }
0x2997   :  { %v4137_v17 = vpop.f32.mrf.mxu1 }
0x2998   :  { %v3683_v23 = vadd.f32 %v4137_v17, %v3769_v18 }
0x2999   :  { %v3677_v12 = vpop.f32.mrf.mxu1 }
0x299a   :  { %3687 = vst [vmem:[#allocation7 + $0x8] sm:$0xff] %v3683_v23  ;;  %v3678_v26 = vadd.f32 %v3769_v18, %v3677_v12 }
0x299c   :  { %3686 = vst [vmem:[#allocation7] sm:$0xff] %v3678_v26 }
0x299d   :  { %4401 = shalt.err (!%p4398_p4)
}
0x299e   :  { %s4418_s0 = smov 128   ;;  %s4419_s14 = smov 8  }
0x299f   :  { %3699 = dma.vmem_to_hbm [thread:$0]  %s3694_s8, 256, %s5466_s13, [#allocation8], %s4418_s0, %s4418_s0, %s4419_s14  }
0x29a0   :  { %4410 = dma.done.wait [#allocation8], 256  }
0x29a1   :  { %4411 = vsyncadd [#allocation8], 4294967040 }
0x29a2   :  { %3703 = vsyncpa [#allocation8], 1 }

</bundles_post_ra>
